<compile_context>
chip_gen: v7x
topology: tpu7x:2x2x1
jax: 0.10.0
libtpu: 0.0.40
codegen_flags: <defaults>
</compile_context>

<pallas_src>
import jax
import jax.numpy as jnp
import numpy as np
from jax import lax
from jax.experimental import pallas as pl
from jax.experimental.pallas import tpu as pltpu


def _round_up(x, m):
    return (x + m - 1) // m * m


def _parities(off):
    # output parities p in {0,1} whose fused 2x2 stencil reads padded-source offset `off` in {0,1,2}
    return [p for p in (off - 1, off) if 0 <= p <= 1]


def _fuse_upsample_into_conv(w_oihw):
    """Fold the nearest-2x upsample into the 3x3 conv -> Weff[a, b, ri, si, cin, cout]."""
    # R[a, ri, ky] = 1 iff 3x3 tap row ky of output parity a reads padded-source row offset a+ri
    R = np.zeros((2, 2, 3), dtype=np.float32)
    R[0, 0, 0] = 1.0
    R[0, 1, 1] = 1.0
    R[0, 1, 2] = 1.0
    R[1, 0, 0] = 1.0
    R[1, 0, 1] = 1.0
    R[1, 1, 2] = 1.0
    R = jnp.asarray(R, dtype=w_oihw.dtype)
    return jnp.einsum("ark,bsl,oikl->abrsio", R, R, w_oihw)  # (2,2,2,2,Cin,Cout)


def _pack_fused_weights(weff):
    """Pack Weff into one (Cin, 16*Cout) matrix, window-major.

    Column order must match the kernel: for each window (ro, co) in row-major order over
    {0,1,2}^2, for each row-parity a in _parities(ro), for each col-parity b in
    _parities(co), append Weff[a, b, ro - a, co - b].
    """
    cols = []
    for ro in range(3):
        for co in range(3):
            for a in _parities(ro):
                for b in _parities(co):
                    cols.append(weff[a, b, ro - a, co - b])
    return jnp.concatenate(cols, axis=-1)  # (Cin, 16*Cout)


def _up_conv_kernel(x_ref, h0_ref, h1_ref, w_ref, b_ref, out_ref, xc_ref):
    # x_ref:   (1, TH, W+2, Cp)   padded-input rows [t*TH, t*TH+TH)
    # h0_ref:  (1, 1,  W+2, Cp)   padded-input row  t*TH+TH      (bottom halo row 0)
    # h1_ref:  (1, 1,  W+2, Cp)   padded-input row  t*TH+TH+1    (bottom halo row 1)
    # w_ref:   (Cp, 16*Cp)        packed fused weights (window-major, see _pack_fused_weights)
    # b_ref:   (1, Cp)
    # out_ref: (1, TH, 2, W, 2*Cp)  out[0, i, a, j, b*Cp + c] == y[2i+a, 2j+b, c]
    # xc_ref:  (3, TH+2, W, Cp)   column-shifted planes (the only window materialization)
    TH = x_ref.shape[1]
    Cp = x_ref.shape[3]
    W = x_ref.shape[2] - 2

    # Build the 3 column-shifted planes once (dedups the 16 tap windows down to 3 copies).
    for co in range(3):
        xc_ref[co, 0:TH, :, :] = x_ref[0, :, co:co + W, :]
        xc_ref[co, TH, :, :] = h0_ref[0, 0, co:co + W, :]
        xc_ref[co, TH + 1, :, :] = h1_ref[0, 0, co:co + W, :]

    # Hoisted bias broadcast; one f32 accumulator per output parity (a, b).
    binit = jnp.broadcast_to(b_ref[...].astype(jnp.float32), (TH * W, Cp))
    acc = [binit, binit, binit, binit]

    col = 0
    for ro in range(3):
        pa = _parities(ro)
        for co in range(3):
            pb = _parities(co)
            kw = len(pa) * len(pb)
            # Each tap window is a contiguous row-slice of a column plane (no extra copy).
            lhs = xc_ref[co, ro:ro + TH].reshape(TH * W, Cp)
            res = jnp.dot(lhs, w_ref[:, col:col + kw * Cp],
                          preferred_element_type=jnp.float32)
            k = 0
            for a in pa:
                for b in pb:
                    acc[a * 2 + b] = acc[a * 2 + b] + res[:, k * Cp:(k + 1) * Cp]
                    k += 1
            col += kw * Cp

    # Lane-dense interleaved store: trailing dims (W, 2*Cp) are fully dense, and the
    # wrapper's reshape to (N, 2H, 2W, Cp) is a pure row-major flatten (free).
    for a in range(2):
        ya = jnp.concatenate([acc[a * 2 + 0], acc[a * 2 + 1]], axis=-1)  # (TH*W, 2*Cp)
        out_ref[0, :, a, :, :] = ya.reshape(TH, W, 2 * Cp).astype(out_ref.dtype)


def _tile_vmem_bytes(th, W, Cp, itemsize):
    b = itemsize * (2 * th * (W + 2) * Cp          # main input block, double buffered
                    + 2 * 2 * (W + 2) * Cp         # two 1-row halo blocks, double buffered
                    + 2 * th * 4 * W * Cp          # output block, double buffered
                    + 3 * (th + 2) * W * Cp)       # column-shifted scratch
    b += 4 * (4 * th * W * Cp + 4 * th * W * Cp)   # f32 accumulators + widest dot result
    return b


def _pick_row_tile(H, W, Cp, itemsize, budget_bytes=16 * 1024 * 1024):
    best = 1
    for th in range(1, H + 1):
        if H % th:
            continue
        if _tile_vmem_bytes(th, W, Cp, itemsize) <= budget_bytes:
            best = th
    return best


def upsample2x_conv3x3(x_nhwc, wpack, bias_p, row_tile=None):
    """Fused nearest-2x upsample + 3x3 'same' conv.  x: (N,H,W,C); wpack: (Cp, 16*Cp)."""
    N, H, W, C = x_nhwc.shape
    Cp = wpack.shape[0]
    dt = x_nhwc.dtype
    wpack = wpack.astype(dt)
    bias_p = bias_p.astype(dt).reshape(1, Cp)

    # Zero-pad once in HBM: 1-pixel spatial halo for the stencil + channels up to a lane
    # multiple (128) so all kernel loads/stores/matmuls are lane-dense.
    xp = jnp.pad(x_nhwc, ((0, 0), (1, 1), (1, 1), (0, Cp - C)))

    itemsize = jnp.dtype(dt).itemsize
    TH = row_tile if row_tile is not None else _pick_row_tile(H, W, Cp, itemsize)
    assert H % TH == 0, "row tile must divide H"
    n_tiles = H // TH

    fixed_bytes = 2 * Cp * 16 * Cp * itemsize + 8 * Cp * itemsize   # weights + bias (2-buffered)
    need = _tile_vmem_bytes(TH, W, Cp, itemsize) + fixed_bytes + (4 << 20)
    vmem_limit = int(min(max(need, 32 << 20), 64 << 20))            # v7x physical is 64 MiB

    out = pl.pallas_call(
        _up_conv_kernel,
        out_shape=jax.ShapeDtypeStruct((N, H, 2, W, 2 * Cp), dt),
        grid_spec=pltpu.PrefetchScalarGridSpec(
            num_scalar_prefetch=0,
            grid=(N, n_tiles),
            in_specs=[
                pl.BlockSpec((1, TH, W + 2, Cp), lambda n, t: (n, t, 0, 0)),
                pl.BlockSpec((1, 1, W + 2, Cp), lambda n, t: (n, t * TH + TH, 0, 0)),
                pl.BlockSpec((1, 1, W + 2, Cp), lambda n, t: (n, t * TH + TH + 1, 0, 0)),
                pl.BlockSpec((Cp, 16 * Cp), lambda n, t: (0, 0)),
                pl.BlockSpec((1, Cp), lambda n, t: (0, 0)),
            ],
            out_specs=pl.BlockSpec((1, TH, 2, W, 2 * Cp), lambda n, t: (n, t, 0, 0, 0)),
            scratch_shapes=[pltpu.VMEM((3, TH + 2, W, Cp), dt)],
        ),
        compiler_params=pltpu.CompilerParams(
            dimension_semantics=("parallel", "parallel"),
            vmem_limit_bytes=vmem_limit,
        ),
    )(xp, xp, xp, wpack, bias_p)

    y = out.reshape(N, 2 * H, 2 * W, Cp)   # free reshape: pure row-major flatten
    if Cp != C:
        y = y[..., :C]
    return y


class Upsample:
    """JAX/Pallas port of ddpm.diffusion.Upsample (nearest 2x + optional 3x3 conv)."""

    def __init__(self, in_channels, with_conv, key=None):
        self.in_channels = in_channels
        self.with_conv = with_conv
        if with_conv:
            key = jax.random.PRNGKey(0) if key is None else key
            kw, kb = jax.random.split(key)
            fan_in = in_channels * 9
            bound = 1.0 / float(np.sqrt(fan_in))
            # deterministic synthetic init mimicking torch.nn.Conv2d default U(-b, b)
            self.weight = jax.random.uniform(
                kw, (in_channels, in_channels, 3, 3), jnp.float32, -bound, bound)
            self.bias = jax.random.uniform(kb, (in_channels,), jnp.float32, -bound, bound)

            cp = _round_up(max(in_channels, 1), 128)
            w_p = jnp.zeros((cp, cp, 3, 3), jnp.float32)
            w_p = w_p.at[:in_channels, :in_channels].set(self.weight)
            b_p = jnp.zeros((cp,), jnp.float32).at[:in_channels].set(self.bias)
            self.cp = cp
            self.wpack = _pack_fused_weights(_fuse_upsample_into_conv(w_p))  # (cp, 16*cp)
            self.bias_p = b_p

    def apply_nhwc(self, x_nhwc):
        """Preferred entry point for an NHWC model (no layout transposes)."""
        if self.with_conv:
            return upsample2x_conv3x3(x_nhwc, self.wpack, self.bias_p)
        N, H, W, C = x_nhwc.shape
        return jnp.broadcast_to(
            x_nhwc[:, :, None, :, None, :], (N, H, 2, W, 2, C)).reshape(N, 2 * H, 2 * W, C)

    def __call__(self, x_nchw):
        if not self.with_conv:
            # pure nearest-2x: plain XLA broadcast+reshape (no Pallas needed, per review)
            N, C, H, W = x_nchw.shape
            return jnp.broadcast_to(
                x_nchw[:, :, :, None, :, None], (N, C, H, 2, W, 2)).reshape(N, C, 2 * H, 2 * W)
        # NOTE: these two transposes exist only for API parity with the PyTorch NCHW module;
        # inside an NHWC model call apply_nhwc directly and they disappear.
        x_nhwc = jnp.transpose(x_nchw, (0, 2, 3, 1))
        y = self.apply_nhwc(x_nhwc)
        return jnp.transpose(y, (0, 3, 1, 2))


def _reference(x_nchw, module):
    u = jnp.repeat(jnp.repeat(x_nchw, 2, axis=2), 2, axis=3)
    if module.with_conv:
        u = lax.conv_general_dilated(
            u, module.weight, window_strides=(1, 1), padding=((1, 1), (1, 1)),
            dimension_numbers=("NCHW", "OIHW", "NCHW"))
        u = u + module.bias.reshape(1, -1, 1, 1)
    return u


if __name__ == "__main__":
    key = jax.random.PRNGKey(0)
    kx, kp = jax.random.split(key)
    N, C, H, W = 2, 4, 16, 16
    x = jax.random.normal(kx, (N, C, H, W), jnp.float32)

    # with_conv=True path (upsample fused into the 3x3 conv, Pallas kernel)
    mod = Upsample(C, with_conv=True, key=kp)
    out = jax.block_until_ready(mod(x))
    assert out.shape == (N, C, 2 * H, 2 * W)
    ref = _reference(x, mod)
    np.testing.assert_allclose(np.asarray(out), np.asarray(ref), rtol=2e-5, atol=2e-5)

    # with_conv=False path (pure nearest 2x upsample, plain XLA data movement)
    mod_nc = Upsample(C, with_conv=False)
    out_nc = jax.block_until_ready(mod_nc(x))
    np.testing.assert_allclose(np.asarray(out_nc), np.asarray(_reference(x, mod_nc)),
                               rtol=0, atol=0)

    print("KERNEL_OK")
</pallas_src>

<mosaic_0001>
module attributes {stable_mosaic.version = 11 : i64} {
  func.func @_up_conv_kernel(%arg0: i32, %arg1: i32, %arg2: memref<1x16x18x128xf32, #tpu.memory_space<vmem>>, %arg3: memref<1x1x18x128xf32, #tpu.memory_space<vmem>>, %arg4: memref<1x1x18x128xf32, #tpu.memory_space<vmem>>, %arg5: memref<128x2048xf32, #tpu.memory_space<vmem>>, %arg6: memref<1x128xf32, #tpu.memory_space<vmem>>, %arg7: memref<1x16x2x16x256xf32, #tpu.memory_space<vmem>>, %arg8: memref<3x18x16x128xf32, #tpu.memory_space<vmem>>) attributes {dimension_semantics = [#tpu.dimension_semantics<parallel>, #tpu.dimension_semantics<parallel>], iteration_bounds = array<i64: 2, 1>, scalar_prefetch = 0 : i64, scratch_operands = 1 : i64, tpu.core_type = #tpu.core_type<tc>, window_params = [{transform_indices = @transform_0, window_bounds = array<i64: 1, 16, 18, 128>}, {transform_indices = @transform_1, window_bounds = array<i64: 1, 1, 18, 128>}, {transform_indices = @transform_2, window_bounds = array<i64: 1, 1, 18, 128>}, {pipeline_mode = #tpu.pipeline_mode<synchronous>, transform_indices = @transform_3, window_bounds = array<i64: 128, 2048>}, {pipeline_mode = #tpu.pipeline_mode<synchronous>, transform_indices = @transform_4, window_bounds = array<i64: 1, 128>}, {transform_indices = @transform_5, window_bounds = array<i64: 1, 16, 2, 16, 256>}]} {
    %c0 = arith.constant 0 : index
    %c0_0 = arith.constant 0 : index
    %c0_1 = arith.constant 0 : index
    %c0_2 = arith.constant 0 : index
    %0 = vector.load %arg2[%c0, %c0_0, %c0_1, %c0_2] : memref<1x16x18x128xf32, #tpu.memory_space<vmem>>, vector<1x16x16x128xf32>
    %1 = vector.shape_cast %0 : vector<1x16x16x128xf32> to vector<16x16x128xf32>
    %c0_3 = arith.constant 0 : index
    %c0_4 = arith.constant 0 : index
    %c0_5 = arith.constant 0 : index
    %c0_6 = arith.constant 0 : index
    %2 = vector.load %arg8[%c0_3, %c0_4, %c0_5, %c0_6] : memref<3x18x16x128xf32, #tpu.memory_space<vmem>>, vector<1x16x16x128xf32>
    %3 = vector.shape_cast %2 : vector<1x16x16x128xf32> to vector<16x16x128xf32>
    %4 = vector.shape_cast %1 : vector<16x16x128xf32> to vector<1x16x16x128xf32>
    tpu.vector_store %arg8[%c0_3, %c0_4, %c0_5, %c0_6], %4 {strides = array<i32>} : memref<3x18x16x128xf32, #tpu.memory_space<vmem>>, vector<1x16x16x128xf32>,
    %c0_7 = arith.constant 0 : index
    %c0_8 = arith.constant 0 : index
    %c0_9 = arith.constant 0 : index
    %c0_10 = arith.constant 0 : index
    %5 = vector.load %arg3[%c0_7, %c0_8, %c0_9, %c0_10] : memref<1x1x18x128xf32, #tpu.memory_space<vmem>>, vector<1x1x16x128xf32>
    %6 = vector.shape_cast %5 : vector<1x1x16x128xf32> to vector<16x128xf32>
    %c0_11 = arith.constant 0 : index
    %c16 = arith.constant 16 : index
    %c0_12 = arith.constant 0 : index
    %c0_13 = arith.constant 0 : index
    %7 = vector.load %arg8[%c0_11, %c16, %c0_12, %c0_13] : memref<3x18x16x128xf32, #tpu.memory_space<vmem>>, vector<1x1x16x128xf32>
    %8 = vector.shape_cast %7 : vector<1x1x16x128xf32> to vector<16x128xf32>
    %9 = vector.shape_cast %6 : vector<16x128xf32> to vector<1x1x16x128xf32>
    tpu.vector_store %arg8[%c0_11, %c16, %c0_12, %c0_13], %9 {strides = array<i32>} : memref<3x18x16x128xf32, #tpu.memory_space<vmem>>, vector<1x1x16x128xf32>,
    %c0_14 = arith.constant 0 : index
    %c0_15 = arith.constant 0 : index
    %c0_16 = arith.constant 0 : index
    %c0_17 = arith.constant 0 : index
    %10 = vector.load %arg4[%c0_14, %c0_15, %c0_16, %c0_17] : memref<1x1x18x128xf32, #tpu.memory_space<vmem>>, vector<1x1x16x128xf32>
    %11 = vector.shape_cast %10 : vector<1x1x16x128xf32> to vector<16x128xf32>
    %c0_18 = arith.constant 0 : index
    %c17 = arith.constant 17 : index
    %c0_19 = arith.constant 0 : index
    %c0_20 = arith.constant 0 : index
    %12 = vector.load %arg8[%c0_18, %c17, %c0_19, %c0_20] : memref<3x18x16x128xf32, #tpu.memory_space<vmem>>, vector<1x1x16x128xf32>
    %13 = vector.shape_cast %12 : vector<1x1x16x128xf32> to vector<16x128xf32>
    %14 = vector.shape_cast %11 : vector<16x128xf32> to vector<1x1x16x128xf32>
    tpu.vector_store %arg8[%c0_18, %c17, %c0_19, %c0_20], %14 {strides = array<i32>} : memref<3x18x16x128xf32, #tpu.memory_space<vmem>>, vector<1x1x16x128xf32>,
    %c0_21 = arith.constant 0 : index
    %c0_22 = arith.constant 0 : index
    %c1 = arith.constant 1 : index
    %c0_23 = arith.constant 0 : index
    %15 = vector.load %arg2[%c0_21, %c0_22, %c1, %c0_23] : memref<1x16x18x128xf32, #tpu.memory_space<vmem>>, vector<1x16x16x128xf32>
    %16 = vector.shape_cast %15 : vector<1x16x16x128xf32> to vector<16x16x128xf32>
    %c1_24 = arith.constant 1 : index
    %c0_25 = arith.constant 0 : index
    %c0_26 = arith.constant 0 : index
    %c0_27 = arith.constant 0 : index
    %17 = vector.load %arg8[%c1_24, %c0_25, %c0_26, %c0_27] : memref<3x18x16x128xf32, #tpu.memory_space<vmem>>, vector<1x16x16x128xf32>
    %18 = vector.shape_cast %17 : vector<1x16x16x128xf32> to vector<16x16x128xf32>
    %19 = vector.shape_cast %16 : vector<16x16x128xf32> to vector<1x16x16x128xf32>
    tpu.vector_store %arg8[%c1_24, %c0_25, %c0_26, %c0_27], %19 {strides = array<i32>} : memref<3x18x16x128xf32, #tpu.memory_space<vmem>>, vector<1x16x16x128xf32>,
    %c0_28 = arith.constant 0 : index
    %c0_29 = arith.constant 0 : index
    %c1_30 = arith.constant 1 : index
    %c0_31 = arith.constant 0 : index
    %20 = vector.load %arg3[%c0_28, %c0_29, %c1_30, %c0_31] : memref<1x1x18x128xf32, #tpu.memory_space<vmem>>, vector<1x1x16x128xf32>
    %21 = vector.shape_cast %20 : vector<1x1x16x128xf32> to vector<16x128xf32>
    %c1_32 = arith.constant 1 : index
    %c16_33 = arith.constant 16 : index
    %c0_34 = arith.constant 0 : index
    %c0_35 = arith.constant 0 : index
    %22 = vector.load %arg8[%c1_32, %c16_33, %c0_34, %c0_35] : memref<3x18x16x128xf32, #tpu.memory_space<vmem>>, vector<1x1x16x128xf32>
    %23 = vector.shape_cast %22 : vector<1x1x16x128xf32> to vector<16x128xf32>
    %24 = vector.shape_cast %21 : vector<16x128xf32> to vector<1x1x16x128xf32>
    tpu.vector_store %arg8[%c1_32, %c16_33, %c0_34, %c0_35], %24 {strides = array<i32>} : memref<3x18x16x128xf32, #tpu.memory_space<vmem>>, vector<1x1x16x128xf32>,
    %c0_36 = arith.constant 0 : index
    %c0_37 = arith.constant 0 : index
    %c1_38 = arith.constant 1 : index
    %c0_39 = arith.constant 0 : index
    %25 = vector.load %arg4[%c0_36, %c0_37, %c1_38, %c0_39] : memref<1x1x18x128xf32, #tpu.memory_space<vmem>>, vector<1x1x16x128xf32>
    %26 = vector.shape_cast %25 : vector<1x1x16x128xf32> to vector<16x128xf32>
    %c1_40 = arith.constant 1 : index
    %c17_41 = arith.constant 17 : index
    %c0_42 = arith.constant 0 : index
    %c0_43 = arith.constant 0 : index
    %27 = vector.load %arg8[%c1_40, %c17_41, %c0_42, %c0_43] : memref<3x18x16x128xf32, #tpu.memory_space<vmem>>, vector<1x1x16x128xf32>
    %28 = vector.shape_cast %27 : vector<1x1x16x128xf32> to vector<16x128xf32>
    %29 = vector.shape_cast %26 : vector<16x128xf32> to vector<1x1x16x128xf32>
    tpu.vector_store %arg8[%c1_40, %c17_41, %c0_42, %c0_43], %29 {strides = array<i32>} : memref<3x18x16x128xf32, #tpu.memory_space<vmem>>, vector<1x1x16x128xf32>,
    %c0_44 = arith.constant 0 : index
    %c0_45 = arith.constant 0 : index
    %c2 = arith.constant 2 : index
    %c0_46 = arith.constant 0 : index
    %30 = vector.load %arg2[%c0_44, %c0_45, %c2, %c0_46] : memref<1x16x18x128xf32, #tpu.memory_space<vmem>>, vector<1x16x16x128xf32>
    %31 = vector.shape_cast %30 : vector<1x16x16x128xf32> to vector<16x16x128xf32>
    %c2_47 = arith.constant 2 : index
    %c0_48 = arith.constant 0 : index
    %c0_49 = arith.constant 0 : index
    %c0_50 = arith.constant 0 : index
    %32 = vector.load %arg8[%c2_47, %c0_48, %c0_49, %c0_50] : memref<3x18x16x128xf32, #tpu.memory_space<vmem>>, vector<1x16x16x128xf32>
    %33 = vector.shape_cast %32 : vector<1x16x16x128xf32> to vector<16x16x128xf32>
    %34 = vector.shape_cast %31 : vector<16x16x128xf32> to vector<1x16x16x128xf32>
    tpu.vector_store %arg8[%c2_47, %c0_48, %c0_49, %c0_50], %34 {strides = array<i32>} : memref<3x18x16x128xf32, #tpu.memory_space<vmem>>, vector<1x16x16x128xf32>,
    %c0_51 = arith.constant 0 : index
    %c0_52 = arith.constant 0 : index
    %c2_53 = arith.constant 2 : index
    %c0_54 = arith.constant 0 : index
    %35 = vector.load %arg3[%c0_51, %c0_52, %c2_53, %c0_54] : memref<1x1x18x128xf32, #tpu.memory_space<vmem>>, vector<1x1x16x128xf32>
    %36 = vector.shape_cast %35 : vector<1x1x16x128xf32> to vector<16x128xf32>
    %c2_55 = arith.constant 2 : index
    %c16_56 = arith.constant 16 : index
    %c0_57 = arith.constant 0 : index
    %c0_58 = arith.constant 0 : index
    %37 = vector.load %arg8[%c2_55, %c16_56, %c0_57, %c0_58] : memref<3x18x16x128xf32, #tpu.memory_space<vmem>>, vector<1x1x16x128xf32>
    %38 = vector.shape_cast %37 : vector<1x1x16x128xf32> to vector<16x128xf32>
    %39 = vector.shape_cast %36 : vector<16x128xf32> to vector<1x1x16x128xf32>
    tpu.vector_store %arg8[%c2_55, %c16_56, %c0_57, %c0_58], %39 {strides = array<i32>} : memref<3x18x16x128xf32, #tpu.memory_space<vmem>>, vector<1x1x16x128xf32>,
    %c0_59 = arith.constant 0 : index
    %c0_60 = arith.constant 0 : index
    %c2_61 = arith.constant 2 : index
    %c0_62 = arith.constant 0 : index
    %40 = vector.load %arg4[%c0_59, %c0_60, %c2_61, %c0_62] : memref<1x1x18x128xf32, #tpu.memory_space<vmem>>, vector<1x1x16x128xf32>
    %41 = vector.shape_cast %40 : vector<1x1x16x128xf32> to vector<16x128xf32>
    %c2_63 = arith.constant 2 : index
    %c17_64 = arith.constant 17 : index
    %c0_65 = arith.constant 0 : index
    %c0_66 = arith.constant 0 : index
    %42 = vector.load %arg8[%c2_63, %c17_64, %c0_65, %c0_66] : memref<3x18x16x128xf32, #tpu.memory_space<vmem>>, vector<1x1x16x128xf32>
    %43 = vector.shape_cast %42 : vector<1x1x16x128xf32> to vector<16x128xf32>
    %44 = vector.shape_cast %41 : vector<16x128xf32> to vector<1x1x16x128xf32>
    tpu.vector_store %arg8[%c2_63, %c17_64, %c0_65, %c0_66], %44 {strides = array<i32>} : memref<3x18x16x128xf32, #tpu.memory_space<vmem>>, vector<1x1x16x128xf32>,
    %c0_67 = arith.constant 0 : index
    %c0_68 = arith.constant 0 : index
    %45 = vector.load %arg6[%c0_67, %c0_68] : memref<1x128xf32, #tpu.memory_space<vmem>>, vector<1x128xf32>
    %46 = vector.shape_cast %45 : vector<1x128xf32> to vector<1x128xf32>
    %47 = vector.broadcast %46 : vector<1x128xf32> to vector<256x128xf32>
    %c0_69 = arith.constant 0 : index
    %c0_70 = arith.constant 0 : index
    %c0_71 = arith.constant 0 : index
    %c0_72 = arith.constant 0 : index
    %48 = vector.load %arg8[%c0_69, %c0_70, %c0_71, %c0_72] : memref<3x18x16x128xf32, #tpu.memory_space<vmem>>, vector<1x16x16x128xf32>
    %49 = vector.shape_cast %48 : vector<1x16x16x128xf32> to vector<16x16x128xf32>
    %50 = vector.shape_cast %49 : vector<16x16x128xf32> to vector<256x128xf32>
    %c0_73 = arith.constant 0 : index
    %c0_74 = arith.constant 0 : index
    %51 = vector.load %arg5[%c0_73, %c0_74] : memref<128x2048xf32, #tpu.memory_space<vmem>>, vector<128x128xf32>
    %cst = arith.constant dense<0.000000e+00> : vector<256x128xf32>
    %52 = tpu.matmul %50, %51, %cst {dimension_numbers = #tpu.dot_dimension_numbers<[1], [0], [0], [1], [0, 0, 1, 1], [], []>} : vector<256x128xf32>, vector<128x128xf32>, vector<256x128xf32> -> vector<256x128xf32>
    %53 = arith.addf %47, %52 : vector<256x128xf32>
    %c1_75 = arith.constant 1 : index
    %c0_76 = arith.constant 0 : index
    %c0_77 = arith.constant 0 : index
    %c0_78 = arith.constant 0 : index
    %54 = vector.load %arg8[%c1_75, %c0_76, %c0_77, %c0_78] : memref<3x18x16x128xf32, #tpu.memory_space<vmem>>, vector<1x16x16x128xf32>
    %55 = vector.shape_cast %54 : vector<1x16x16x128xf32> to vector<16x16x128xf32>
    %56 = vector.shape_cast %55 : vector<16x16x128xf32> to vector<256x128xf32>
    %c0_79 = arith.constant 0 : index
    %c128 = arith.constant 128 : index
    %57 = vector.load %arg5[%c0_79, %c128] : memref<128x2048xf32, #tpu.memory_space<vmem>>, vector<128x256xf32>
    %cst_80 = arith.constant dense<0.000000e+00> : vector<256x256xf32>
    %58 = tpu.matmul %56, %57, %cst_80 {dimension_numbers = #tpu.dot_dimension_numbers<[1], [0], [0], [1], [0, 0, 1, 1], [], []>} : vector<256x128xf32>, vector<128x256xf32>, vector<256x256xf32> -> vector<256x256xf32>
    %59 = vector.extract_strided_slice %58 {offsets = [0, 0], sizes = [256, 128], strides = [1, 1]} : vector<256x256xf32> to vector<256x128xf32>
    %60 = arith.addf %53, %59 : vector<256x128xf32>
    %61 = vector.extract_strided_slice %58 {offsets = [0, 128], sizes = [256, 128], strides = [1, 1]} : vector<256x256xf32> to vector<256x128xf32>
    %62 = arith.addf %47, %61 : vector<256x128xf32>
    %c2_81 = arith.constant 2 : index
    %c0_82 = arith.constant 0 : index
    %c0_83 = arith.constant 0 : index
    %c0_84 = arith.constant 0 : index
    %63 = vector.load %arg8[%c2_81, %c0_82, %c0_83, %c0_84] : memref<3x18x16x128xf32, #tpu.memory_space<vmem>>, vector<1x16x16x128xf32>
    %64 = vector.shape_cast %63 : vector<1x16x16x128xf32> to vector<16x16x128xf32>
    %65 = vector.shape_cast %64 : vector<16x16x128xf32> to vector<256x128xf32>
    %c0_85 = arith.constant 0 : index
    %c384 = arith.constant 384 : index
    %66 = vector.load %arg5[%c0_85, %c384] : memref<128x2048xf32, #tpu.memory_space<vmem>>, vector<128x128xf32>
    %cst_86 = arith.constant dense<0.000000e+00> : vector<256x128xf32>
    %67 = tpu.matmul %65, %66, %cst_86 {dimension_numbers = #tpu.dot_dimension_numbers<[1], [0], [0], [1], [0, 0, 1, 1], [], []>} : vector<256x128xf32>, vector<128x128xf32>, vector<256x128xf32> -> vector<256x128xf32>
    %68 = arith.addf %62, %67 : vector<256x128xf32>
    %c0_87 = arith.constant 0 : index
    %c1_88 = arith.constant 1 : index
    %c0_89 = arith.constant 0 : index
    %c0_90 = arith.constant 0 : index
    %69 = vector.load %arg8[%c0_87, %c1_88, %c0_89, %c0_90] : memref<3x18x16x128xf32, #tpu.memory_space<vmem>>, vector<1x16x16x128xf32>
    %70 = vector.shape_cast %69 : vector<1x16x16x128xf32> to vector<16x16x128xf32>
    %71 = vector.shape_cast %70 : vector<16x16x128xf32> to vector<256x128xf32>
    %c0_91 = arith.constant 0 : index
    %c512 = arith.constant 512 : index
    %72 = vector.load %arg5[%c0_91, %c512] : memref<128x2048xf32, #tpu.memory_space<vmem>>, vector<128x256xf32>
    %cst_92 = arith.constant dense<0.000000e+00> : vector<256x256xf32>
    %73 = tpu.matmul %71, %72, %cst_92 {dimension_numbers = #tpu.dot_dimension_numbers<[1], [0], [0], [1], [0, 0, 1, 1], [], []>} : vector<256x128xf32>, vector<128x256xf32>, vector<256x256xf32> -> vector<256x256xf32>
    %74 = vector.extract_strided_slice %73 {offsets = [0, 0], sizes = [256, 128], strides = [1, 1]} : vector<256x256xf32> to vector<256x128xf32>
    %75 = arith.addf %60, %74 : vector<256x128xf32>
    %76 = vector.extract_strided_slice %73 {offsets = [0, 128], sizes = [256, 128], strides = [1, 1]} : vector<256x256xf32> to vector<256x128xf32>
    %77 = arith.addf %47, %76 : vector<256x128xf32>
    %c1_93 = arith.constant 1 : index
    %c1_94 = arith.constant 1 : index
    %c0_95 = arith.constant 0 : index
    %c0_96 = arith.constant 0 : index
    %78 = vector.load %arg8[%c1_93, %c1_94, %c0_95, %c0_96] : memref<3x18x16x128xf32, #tpu.memory_space<vmem>>, vector<1x16x16x128xf32>
    %79 = vector.shape_cast %78 : vector<1x16x16x128xf32> to vector<16x16x128xf32>
    %80 = vector.shape_cast %79 : vector<16x16x128xf32> to vector<256x128xf32>
    %c0_97 = arith.constant 0 : index
    %c768 = arith.constant 768 : index
    %81 = vector.load %arg5[%c0_97, %c768] : memref<128x2048xf32, #tpu.memory_space<vmem>>, vector<128x512xf32>
    %cst_98 = arith.constant dense<0.000000e+00> : vector<256x512xf32>
    %82 = tpu.matmul %80, %81, %cst_98 {dimension_numbers = #tpu.dot_dimension_numbers<[1], [0], [0], [1], [0, 0, 1, 1], [], []>} : vector<256x128xf32>, vector<128x512xf32>, vector<256x512xf32> -> vector<256x512xf32>
    %83 = vector.extract_strided_slice %82 {offsets = [0, 0], sizes = [256, 128], strides = [1, 1]} : vector<256x512xf32> to vector<256x128xf32>
    %84 = arith.addf %75, %83 : vector<256x128xf32>
    %85 = vector.extract_strided_slice %82 {offsets = [0, 128], sizes = [256, 128], strides = [1, 1]} : vector<256x512xf32> to vector<256x128xf32>
    %86 = arith.addf %68, %85 : vector<256x128xf32>
    %87 = vector.extract_strided_slice %82 {offsets = [0, 256], sizes = [256, 128], strides = [1, 1]} : vector<256x512xf32> to vector<256x128xf32>
    %88 = arith.addf %77, %87 : vector<256x128xf32>
    %89 = vector.extract_strided_slice %82 {offsets = [0, 384], sizes = [256, 128], strides = [1, 1]} : vector<256x512xf32> to vector<256x128xf32>
    %90 = arith.addf %47, %89 : vector<256x128xf32>
    %c2_99 = arith.constant 2 : index
    %c1_100 = arith.constant 1 : index
    %c0_101 = arith.constant 0 : index
    %c0_102 = arith.constant 0 : index
    %91 = vector.load %arg8[%c2_99, %c1_100, %c0_101, %c0_102] : memref<3x18x16x128xf32, #tpu.memory_space<vmem>>, vector<1x16x16x128xf32>
    %92 = vector.shape_cast %91 : vector<1x16x16x128xf32> to vector<16x16x128xf32>
    %93 = vector.shape_cast %92 : vector<16x16x128xf32> to vector<256x128xf32>
    %c0_103 = arith.constant 0 : index
    %c1280 = arith.constant 1280 : index
    %94 = vector.load %arg5[%c0_103, %c1280] : memref<128x2048xf32, #tpu.memory_space<vmem>>, vector<128x256xf32>
    %cst_104 = arith.constant dense<0.000000e+00> : vector<256x256xf32>
    %95 = tpu.matmul %93, %94, %cst_104 {dimension_numbers = #tpu.dot_dimension_numbers<[1], [0], [0], [1], [0, 0, 1, 1], [], []>} : vector<256x128xf32>, vector<128x256xf32>, vector<256x256xf32> -> vector<256x256xf32>
    %96 = vector.extract_strided_slice %95 {offsets = [0, 0], sizes = [256, 128], strides = [1, 1]} : vector<256x256xf32> to vector<256x128xf32>
    %97 = arith.addf %86, %96 : vector<256x128xf32>
    %98 = vector.extract_strided_slice %95 {offsets = [0, 128], sizes = [256, 128], strides = [1, 1]} : vector<256x256xf32> to vector<256x128xf32>
    %99 = arith.addf %90, %98 : vector<256x128xf32>
    %c0_105 = arith.constant 0 : index
    %c2_106 = arith.constant 2 : index
    %c0_107 = arith.constant 0 : index
    %c0_108 = arith.constant 0 : index
    %100 = vector.load %arg8[%c0_105, %c2_106, %c0_107, %c0_108] : memref<3x18x16x128xf32, #tpu.memory_space<vmem>>, vector<1x16x16x128xf32>
    %101 = vector.shape_cast %100 : vector<1x16x16x128xf32> to vector<16x16x128xf32>
    %102 = vector.shape_cast %101 : vector<16x16x128xf32> to vector<256x128xf32>
    %c0_109 = arith.constant 0 : index
    %c1536 = arith.constant 1536 : index
    %103 = vector.load %arg5[%c0_109, %c1536] : memref<128x2048xf32, #tpu.memory_space<vmem>>, vector<128x128xf32>
    %cst_110 = arith.constant dense<0.000000e+00> : vector<256x128xf32>
    %104 = tpu.matmul %102, %103, %cst_110 {dimension_numbers = #tpu.dot_dimension_numbers<[1], [0], [0], [1], [0, 0, 1, 1], [], []>} : vector<256x128xf32>, vector<128x128xf32>, vector<256x128xf32> -> vector<256x128xf32>
    %105 = arith.addf %88, %104 : vector<256x128xf32>
    %c1_111 = arith.constant 1 : index
    %c2_112 = arith.constant 2 : index
    %c0_113 = arith.constant 0 : index
    %c0_114 = arith.constant 0 : index
    %106 = vector.load %arg8[%c1_111, %c2_112, %c0_113, %c0_114] : memref<3x18x16x128xf32, #tpu.memory_space<vmem>>, vector<1x16x16x128xf32>
    %107 = vector.shape_cast %106 : vector<1x16x16x128xf32> to vector<16x16x128xf32>
    %108 = vector.shape_cast %107 : vector<16x16x128xf32> to vector<256x128xf32>
    %c0_115 = arith.constant 0 : index
    %c1664 = arith.constant 1664 : index
    %109 = vector.load %arg5[%c0_115, %c1664] : memref<128x2048xf32, #tpu.memory_space<vmem>>, vector<128x256xf32>
    %cst_116 = arith.constant dense<0.000000e+00> : vector<256x256xf32>
    %110 = tpu.matmul %108, %109, %cst_116 {dimension_numbers = #tpu.dot_dimension_numbers<[1], [0], [0], [1], [0, 0, 1, 1], [], []>} : vector<256x128xf32>, vector<128x256xf32>, vector<256x256xf32> -> vector<256x256xf32>
    %111 = vector.extract_strided_slice %110 {offsets = [0, 0], sizes = [256, 128], strides = [1, 1]} : vector<256x256xf32> to vector<256x128xf32>
    %112 = arith.addf %105, %111 : vector<256x128xf32>
    %113 = vector.extract_strided_slice %110 {offsets = [0, 128], sizes = [256, 128], strides = [1, 1]} : vector<256x256xf32> to vector<256x128xf32>
    %114 = arith.addf %99, %113 : vector<256x128xf32>
    %c2_117 = arith.constant 2 : index
    %c2_118 = arith.constant 2 : index
    %c0_119 = arith.constant 0 : index
    %c0_120 = arith.constant 0 : index
    %115 = vector.load %arg8[%c2_117, %c2_118, %c0_119, %c0_120] : memref<3x18x16x128xf32, #tpu.memory_space<vmem>>, vector<1x16x16x128xf32>
    %116 = vector.shape_cast %115 : vector<1x16x16x128xf32> to vector<16x16x128xf32>
    %117 = vector.shape_cast %116 : vector<16x16x128xf32> to vector<256x128xf32>
    %c0_121 = arith.constant 0 : index
    %c1920 = arith.constant 1920 : index
    %118 = vector.load %arg5[%c0_121, %c1920] : memref<128x2048xf32, #tpu.memory_space<vmem>>, vector<128x128xf32>
    %cst_122 = arith.constant dense<0.000000e+00> : vector<256x128xf32>
    %119 = tpu.matmul %117, %118, %cst_122 {dimension_numbers = #tpu.dot_dimension_numbers<[1], [0], [0], [1], [0, 0, 1, 1], [], []>} : vector<256x128xf32>, vector<128x128xf32>, vector<256x128xf32> -> vector<256x128xf32>
    %120 = arith.addf %114, %119 : vector<256x128xf32>
    %121 = tpu.concatenate %84, %97 in 1 : vector<256x128xf32>, vector<256x128xf32> -> vector<256x256xf32>
    %122 = vector.shape_cast %121 : vector<256x256xf32> to vector<16x16x256xf32>
    %c0_123 = arith.constant 0 : index
    %c0_124 = arith.constant 0 : index
    %c0_125 = arith.constant 0 : index
    %c0_126 = arith.constant 0 : index
    %c0_127 = arith.constant 0 : index
    %123 = vector.load %arg7[%c0_123, %c0_124, %c0_125, %c0_126, %c0_127] : memref<1x16x2x16x256xf32, #tpu.memory_space<vmem>>, vector<1x16x1x16x256xf32>
    %124 = vector.shape_cast %123 : vector<1x16x1x16x256xf32> to vector<16x16x256xf32>
    %125 = vector.shape_cast %122 : vector<16x16x256xf32> to vector<1x16x1x16x256xf32>
    tpu.vector_store %arg7[%c0_123, %c0_124, %c0_125, %c0_126, %c0_127], %125 {strides = array<i32>} : memref<1x16x2x16x256xf32, #tpu.memory_space<vmem>>, vector<1x16x1x16x256xf32>,
    %126 = tpu.concatenate %112, %120 in 1 : vector<256x128xf32>, vector<256x128xf32> -> vector<256x256xf32>
    %127 = vector.shape_cast %126 : vector<256x256xf32> to vector<16x16x256xf32>
    %c0_128 = arith.constant 0 : index
    %c0_129 = arith.constant 0 : index
    %c1_130 = arith.constant 1 : index
    %c0_131 = arith.constant 0 : index
    %c0_132 = arith.constant 0 : index
    %128 = vector.load %arg7[%c0_128, %c0_129, %c1_130, %c0_131, %c0_132] : memref<1x16x2x16x256xf32, #tpu.memory_space<vmem>>, vector<1x16x1x16x256xf32>
    %129 = vector.shape_cast %128 : vector<1x16x1x16x256xf32> to vector<16x16x256xf32>
    %130 = vector.shape_cast %127 : vector<16x16x256xf32> to vector<1x16x1x16x256xf32>
    tpu.vector_store %arg7[%c0_128, %c0_129, %c1_130, %c0_131, %c0_132], %130 {strides = array<i32>} : memref<1x16x2x16x256xf32, #tpu.memory_space<vmem>>, vector<1x16x1x16x256xf32>,
    return
  }
  func.func @transform_0(%arg0: i32, %arg1: i32) -> (i32, i32, i32, i32) {
    %c0_i32 = arith.constant 0 : i32
    %c0_i32_0 = arith.constant 0 : i32
    %c0_i32_1 = arith.constant 0 : i32
    return %arg0, %arg1, %c0_i32, %c0_i32_0 : i32, i32, i32, i32
  }
  func.func @transform_1(%arg0: i32, %arg1: i32) -> (i32, i32, i32, i32) {
    %c16_i32 = arith.constant 16 : i32
    %0 = arith.muli %arg1, %c16_i32 : i32
    %c16_i32_0 = arith.constant 16 : i32
    %1 = arith.addi %0, %c16_i32_0 : i32
    %c0_i32 = arith.constant 0 : i32
    %c0_i32_1 = arith.constant 0 : i32
    %c0_i32_2 = arith.constant 0 : i32
    return %arg0, %1, %c0_i32, %c0_i32_1 : i32, i32, i32, i32
  }
  func.func @transform_2(%arg0: i32, %arg1: i32) -> (i32, i32, i32, i32) {
    %c16_i32 = arith.constant 16 : i32
    %0 = arith.muli %arg1, %c16_i32 : i32
    %c16_i32_0 = arith.constant 16 : i32
    %1 = arith.addi %0, %c16_i32_0 : i32
    %c1_i32 = arith.constant 1 : i32
    %2 = arith.addi %1, %c1_i32 : i32
    %c0_i32 = arith.constant 0 : i32
    %c0_i32_1 = arith.constant 0 : i32
    %c0_i32_2 = arith.constant 0 : i32
    return %arg0, %2, %c0_i32, %c0_i32_1 : i32, i32, i32, i32
  }
  func.func @transform_3(%arg0: i32, %arg1: i32) -> (i32, i32) {
    %c0_i32 = arith.constant 0 : i32
    %c0_i32_0 = arith.constant 0 : i32
    %c0_i32_1 = arith.constant 0 : i32
    return %c0_i32, %c0_i32_0 : i32, i32
  }
  func.func @transform_4(%arg0: i32, %arg1: i32) -> (i32, i32) {
    %c0_i32 = arith.constant 0 : i32
    %c0_i32_0 = arith.constant 0 : i32
    %c0_i32_1 = arith.constant 0 : i32
    return %c0_i32, %c0_i32_0 : i32, i32
  }
  func.func @transform_5(%arg0: i32, %arg1: i32) -> (i32, i32, i32, i32, i32) {
    %c0_i32 = arith.constant 0 : i32
    %c0_i32_0 = arith.constant 0 : i32
    %c0_i32_1 = arith.constant 0 : i32
    %c0_i32_2 = arith.constant 0 : i32
    return %arg0, %arg1, %c0_i32, %c0_i32_0, %c0_i32_1 : i32, i32, i32, i32, i32
  }
}

</mosaic_0001>

<bundles_post_ra>
// kernel: tpu_custom_call.1
= control target key start
LH: loop header
LB: loop body
LE: loop exit
PB: predicated region body
PF: predicated region fallthrough
CT: control target
= control target key end

     0   :  { %10 = vsyncpa [#allocation4], 0  ;;  %s8414_s0 = inlined_call_operand.vmem [shape: f32[2,18,18,128], index: 0, kind: input, shape index: {}]   ;;  %s8415_s1 = inlined_call_operand.vmem [shape: f32[2,18,18,128], index: 1, kind: input, shape index: {}]   ;;  %s8416_s2 = inlined_call_operand.vmem [shape: f32[2,18,18,128], index: 2, kind: input, shape index: {}]   ;;  %s8417_s3 = inlined_call_operand.vmem [shape: f32[128,2048], index: 3, kind: input, shape index: {}]   ;;  %s8418_s4 = inlined_call_operand.vmem [shape: f32[1,128], index: 4, kind: input, shape index: {}]   ;;  %s8419_s5 = inlined_call_operand.hbm [shape: f32[2,16,2,16,256], index: 5, kind: output, shape index: {}]  }
   0x1   :  { %12 = vsyncpa [#allocation4 + $0x1], 0  ;;  %s5582_s18 = smov 0   ;;  %s5584_s19 = smov 0  }
   0x2   :  { %s5586_s20 = smov 0   ;;  %s5588_s21 = smov 0  }
   0x3   :  { %s5590_s22 = smov 0   ;;  %s5592_s23 = smov 0  }
   0x4 LB: > { %s4383_s24 = sadd.s32 4294967295, %s5546_s23   ;;  %s4384_s25 = sadd.s32 4294967294, %s5546_s23   ;;  %s5546_s23 = sphi %s5592_s23, %s18_s23   ;;  %s5542_s22 = sphi %s5590_s22, %s8666_s22   ;;  %s5538_s21 = sphi %s5588_s21, %s8665_s21   ;;  %s5534_s20 = sphi %s5586_s20, %s8664_s20   ;;  %s5530_s19 = sphi %s5584_s19, %s8663_s19   ;;  %s5526_s18 = sphi %s5582_s18, %s8662_s18  }
   0x5   : > { %s30_s26 = sadd.s32 1, %s5542_s22  ;;  %s173_s27 = sadd.s32 1, %s5534_s20 }
   0x6   : > { %p32_p0 = scmp.ge.s32.totalorder %s30_s26, 2  ;;  %p183_p1 = scmp.ne.s32.totalorder %s5534_s20, %s5530_s19 }
   0x7   : > { %p184_p2 = scmp.eq.s32.totalorder %s4383_s24, 1  ;;  %p189_p3 = scmp.ne.s32.totalorder %s5530_s19, %s5526_s18 }
   0x8   : > { %s8668_s26 = smov (%p32_p0, %s30_s26), 0  ;;  %p190_p5 = scmp.eq.s32.totalorder %s4384_s25, 1 }
   0x9   : > { %p5622_p4 = por %p184_p2, %p183_p1  ;;  %s168_s29 = ssub.s32 %s5542_s22, %s8668_s26 }
   0xa   : > { %p4387_p6 = scmp.ge.s32.totalorder %s5546_s23, 1  ;;  %p171_p7 = scmp.eq.s32.totalorder %s168_s29, 0 }
   0xb   : > { %p5629_p8 = por %p190_p5, %p189_p3  ;;  %p270_p9 = scmp.lt.s32.totalorder %s5546_s23, 3 }
   0xc   : > { %s5635_s6 = scalar_select %p171_p7, %s5534_s20, %s173_s27  }
   0xd   : > { %p271_p10 = pnand %p4387_p6, %p270_p9 }
   0xf   : > { %274 = sbr.rel (%p271_p10) target bundleno = 799 (0x31f), region = 40 }
  0x16   : > { %v641_v0 = vld [vmem:[%s8417_s3] sm:$0xff]  ;;  %v947_v2 = vld [vmem:[%s8417_s3 + $0x10] sm:$0xff]  ;;  %p336_p11 = scmp.lt.s32.totalorder %s5538_s21, 1  ;;  %v946_v5 = vld [vmem:[%s8417_s3 + $0x8] sm:$0xff]  ;;  %v8420_v7 = vmov 0.0   ;;  %s327_s7 = sand.u32 1, %s5530_s19  }
  0x17   : > { %v642_v1 = vld [vmem:[%s8417_s3 + $0x80] sm:$0xff]  ;;  %v949_v4 = vld [vmem:[%s8417_s3 + $0x90] sm:$0xff]  ;;  %v948_v6 = vld [vmem:[%s8417_s3 + $0x88] sm:$0xff]  ;;  %1042 = vmatprep.mubr.f32.mxu1 %v8420_v7  ;;  %s5549_s27 = smov [#allocation3]  }
  0x18   : > { %v4979_v3 = vpack.c.bf16 %v642_v1, %v641_v0  ;;  %v5011_v8 = vpack.c.bf16 %v949_v4, %v947_v2  ;;  %v5013_v9 = vpack.c.bf16 %v948_v6, %v946_v5  ;;  %v643_v10 = vld [vmem:[%s8417_s3 + $0x100] sm:$0xff]  ;;  %v951_v12 = vld [vmem:[%s8417_s3 + $0x110] sm:$0xff]  ;;  %v950_v15 = vld [vmem:[%s8417_s3 + $0x108] sm:$0xff]  ;;  %s337_s16 = scalar_select %p336_p11, %s5538_s21, 1 }
  0x19   : > { %v644_v11 = vld [vmem:[%s8417_s3 + $0x180] sm:$0xff]  ;;  %v953_v14 = vld [vmem:[%s8417_s3 + $0x190] sm:$0xff]  ;;  %v952_v16 = vld [vmem:[%s8417_s3 + $0x188] sm:$0xff] }
  0x1a   : > { %4980 = vmatprep.subr.bf16.mxu0 %v4979_v3  ;;  %v4983_v13 = vpack.c.bf16 %v644_v11, %v643_v10  ;;  %5012 = vmatprep.subr.bf16.mxu1 %v5011_v8  ;;  %v5015_v17 = vpack.c.bf16 %v953_v14, %v951_v12  ;;  %v645_v18 = vld [vmem:[%s8417_s3 + $0x200] sm:$0xff]  ;;  %v955_v20 = vld [vmem:[%s8417_s3 + $0x210] sm:$0xff]  ;;  %v5017_v21 = vpack.c.bf16 %v952_v16, %v950_v15  ;;  %v954_v24 = vld [vmem:[%s8417_s3 + $0x208] sm:$0xff]  ;;  %s5711_s10 = smul.u32 432, %s337_s16 }
  0x1b   : > { %4982 = vmatpush3.bf16.msra.mxu0 %v4979_v3  ;;  %v646_v19 = vld [vmem:[%s8417_s3 + $0x280] sm:$0xff]  ;;  %5014 = vmatpush1.bf16.msra.mxu1 %v5013_v9  ;;  %v957_v23 = vld [vmem:[%s8417_s3 + $0x290] sm:$0xff]  ;;  %v956_v26 = vld [vmem:[%s8417_s3 + $0x288] sm:$0xff] }
  0x1c   : > { %4984 = vmatprep.subr.bf16.mxu0 %v4983_v13  ;;  %v4987_v22 = vpack.c.bf16 %v646_v19, %v645_v18  ;;  %5016 = vmatprep.subr.bf16.mxu1 %v5015_v17  ;;  %v5019_v25 = vpack.c.bf16 %v957_v23, %v955_v20  ;;  %v647_v27 = vld [vmem:[%s8417_s3 + $0x300] sm:$0xff]  ;;  %v959_v29 = vld [vmem:[%s8417_s3 + $0x310] sm:$0xff]  ;;  %v5021_v31 = vpack.c.bf16 %v956_v26, %v954_v24  ;;  %v958_v33 = vld [vmem:[%s8417_s3 + $0x308] sm:$0xff]  ;;  %s5735_s11 = scalar_lea.vmem %s8414_s0, %s5711_s10  ;;  %s4463_s8 = sadd.s32 384, %s5711_s10 }
  0x1d   : > { %v648_v28 = vld [vmem:[%s8417_s3 + $0x380] sm:$0xff]  ;;  %v961_v30 = vld [vmem:[%s8417_s3 + $0x390] sm:$0xff]  ;;  %v960_v35 = vld [vmem:[%s8417_s3 + $0x388] sm:$0xff]  ;;  %s6725_s13 = scalar_lea.vmem %s8415_s1, %s4463_s8  ;;  %s4388_s8 = sshll.u32 %s327_s7, 10 }
  0x1e   : > { %v4991_v32 = vpack.c.bf16 %v648_v28, %v647_v27  ;;  %v5023_v34 = vpack.c.bf16 %v961_v30, %v959_v29  ;;  %v649_v36 = vld [vmem:[%s8417_s3 + $0x400] sm:$0xff]  ;;  %v963_v38 = vld [vmem:[%s8417_s3 + $0x410] sm:$0xff]  ;;  %v5025_v40 = vpack.c.bf16 %v960_v35, %v958_v33  ;;  %v962_v42 = vld [vmem:[%s8417_s3 + $0x408] sm:$0xff]  ;;  %s7327_s9 = scalar_lea.vmem [#allocation3], %s4388_s8  ;;  %s4465_s29 = sadd.s32 408, %s5711_s10 }
  0x1f   : > { %4986 = vmatpush3.bf16.msra.mxu0 %v4983_v13  ;;  %5018 = vmatpush1.bf16.msra.mxu1 %v5017_v21  ;;  %v650_v37 = vld [vmem:[%s8417_s3 + $0x480] sm:$0xff]  ;;  %v965_v39 = vld [vmem:[%s8417_s3 + $0x490] sm:$0xff]  ;;  %v964_v44 = vld [vmem:[%s8417_s3 + $0x488] sm:$0xff]  ;;  %s7689_s14 = scalar_lea.vmem %s8416_s2, %s4465_s29  ;;  %s4259_s15 = sshll.u32 %s7327_s9, 4  ;;  %s8363_s15 = int_to_ptr.vmem [resolvable:$true] %s4259_s15 }
  0x20   : > { %4988 = vmatprep.subr.bf16.mxu0 %v4987_v22  ;;  %5020 = vmatprep.subr.bf16.mxu1 %v5019_v25  ;;  %v4995_v41 = vpack.c.bf16 %v650_v37, %v649_v36  ;;  %v5027_v43 = vpack.c.bf16 %v965_v39, %v963_v38  ;;  %v651_v45 = vld [vmem:[%s8417_s3 + $0x500] sm:$0xff]  ;;  %v967_v47 = vld [vmem:[%s8417_s3 + $0x510] sm:$0xff]  ;;  %v5029_v50 = vpack.c.bf16 %v964_v44, %v962_v42  ;;  %v966_v52 = vld [vmem:[%s8417_s3 + $0x508] sm:$0xff]  ;;  %s5468_s16 = scalar_lea.vmem %s8363_s15, 16384  ;;  %s5472_s29 = sshll.u32 %s5549_s27, 4  ;;  %s5473_s29 = int_to_ptr.vmem [resolvable:$false] %s5472_s29 }
  0x21   : > { %v652_v46 = vld [vmem:[%s8417_s3 + $0x580] sm:$0xff]  ;;  %v969_v48 = vld [vmem:[%s8417_s3 + $0x590] sm:$0xff]  ;;  %v968_v54 = vld [vmem:[%s8417_s3 + $0x588] sm:$0xff]  ;;  %p5469_p12 = scmp.ne.s32.totalorder %s8363_s15, %s5468_s16  ;;  %s5474_s8 = scalar_lea.vmem %s5473_s29, 32768 }
  0x22   : > { %v378_v49 = vld [vmem:[%s5735_s11] sm:$0xff]  ;;  %v4999_v51 = vpack.c.bf16 %v652_v46, %v651_v45  ;;  %v5031_v53 = vpack.c.bf16 %v969_v48, %v967_v47  ;;  %v971_v57 = vld [vmem:[%s8417_s3 + $0x610] sm:$0xff]  ;;  %v5033_v59 = vpack.c.bf16 %v968_v54, %v966_v52  ;;  %v970_v61 = vld [vmem:[%s8417_s3 + $0x608] sm:$0xff]  ;;  %p5475_p1 = scmp.lt.s32.totalorder %s8363_s15, %s5473_s29  ;;  %p5476_p2 = scmp.lt.s32.totalorder %s5474_s8, %s5468_s16 }
  0x23   : > { %4990 = vmatpush3.bf16.msra.mxu0 %v4987_v22  ;;  %5022 = vmatpush1.bf16.msra.mxu1 %v5021_v31  ;;  %v653_v55 = vld [vmem:[%s8417_s3 + $0x600] sm:$0xff]  ;;  %v973_v58 = vld [vmem:[%s8417_s3 + $0x690] sm:$0xff]  ;;  %v972_v63 = vld [vmem:[%s8417_s3 + $0x688] sm:$0xff]  ;;  %p5470_p13 = pnand %p5469_p12, %p5622_p4 }
  0x24   : > { %4992 = vmatprep.subr.bf16.mxu0 %v4991_v32  ;;  %5024 = vmatprep.subr.bf16.mxu1 %v5023_v34  ;;  %v654_v56 = vld [vmem:[%s8417_s3 + $0x680] sm:$0xff]  ;;  %v5035_v62 = vpack.c.bf16 %v973_v58, %v971_v57  ;;  %v975_v2 = vld [vmem:[%s8417_s3 + $0x710] sm:$0xff]  ;;  %v5037_v4 = vpack.c.bf16 %v972_v63, %v970_v61  ;;  %v974_v6 = vld [vmem:[%s8417_s3 + $0x708] sm:$0xff]  ;;  %p5477_p3 = por %p5476_p2, %p5475_p1 }
  0x25   : > { %4691 = vmatprep.mubr.f32.mxu0 %v378_v49  ;;  %v5003_v60 = vpack.c.bf16 %v654_v56, %v653_v55  ;;  %v655_v0 = vld [vmem:[%s8417_s3 + $0x700] sm:$0xff]  ;;  %v977_v3 = vld [vmem:[%s8417_s3 + $0x790] sm:$0xff]  ;;  %v976_v9 = vld [vmem:[%s8417_s3 + $0x788] sm:$0xff]  ;;  %p5471_p0 = pneg %p5470_p13 }
  0x26   : > { %v656_v1 = vld [vmem:[%s8417_s3 + $0x780] sm:$0xff]  ;;  %v5039_v8 = vpack.c.bf16 %v977_v3, %v975_v2  ;;  %v1331_v10 = vld [vmem:[%s8417_s3 + $0x18] sm:$0xff]  ;;  %v5041_v14 = vpack.c.bf16 %v976_v9, %v974_v6  ;;  %v2023_v17 = vld [vmem:[%s8417_s3 + $0x30] sm:$0xff] }
  0x27   : > { %4994 = vmatpush3.bf16.msra.mxu0 %v4991_v32  ;;  %5026 = vmatpush1.bf16.msra.mxu1 %v5025_v40  ;;  %v5007_v5 = vpack.c.bf16 %v656_v1, %v655_v0  ;;  %v1332_v11 = vld [vmem:[%s8417_s3 + $0x98] sm:$0xff]  ;;  %v2027_v18 = vld [vmem:[%s8417_s3 + $0xb0] sm:$0xff]  ;;  %v379_v21 = vld [vmem:[%s5735_s11 + $0x8] sm:$0xff]  ;;  %p5478_p5 = pnand %p5477_p3, %p5471_p0 }
  0x28   : > { %4996 = vmatprep.subr.bf16.mxu0 %v4995_v41  ;;  %5028 = vmatprep.subr.bf16.mxu1 %v5027_v43  ;;  %v2024_v12 = vld [vmem:[%s8417_s3 + $0x38] sm:$0xff]  ;;  %v5043_v15 = vpack.c.bf16 %v1332_v11, %v1331_v10  ;;  %v452_v24 = vld [vmem:[%s5735_s11 + $0x1] sm:$0xff]  ;;  %v5109_v25 = vpack.c.bf16 %v2027_v18, %v2023_v17  ;;  %v2031_v28 = vld [vmem:[%s8417_s3 + $0x130] sm:$0xff] }
  0x29   : > { %v2028_v13 = vld [vmem:[%s8417_s3 + $0xb8] sm:$0xff]  ;;  %v2035_v29 = vld [vmem:[%s8417_s3 + $0x1b0] sm:$0xff]  ;;  %v5844_v33 = vld [vmem:[%s5735_s11 + $0x20] sm:$0xff] }
  0x2a   : > { %v5107_v16 = vpack.c.bf16 %v2028_v13, %v2024_v12  ;;  %v2032_v19 = vld [vmem:[%s8417_s3 + $0x138] sm:$0xff]  ;;  %v453_v36 = vld [vmem:[%s5735_s11 + $0x9] sm:$0xff]  ;;  %v5113_v38 = vpack.c.bf16 %v2035_v29, %v2031_v28  ;;  %v5916_v61 = vld [vmem:[%s5735_s11 + $0x60] sm:$0xff] }
  0x2b   : > { %4998 = vmatpush3.bf16.msra.mxu0 %v4995_v41  ;;  %5030 = vmatpush1.bf16.msra.mxu1 %v5029_v50  ;;  %v2036_v20 = vld [vmem:[%s8417_s3 + $0x1b8] sm:$0xff]  ;;  %v5855_v37 = vld [vmem:[%s5735_s11 + $0x30] sm:$0xff]  ;;  %v5885_v49 = vld [vmem:[%s5735_s11 + $0x48] sm:$0xff] }
  0x2c   : > { %5000 = vmatprep.subr.bf16.mxu0 %v4999_v51  ;;  %5032 = vmatprep.subr.bf16.mxu1 %v5031_v53  ;;  %v1333_v22 = vld [vmem:[%s8417_s3 + $0x118] sm:$0xff]  ;;  %v5111_v27 = vpack.c.bf16 %v2036_v20, %v2032_v19  ;;  %v2039_v40 = vld [vmem:[%s8417_s3 + $0x230] sm:$0xff]  ;;  %v5928_v3 = vld [vmem:[%s5735_s11 + $0x68] sm:$0xff] }
  0x2d   : > { %v1334_v23 = vld [vmem:[%s8417_s3 + $0x198] sm:$0xff]  ;;  %v2043_v41 = vld [vmem:[%s8417_s3 + $0x2b0] sm:$0xff]  ;;  %v5944_v10 = vld [vmem:[%s5735_s11 + $0x80] sm:$0xff] }
  0x2e   : > { %v5828_v26 = vld [vmem:[%s5735_s11 + $0x18] sm:$0xff]  ;;  %v5047_v30 = vpack.c.bf16 %v1334_v23, %v1333_v22  ;;  %v5117_v50 = vpack.c.bf16 %v2043_v41, %v2039_v40  ;;  %v2047_v52 = vld [vmem:[%s8417_s3 + $0x330] sm:$0xff]  ;;  %v5991_v28 = vld [vmem:[%s5735_s11 + $0xa8] sm:$0xff] }
  0x2f   : > { %5002 = vmatpush3.bf16.msra.mxu0 %v4999_v51  ;;  %5034 = vmatpush1.bf16.msra.mxu1 %v5033_v59  ;;  %v2040_v31 = vld [vmem:[%s8417_s3 + $0x238] sm:$0xff]  ;;  %v2051_v53 = vld [vmem:[%s8417_s3 + $0x3b0] sm:$0xff]  ;;  %v6022_v40 = vld [vmem:[%s5735_s11 + $0xc0] sm:$0xff] }
  0x30   : > { %5004 = vmatprep.subr.bf16.mxu0 %v5003_v60  ;;  %5036 = vmatprep.subr.bf16.mxu1 %v5035_v62  ;;  %v2044_v32 = vld [vmem:[%s8417_s3 + $0x2b8] sm:$0xff]  ;;  %v5895_v54 = vld [vmem:[%s5735_s11 + $0x50] sm:$0xff]  ;;  %v5121_v62 = vpack.c.bf16 %v2051_v53, %v2047_v52 }
  0x31   : > { %v1335_v34 = vld [vmem:[%s8417_s3 + $0x218] sm:$0xff]  ;;  %v5115_v39 = vpack.c.bf16 %v2044_v32, %v2040_v31  ;;  %v2055_v0 = vld [vmem:[%s8417_s3 + $0x430] sm:$0xff]  ;;  %v1638_v31 = vld [vmem:[%s8417_s3 + $0x28] sm:$0xff] }
  0x32   : > { %v1336_v35 = vld [vmem:[%s8417_s3 + $0x298] sm:$0xff]  ;;  %v2059_v1 = vld [vmem:[%s8417_s3 + $0x4b0] sm:$0xff]  ;;  %v1640_v32 = vld [vmem:[%s8417_s3 + $0xa8] sm:$0xff] }
  0x33   : > { %5006 = vmatpush3.bf16.msra.mxu0 %v5003_v60  ;;  %5038 = vmatpush1.bf16.msra.mxu1 %v5037_v4  ;;  %v5051_v42 = vpack.c.bf16 %v1336_v35, %v1335_v34  ;;  %v2048_v43 = vld [vmem:[%s8417_s3 + $0x338] sm:$0xff]  ;;  %v5913_v60 = vld [vmem:[%s5735_s11 + $0x21] sm:$0xff]  ;;  %v5125_v9 = vpack.c.bf16 %v2059_v1, %v2055_v0  ;;  %v2067_v17 = vld [vmem:[%s8417_s3 + $0x5b0] sm:$0xff] }
  0x34   : > { %5008 = vmatprep.subr.bf16.mxu0 %v5007_v5  ;;  %5040 = vmatprep.subr.bf16.mxu1 %v5039_v8  ;;  %v2052_v44 = vld [vmem:[%s8417_s3 + $0x3b8] sm:$0xff]  ;;  %v5972_v19 = vld [vmem:[%s5735_s11 + $0x90] sm:$0xff]  ;;  %v6073_v0 = vld [vmem:[%s5735_s11 + $0x108] sm:$0xff] }
  0x35   : > { %v5872_v45 = vld [vmem:[%s5735_s11 + $0x38] sm:$0xff]  ;;  %v5119_v51 = vpack.c.bf16 %v2052_v44, %v2048_v43  ;;  %v5994_v29 = vld [vmem:[%s5735_s11 + $0xb0] sm:$0xff]  ;;  %v5075_v43 = vpack.c.bf16 %v1640_v32, %v1638_v31  ;;  %v6028_v44 = vld [vmem:[%s5735_s11 + $0xc8] sm:$0xff] }
  0x36   : > { %v1337_v46 = vld [vmem:[%s8417_s3 + $0x318] sm:$0xff]  ;;  %v2079_v53 = vld [vmem:[%s8417_s3 + $0x730] sm:$0xff]  ;;  %v1637_v31 = vld [vmem:[%s8417_s3 + $0x20] sm:$0xff] }
  0x37   : > { %5010 = vmatpush3.bf16.msra.mxu0 %v5007_v5  ;;  %5042 = vmatpush1.bf16.msra.mxu1 %v5041_v14  ;;  %v1338_v47 = vld [vmem:[%s8417_s3 + $0x398] sm:$0xff]  ;;  %v1639_v32 = vld [vmem:[%s8417_s3 + $0xa0] sm:$0xff] }
  0x38   : > { %5044 = vmatprep.subr.bf16.mxu0 %v5043_v15  ;;  %5108 = vmatprep.subr.bf16.mxu1 %v5107_v16  ;;  %v5882_v48 = vld [vmem:[%s5735_s11 + $0x19] sm:$0xff]  ;;  %v5055_v55 = vpack.c.bf16 %v1338_v47, %v1337_v46  ;;  %v5938_v6 = vld [vmem:[%s5735_s11 + $0x31] sm:$0xff]  ;;  %v6032_v46 = vld [vmem:[%s5735_s11 + $0x61] sm:$0xff] }
  0x39   : > { %v2056_v56 = vld [vmem:[%s8417_s3 + $0x438] sm:$0xff]  ;;  %v2063_v16 = vld [vmem:[%s8417_s3 + $0x530] sm:$0xff] }
  0x3a   : > { %4692 = vmatmul.mubr.f32.vlgmr.msra.gmra.mrb[0].mxu0 %v379_v21  ;;  %1043 = vmatmul.mubr.f32.vlgmr.msra.gmra.mrb[0].mxu1 %v452_v24  ;;  %v1339_v57 = vld [vmem:[%s8417_s3 + $0x418] sm:$0xff]  ;;  %v5129_v21 = vpack.c.bf16 %v2067_v17, %v2063_v16  ;;  %v6118_v17 = vld [vmem:[%s5735_s11 + $0x150] sm:$0xff] }
  0x3b   : > { %4694 = vmatprep.mubr.f32.mxu0 %v5828_v26  ;;  %5110 = vmatpush1.bf16.msra.mxu1 %v5109_v25  ;;  %v1340_v58 = vld [vmem:[%s8417_s3 + $0x498] sm:$0xff]  ;;  %8467 = vst [vmem:[#allocation8_spill] sm:$0xff] %v6118_v17 }
  0x3c   : > { %1048 = vmatprep.mubr.f32.mxu1 %v8420_v7  ;;  %5046 = vmatpush3.bf16.msra.mxu0 %v5043_v15  ;;  %v2060_v59 = vld [vmem:[%s8417_s3 + $0x4b8] sm:$0xff]  ;;  %v5059_v2 = vpack.c.bf16 %v1340_v58, %v1339_v57  ;;  %v6060_v57 = vld [vmem:[%s5735_s11 + $0xf0] sm:$0xff] }
  0x3d   : > { %5112 = vmatprep.subr.bf16.mxu1 %v5111_v27  ;;  %5048 = vmatprep.subr.bf16.mxu0 %v5047_v30  ;;  %v5123_v63 = vpack.c.bf16 %v2060_v59, %v2056_v56  ;;  %v1341_v4 = vld [vmem:[%s8417_s3 + $0x518] sm:$0xff]  ;;  %v5988_v27 = vld [vmem:[%s5735_s11 + $0x49] sm:$0xff] }
  0x3e   : > { %4695 = vmatmul.mubr.f32.gmra.mrb[2].mxu0 %v5844_v33  ;;  %1049 = vmatmul.mubr.f32.gmra.mrb[2].mxu1 %v453_v36  ;;  %v1342_v5 = vld [vmem:[%s8417_s3 + $0x598] sm:$0xff]  ;;  %v2071_v36 = vld [vmem:[%s8417_s3 + $0x630] sm:$0xff] }
  0x3f   : > { %4697 = vmatprep.mubr.f32.mxu0 %v5855_v37  ;;  %1054 = vmatprep.mubr.f32.mxu1 %v8420_v7  ;;  %v5941_v8 = vld [vmem:[%s5735_s11 + $0x78] sm:$0xff]  ;;  %v5063_v11 = vpack.c.bf16 %v1342_v5, %v1341_v4  ;;  %v6057_v56 = vld [vmem:[%s5735_s11 + $0x69] sm:$0xff] }
  0x40   : > { %5114 = vmatpush1.bf16.msra.mxu1 %v5113_v38  ;;  %5050 = vmatpush3.bf16.msra.mxu0 %v5047_v30  ;;  %v1343_v12 = vld [vmem:[%s8417_s3 + $0x618] sm:$0xff]  ;;  %v2075_v38 = vld [vmem:[%s8417_s3 + $0x6b0] sm:$0xff] }
  0x41   : > { %5116 = vmatprep.subr.bf16.mxu1 %v5115_v39  ;;  %5052 = vmatprep.subr.bf16.mxu0 %v5051_v42  ;;  %v1344_v13 = vld [vmem:[%s8417_s3 + $0x698] sm:$0xff]  ;;  %v6085_v4 = vld [vmem:[%s5735_s11 + $0x110] sm:$0xff] }
  0x42   : > { %4698 = vmatmul.mubr.f32.gmra.mrb[4].mxu0 %v5872_v45  ;;  %1055 = vmatmul.mubr.f32.gmra.mrb[4].mxu1 %v5882_v48  ;;  %v2064_v14 = vld [vmem:[%s8417_s3 + $0x538] sm:$0xff]  ;;  %v5067_v22 = vpack.c.bf16 %v1344_v13, %v1343_v12  ;;  %v6098_v12 = vld [vmem:[%s5735_s11 + $0x128] sm:$0xff] }
  0x43   : > { %4700 = vmatprep.mubr.f32.mxu0 %v5885_v49  ;;  %1060 = vmatprep.mubr.f32.mxu1 %v8420_v7  ;;  %v2068_v15 = vld [vmem:[%s8417_s3 + $0x5b8] sm:$0xff] }
  0x44   : > { %5118 = vmatpush1.bf16.msra.mxu1 %v5117_v50  ;;  %5054 = vmatpush3.bf16.msra.mxu0 %v5051_v42  ;;  %v5969_v18 = vld [vmem:[%s5735_s11 + $0x39] sm:$0xff]  ;;  %v5127_v20 = vpack.c.bf16 %v2068_v15, %v2064_v14  ;;  %v6019_v39 = vld [vmem:[%s5735_s11 + $0x51] sm:$0xff]  ;;  %v5133_v42 = vpack.c.bf16 %v2075_v38, %v2071_v36  ;;  %v6161_v38 = vld [vmem:[%s5735_s11 + $0xc1] sm:$0xff] }
  0x45   : > { %5120 = vmatprep.subr.bf16.mxu1 %v5119_v51  ;;  %5056 = vmatprep.subr.bf16.mxu0 %v5055_v55  ;;  %v5978_v23 = vld [vmem:[%s5735_s11 + $0x98] sm:$0xff]  ;;  %v6039_v50 = vld [vmem:[%s5735_s11 + $0xe0] sm:$0xff]  ;;  %v528_v36 = vld [vmem:[%s5735_s11 + $0xa] sm:$0xff] }
  0x46   : > { %4701 = vmatmul.mubr.f32.gmra.mrb[6].mxu0 %v5895_v54  ;;  %1061 = vmatmul.mubr.f32.gmra.mrb[6].mxu1 %v5913_v60  ;;  %v1345_v24 = vld [vmem:[%s8417_s3 + $0x718] sm:$0xff]  ;;  %v6111_v15 = vld [vmem:[%s5735_s11 + $0x140] sm:$0xff] }
  0x47   : > { %4703 = vmatprep.mubr.f32.mxu0 %v5916_v61  ;;  %1066 = vmatprep.mubr.f32.mxu1 %v8420_v7  ;;  %v1346_v25 = vld [vmem:[%s8417_s3 + $0x798] sm:$0xff]  ;;  %8466 = vst [vmem:[#allocation7_spill] sm:$0xff] %v6111_v15 }
  0x48   : > { %5122 = vmatpush1.bf16.msra.mxu1 %v5121_v62  ;;  %5058 = vmatpush3.bf16.msra.mxu0 %v5055_v55  ;;  %v5071_v30 = vpack.c.bf16 %v1346_v25, %v1345_v24  ;;  %v2072_v34 = vld [vmem:[%s8417_s3 + $0x638] sm:$0xff]  ;;  %v2083_v55 = vld [vmem:[%s8417_s3 + $0x7b0] sm:$0xff] }
  0x49   : > { %5124 = vmatprep.subr.bf16.mxu1 %v5123_v63  ;;  %5060 = vmatprep.subr.bf16.mxu0 %v5059_v2  ;;  %v2076_v35 = vld [vmem:[%s8417_s3 + $0x6b8] sm:$0xff]  ;;  %v5137_v59 = vpack.c.bf16 %v2083_v55, %v2079_v53  ;;  %v6137_v24 = vld [vmem:[%s5735_s11 + $0x170] sm:$0xff]  ;;  %v1646_v53 = vld [vmem:[%s8417_s3 + $0x228] sm:$0xff] }
  0x4a   : > { %4704 = vmatmul.mubr.f32.gmra.mrb[8].mxu0 %v5928_v3  ;;  %1067 = vmatmul.mubr.f32.gmra.mrb[8].mxu1 %v5938_v6  ;;  %v5131_v41 = vpack.c.bf16 %v2076_v35, %v2072_v34  ;;  %v6035_v47 = vld [vmem:[%s5735_s11 + $0xd8] sm:$0xff]  ;;  %8470 = vst [vmem:[#allocation11_spill] sm:$0xff] %v6137_v24  ;;  %v1642_v34 = vld [vmem:[%s8417_s3 + $0x128] sm:$0xff] }
  0x4b   : > { %4706 = vmatprep.mubr.f32.mxu0 %v5941_v8  ;;  %1072 = vmatprep.mubr.f32.mxu1 %v8420_v7  ;;  %v2080_v51 = vld [vmem:[%s8417_s3 + $0x738] sm:$0xff]  ;;  %v1644_v35 = vld [vmem:[%s8417_s3 + $0x1a8] sm:$0xff] }
  0x4c   : > { %5126 = vmatpush1.bf16.msra.mxu1 %v5125_v9  ;;  %5062 = vmatpush3.bf16.msra.mxu0 %v5059_v2  ;;  %v2084_v52 = vld [vmem:[%s8417_s3 + $0x7b8] sm:$0xff]  ;;  %v6089_v9 = vld [vmem:[%s5735_s11 + $0x81] sm:$0xff] }
  0x4d   : > { %5064 = vmatprep.subr.bf16.mxu0 %v5063_v11  ;;  %5128 = vmatprep.subr.bf16.mxu1 %v5127_v20  ;;  %v5135_v58 = vpack.c.bf16 %v2084_v52, %v2080_v51  ;;  %v6066_v62 = vld [vmem:[%s5735_s11 + $0xf8] sm:$0xff]  ;;  %v1641_v51 = vld [vmem:[%s8417_s3 + $0x120] sm:$0xff]  ;;  %v1648_v55 = vld [vmem:[%s8417_s3 + $0x2a8] sm:$0xff] }
  0x4e   : > { %4707 = vmatmul.mubr.f32.gmra.mrb[10].mxu0 %v5944_v10  ;;  %1073 = vmatmul.mubr.f32.gmra.mrb[10].mxu1 %v5969_v18  ;;  %v6070_v63 = vld [vmem:[%s5735_s11 + $0x79] sm:$0xff]  ;;  %v6102_v13 = vld [vmem:[%s5735_s11 + $0x91] sm:$0xff] }
  0x4f   : > { %4709 = vmatprep.mubr.f32.mxu0 %v5972_v19  ;;  %1078 = vmatprep.mubr.f32.mxu1 %v8420_v7  ;;  %v2763_v1 = vld [vmem:[%s8417_s3 + $0x58] sm:$0xff]  ;;  %v1643_v52 = vld [vmem:[%s8417_s3 + $0x1a0] sm:$0xff] }
  0x50   : > { %5066 = vmatpush3.bf16.msra.mxu0 %v5063_v11  ;;  %5130 = vmatpush1.bf16.msra.mxu1 %v5129_v21  ;;  %v2765_v2 = vld [vmem:[%s8417_s3 + $0xd8] sm:$0xff]  ;;  %v6092_v11 = vld [vmem:[%s5735_s11 + $0x120] sm:$0xff]  ;;  %v6128_v21 = vld [vmem:[%s5735_s11 + $0xa9] sm:$0xff] }
  0x51   : > { %5068 = vmatprep.subr.bf16.mxu0 %v5067_v22  ;;  %5132 = vmatprep.subr.bf16.mxu1 %v5131_v41  ;;  %v5171_v5 = vpack.c.bf16 %v2765_v2, %v2763_v1  ;;  %v6105_v14 = vld [vmem:[%s5735_s11 + $0x138] sm:$0xff]  ;;  %v5081_v2 = vpack.c.bf16 %v1643_v52, %v1641_v51  ;;  %v1649_v51 = vld [vmem:[%s8417_s3 + $0x320] sm:$0xff] }
  0x52   : > { %4710 = vmatmul.mubr.f32.gmra.mrb[12].mxu0 %v5978_v23  ;;  %1079 = vmatmul.mubr.f32.gmra.mrb[12].mxu1 %v5988_v27  ;;  %8465 = vst [vmem:[#allocation6_spill] sm:$0xff] %v6105_v14  ;;  %v6115_v16 = vld [vmem:[%s5735_s11 + $0x99] sm:$0xff]  ;;  %v6141_v25 = vld [vmem:[%s5735_s11 + $0xb1] sm:$0xff] }
  0x53   : > { %4712 = vmatprep.mubr.f32.mxu0 %v5991_v28  ;;  %1084 = vmatprep.mubr.f32.mxu1 %v8420_v7  ;;  %v6124_v20 = vld [vmem:[%s5735_s11 + $0x158] sm:$0xff]  ;;  %v1651_v52 = vld [vmem:[%s8417_s3 + $0x3a0] sm:$0xff] }
  0x54   : > { %5070 = vmatpush3.bf16.msra.mxu0 %v5067_v22  ;;  %5134 = vmatpush1.bf16.msra.mxu1 %v5133_v42  ;;  %8468 = vst [vmem:[#allocation9_spill] sm:$0xff] %v6124_v20  ;;  %v6131_v22 = vld [vmem:[%s5735_s11 + $0x168] sm:$0xff]  ;;  %v529_v41 = vld [vmem:[%s5735_s11 + $0x1a] sm:$0xff]  ;;  %v5077_v42 = vpack.c.bf16 %v1639_v32, %v1637_v31  ;;  %v531_v1 = vld [vmem:[%s5735_s11 + $0x32] sm:$0xff] }
  0x55   : > { %5072 = vmatprep.subr.bf16.mxu0 %v5071_v30  ;;  %5136 = vmatprep.subr.bf16.mxu1 %v5135_v58  ;;  %8469 = vst [vmem:[#allocation10_spill] sm:$0xff] %v6131_v22  ;;  %v530_v58 = vld [vmem:[%s5735_s11 + $0x22] sm:$0xff] }
  0x56   : > { %4713 = vmatmul.mubr.f32.gmra.mrb[14].mxu0 %v5994_v29  ;;  %1085 = vmatmul.mubr.f32.gmra.mrb[14].mxu1 %v6019_v39  ;;  %v1647_v31 = vld [vmem:[%s8417_s3 + $0x2a0] sm:$0xff]  ;;  %v1650_v32 = vld [vmem:[%s8417_s3 + $0x328] sm:$0xff] }
  0x57   : > { %4715 = vmatprep.mubr.f32.mxu0 %v6022_v40  ;;  %1090 = vmatprep.mubr.f32.mxu1 %v8420_v7 }
  0x58   : > { %5074 = vmatpush3.bf16.msra.mxu0 %v5071_v30  ;;  %5138 = vmatpush1.bf16.msra.mxu1 %v5137_v59  ;;  %v527_v30 = vld [vmem:[%s5735_s11 + $0x2] sm:$0xff] }
  0x59   : > { %5076 = vmatprep.subr.bf16.mxu0 %v5075_v43  ;;  %5172 = vmatprep.subr.bf16.mxu1 %v5171_v5  ;;  %v5079_v43 = vpack.c.bf16 %v1644_v35, %v1642_v34  ;;  %v6180_v59 = vld [vmem:[%s5735_s11 + $0xc9] sm:$0xff]  ;;  %v5083_v5 = vpack.c.bf16 %v1648_v55, %v1646_v53  ;;  %v532_v35 = vld [vmem:[%s5735_s11 + $0x3a] sm:$0xff] }
  0x5a   : > { %4716 = vmatmul.mubr.f32.gmra.mrb[16].mxu0 %v6028_v44  ;;  %1091 = vmatmul.mubr.f32.gmra.mrb[16].mxu1 %v6032_v46  ;;  %v1652_v34 = vld [vmem:[%s8417_s3 + $0x3a8] sm:$0xff] }
  0x5b   : > { %4718 = vmatprep.mubr.f32.mxu0 %v6035_v47  ;;  %1096 = vmatprep.mubr.f32.mxu1 %v8420_v7  ;;  %v1654_v53 = vld [vmem:[%s8417_s3 + $0x428] sm:$0xff] }
  0x5c   : > { %v1656_v55 = vld [vmem:[%s8417_s3 + $0x4a8] sm:$0xff] }
  0x5e   : > { %4719 = vmatmul.mubr.f32.gmra.mrb[18].mxu0 %v6039_v50  ;;  %1097 = vmatmul.mubr.f32.gmra.mrb[18].mxu1 %v6057_v56 }
  0x5f   : > { %4721 = vmatprep.mubr.f32.mxu0 %v6060_v57  ;;  %1102 = vmatprep.mubr.f32.mxu1 %v8420_v7 }
  0x62   : > { %4722 = vmatmul.mubr.f32.gmra.mrb[20].mxu0 %v6066_v62  ;;  %1103 = vmatmul.mubr.f32.gmra.mrb[20].mxu1 %v6070_v63 }
  0x63   : > { %4724 = vmatprep.mubr.f32.mxu0 %v6073_v0  ;;  %1108 = vmatprep.mubr.f32.mxu1 %v8420_v7 }
  0x66   : > { %4725 = vmatmul.mubr.f32.gmra.mrb[22].mxu0 %v6085_v4  ;;  %1109 = vmatmul.mubr.f32.gmra.mrb[22].mxu1 %v6089_v9 }
  0x67   : > { %4727 = vmatprep.mubr.f32.mxu0 %v6092_v11  ;;  %1114 = vmatprep.mubr.f32.mxu1 %v8420_v7 }
  0x6a   : > { %4728 = vmatmul.mubr.f32.gmra.mrb[24].mxu0 %v6098_v12  ;;  %1115 = vmatmul.mubr.f32.gmra.mrb[24].mxu1 %v6102_v13 }
  0x6b   : > { %4730 = vmatprep.mubr.f32.mxu0 %v6105_v14  ;;  %1120 = vmatprep.mubr.f32.mxu1 %v8420_v7 }
  0x6e   : > { %4731 = vmatmul.mubr.f32.gmra.mrb[26].mxu0 %v6111_v15  ;;  %1121 = vmatmul.mubr.f32.gmra.mrb[26].mxu1 %v6115_v16  ;;  %v2766_v15 = vld [vmem:[%s8417_s3 + $0x150] sm:$0xff] }
  0x6f   : > { %4733 = vmatprep.mubr.f32.mxu0 %v6118_v17  ;;  %1126 = vmatprep.mubr.f32.mxu1 %v8420_v7 }
  0x72   : > { %4734 = vmatmul.mubr.f32.gmra.mrb[28].mxu0 %v6124_v20  ;;  %1127 = vmatmul.mubr.f32.gmra.mrb[28].mxu1 %v6128_v21  ;;  %v2038_v20 = vld [vmem:[%s8417_s3 + $0x1c8] sm:$0xff] }
  0x73   : > { %4736 = vmatprep.mubr.f32.mxu0 %v6131_v22  ;;  %1132 = vmatprep.mubr.f32.mxu1 %v8420_v7  ;;  %v545_v22 = vld [vmem:[%s5735_s11 + $0xda] sm:$0xff] }
  0x76   : > { %4737 = vmatmul.mubr.f32.gmra.mrb[30].mxu0 %v6137_v24  ;;  %1133 = vmatmul.mubr.f32.gmra.mrb[30].mxu1 %v6141_v25  ;;  %v544_v24 = vld [vmem:[%s5735_s11 + $0xca] sm:$0xff] }
  0x77   : > { %4771 = vmatprep.mubr.f32.mxu0 %v527_v30  ;;  %1138 = vmatprep.mubr.f32.mxu1 %v8420_v7  ;;  %v1645_v30 = vld [vmem:[%s8417_s3 + $0x220] sm:$0xff] }
  0x7a   : > { %4772 = vmatmul.mubr.f32.vlgmr.msra.gmra.mrb[32].mxu0 %v528_v36  ;;  %1139 = vmatmul.mubr.f32.gmra.mrb[32].mxu1 %v6161_v38  ;;  %v6199_v36 = vld [vmem:[%s5735_s11 + $0xd9] sm:$0xff] }
  0x7b   : > { %4774 = vmatprep.mubr.f32.mxu0 %v529_v41  ;;  %1144 = vmatprep.mubr.f32.mxu1 %v8420_v7  ;;  %v533_v41 = vld [vmem:[%s5735_s11 + $0x4a] sm:$0xff] }
  0x7c   : > { %5078 = vmatpush1.bf16.msra.mxu0 %v5077_v42  ;;  %v5085_v42 = vpack.c.bf16 %v1647_v31, %v1645_v30  ;;  %v5091_v30 = vpack.c.bf16 %v1656_v55, %v1654_v53  ;;  %v1653_v31 = vld [vmem:[%s8417_s3 + $0x420] sm:$0xff] }
  0x7d   : > { %5080 = vmatprep.subr.bf16.mxu0 %v5079_v43  ;;  %v5087_v43 = vpack.c.bf16 %v1652_v34, %v1650_v32  ;;  %v1655_v32 = vld [vmem:[%s8417_s3 + $0x4a0] sm:$0xff]  ;;  %v1658_v34 = vld [vmem:[%s8417_s3 + $0x528] sm:$0xff] }
  0x7e   : > { %4775 = vmatmul.mubr.f32.gmra.mrb[34].mxu0 %v530_v58  ;;  %1145 = vmatmul.mubr.f32.gmra.mrb[34].mxu1 %v6180_v59  ;;  %v534_v58 = vld [vmem:[%s5735_s11 + $0x52] sm:$0xff]  ;;  %v1657_v53 = vld [vmem:[%s8417_s3 + $0x520] sm:$0xff] }
  0x7f   : > { %4777 = vmatprep.mubr.f32.mxu0 %v531_v1  ;;  %1150 = vmatprep.mubr.f32.mxu1 %v8420_v7  ;;  %v6218_v1 = vld [vmem:[%s5735_s11 + $0xe1] sm:$0xff] }
  0x80   : > { %5082 = vmatpush1.bf16.msra.mxu0 %v5081_v2  ;;  %v535_v2 = vld [vmem:[%s5735_s11 + $0x62] sm:$0xff] }
  0x81   : > { %5084 = vmatprep.subr.bf16.mxu0 %v5083_v5  ;;  %v5089_v5 = vpack.c.bf16 %v1651_v52, %v1649_v51  ;;  %v5093_v51 = vpack.c.bf16 %v1655_v32, %v1653_v31  ;;  %v1659_v55 = vld [vmem:[%s8417_s3 + $0x5a0] sm:$0xff]  ;;  %v539_v31 = vld [vmem:[%s5735_s11 + $0x92] sm:$0xff] }
  0x82   : > { %4778 = vmatmul.mubr.f32.gmra.mrb[36].mxu0 %v532_v35  ;;  %1151 = vmatmul.mubr.f32.gmra.mrb[36].mxu1 %v6199_v36  ;;  %v1660_v35 = vld [vmem:[%s8417_s3 + $0x5a8] sm:$0xff]  ;;  %v5097_v32 = vpack.c.bf16 %v1659_v55, %v1657_v53 }
  0x83   : > { %4780 = vmatprep.mubr.f32.mxu0 %v533_v41  ;;  %1156 = vmatprep.mubr.f32.mxu1 %v8420_v7  ;;  %v536_v41 = vld [vmem:[%s5735_s11 + $0x6a] sm:$0xff]  ;;  %v5095_v52 = vpack.c.bf16 %v1660_v35, %v1658_v34  ;;  %v1661_v35 = vld [vmem:[%s8417_s3 + $0x620] sm:$0xff] }
  0x84   : > { %5086 = vmatpush1.bf16.msra.mxu0 %v5085_v42  ;;  %v6237_v42 = vld [vmem:[%s5735_s11 + $0xf1] sm:$0xff]  ;;  %v6275_v53 = vld [vmem:[%s5735_s11 + $0x109] sm:$0xff] }
  0x85   : > { %5088 = vmatprep.subr.bf16.mxu0 %v5087_v43  ;;  %v537_v43 = vld [vmem:[%s5735_s11 + $0x7a] sm:$0xff]  ;;  %v541_v55 = vld [vmem:[%s5735_s11 + $0xaa] sm:$0xff] }
  0x86   : > { %4781 = vmatmul.mubr.f32.gmra.mrb[38].mxu0 %v534_v58  ;;  %1157 = vmatmul.mubr.f32.gmra.mrb[38].mxu1 %v6218_v1  ;;  %v1662_v58 = vld [vmem:[%s8417_s3 + $0x628] sm:$0xff] }
  0x87   : > { %4783 = vmatprep.mubr.f32.mxu0 %v535_v2  ;;  %1162 = vmatprep.mubr.f32.mxu1 %v8420_v7  ;;  %v1664_v2 = vld [vmem:[%s8417_s3 + $0x6a8] sm:$0xff] }
  0x88   : > { %5090 = vmatpush1.bf16.msra.mxu0 %v5089_v5  ;;  %v538_v5 = vld [vmem:[%s5735_s11 + $0x82] sm:$0xff]  ;;  %v5099_v34 = vpack.c.bf16 %v1664_v2, %v1662_v58 }
  0x89   : > { %5092 = vmatprep.subr.bf16.mxu0 %v5091_v30  ;;  %v6256_v30 = vld [vmem:[%s5735_s11 + $0xf9] sm:$0xff] }
  0x8a   : > { %4784 = vmatmul.mubr.f32.gmra.mrb[40].mxu0 %v536_v41  ;;  %1163 = vmatmul.mubr.f32.gmra.mrb[40].mxu1 %v6237_v42  ;;  %v1663_v41 = vld [vmem:[%s8417_s3 + $0x6a0] sm:$0xff] }
  0x8b   : > { %4786 = vmatprep.mubr.f32.mxu0 %v537_v43  ;;  %1168 = vmatprep.mubr.f32.mxu1 %v8420_v7  ;;  %v1666_v43 = vld [vmem:[%s8417_s3 + $0x728] sm:$0xff]  ;;  %v5101_v58 = vpack.c.bf16 %v1663_v41, %v1661_v35  ;;  %v8471_v35 = vmov 0.0   ;;  %v6294_v41 = vld [vmem:[%s5735_s11 + $0x111] sm:$0xff] }
  0x8c   : > { %5094 = vmatpush1.bf16.msra.mxu0 %v5093_v51  ;;  %v1668_v51 = vld [vmem:[%s8417_s3 + $0x7a8] sm:$0xff] }
  0x8d   : > { %5096 = vmatprep.subr.bf16.mxu0 %v5095_v52  ;;  %v540_v52 = vld [vmem:[%s5735_s11 + $0x9a] sm:$0xff]  ;;  %v5103_v2 = vpack.c.bf16 %v1668_v51, %v1666_v43  ;;  %v543_v43 = vld [vmem:[%s5735_s11 + $0xc2] sm:$0xff] }
  0x8e   : > { %4787 = vmatmul.mubr.f32.gmra.mrb[42].mxu0 %v538_v5  ;;  %1169 = vmatmul.mubr.f32.gmra.mrb[42].mxu1 %v6256_v30  ;;  %v1665_v5 = vld [vmem:[%s8417_s3 + $0x720] sm:$0xff] }
  0x8f   : > { %4789 = vmatprep.mubr.f32.mxu0 %v539_v31  ;;  %1174 = vmatprep.mubr.f32.mxu1 %v8420_v7  ;;  %v1667_v31 = vld [vmem:[%s8417_s3 + $0x7a0] sm:$0xff]  ;;  %v2026_v7 = vld [vmem:[%s8417_s3 + $0x48] sm:$0xff] }
  0x90   : > { %5098 = vmatpush1.bf16.msra.mxu0 %v5097_v32  ;;  %v2030_v32 = vld [vmem:[%s8417_s3 + $0xc8] sm:$0xff]  ;;  %v5105_v51 = vpack.c.bf16 %v1667_v31, %v1665_v5  ;;  %v548_v5 = vld [vmem:[%s5735_s11 + $0xfa] sm:$0xff]  ;;  %v550_v31 = vld [vmem:[%s5735_s11 + $0x112] sm:$0xff] }
  0x91   : > { %5100 = vmatprep.subr.bf16.mxu0 %v5099_v34  ;;  %v542_v34 = vld [vmem:[%s5735_s11 + $0xb2] sm:$0xff] }
  0x92   : > { %4790 = vmatmul.mubr.f32.gmra.mrb[44].mxu0 %v540_v52  ;;  %1175 = vmatmul.mubr.f32.gmra.mrb[44].mxu1 %v6275_v53  ;;  %v5139_v52 = vpack.c.bf16 %v2030_v32, %v2026_v7  ;;  %v546_v7 = vld [vmem:[%s5735_s11 + $0xe2] sm:$0xff] }
  0x93   : > { %4792 = vmatprep.mubr.f32.mxu0 %v541_v55  ;;  %1180 = vmatprep.mubr.f32.mxu1 %v8471_v35  ;;  %v6301_v55 = vld [vmem:[%s5735_s11 + $0x121] sm:$0xff] }
  0x94   : > { %5102 = vmatpush1.bf16.msra.mxu0 %v5101_v58  ;;  %v6308_v58 = vld [vmem:[%s5735_s11 + $0x129] sm:$0xff]  ;;  %v6322_v32 = vld [vmem:[%s5735_s11 + $0x141] sm:$0xff] }
  0x95   : > { %5104 = vmatprep.subr.bf16.mxu0 %v5103_v2  ;;  %8472 = vst [vmem:[#allocation12_spill] sm:$0xff] %v6308_v58  ;;  %v547_v2 = vld [vmem:[%s5735_s11 + $0xf2] sm:$0xff]  ;;  %8474 = vst [vmem:[#allocation14_spill] sm:$0xff] %v6322_v32 }
  0x96   : > { %4793 = vmatmul.mubr.f32.gmra.mrb[46].mxu0 %v542_v34  ;;  %1181 = vmatmul.mubr.f32.gmra.mrb[46].mxu1 %v6294_v41  ;;  %v551_v34 = vld [vmem:[%s5735_s11 + $0x122] sm:$0xff] }
  0x97   : > { %4795 = vmatprep.mubr.f32.mxu0 %v543_v43  ;;  %1186 = vmatprep.mubr.f32.mxu1 %v8471_v35  ;;  %v552_v43 = vld [vmem:[%s5735_s11 + $0x12a] sm:$0xff] }
  0x98   : > { %5106 = vmatpush1.bf16.msra.mxu0 %v5105_v51  ;;  %v6329_v51 = vld [vmem:[%s5735_s11 + $0x151] sm:$0xff] }
  0x99   : > { %5140 = vmatprep.subr.bf16.mxu0 %v5139_v52  ;;  %8475 = vst [vmem:[#allocation15_spill] sm:$0xff] %v6329_v51  ;;  %v553_v52 = vld [vmem:[%s5735_s11 + $0x13a] sm:$0xff] }
  0x9a   : > { %4796 = vmatmul.mubr.f32.gmra.mrb[48].mxu0 %v544_v24  ;;  %1187 = vmatmul.mubr.f32.gmra.mrb[48].mxu1 %v6301_v55  ;;  %v6315_v24 = vld [vmem:[%s5735_s11 + $0x139] sm:$0xff] }
  0x9b   : > { %4798 = vmatprep.mubr.f32.mxu0 %v545_v22  ;;  %1192 = vmatprep.mubr.f32.mxu1 %v8471_v35  ;;  %8473 = vst [vmem:[#allocation13_spill] sm:$0xff] %v6315_v24  ;;  %v549_v22 = vld [vmem:[%s5735_s11 + $0x10a] sm:$0xff] }
  0x9e   : > { %4799 = vmatmul.mubr.f32.gmra.mrb[50].mxu0 %v546_v7  ;;  %1193 = vmatmul.mubr.f32.gmra.mrb[50].mxu1 %v6308_v58  ;;  %v554_v7 = vld [vmem:[%s5735_s11 + $0x142] sm:$0xff] }
  0x9f   : > { %4801 = vmatprep.mubr.f32.mxu0 %v547_v2  ;;  %1198 = vmatprep.mubr.f32.mxu1 %v8471_v35  ;;  %v6336_v2 = vld [vmem:[%s5735_s11 + $0x159] sm:$0xff] }
  0xa0   : > { %8476 = vst [vmem:[#allocation16_spill] sm:$0xff] %v6336_v2  ;;  %v2041_v58 = vld [vmem:[%s8417_s3 + $0x240] sm:$0xff] }
  0xa2   : > { %4802 = vmatmul.mubr.f32.gmra.mrb[52].mxu0 %v548_v5  ;;  %1199 = vmatmul.mubr.f32.gmra.mrb[52].mxu1 %v6315_v24  ;;  %v555_v5 = vld [vmem:[%s5735_s11 + $0x152] sm:$0xff]  ;;  %v2033_v24 = vld [vmem:[%s8417_s3 + $0x140] sm:$0xff] }
  0xa3   : > { %4804 = vmatprep.mubr.f32.mxu0 %v549_v22  ;;  %1204 = vmatprep.mubr.f32.mxu1 %v8471_v35  ;;  %v556_v22 = vld [vmem:[%s5735_s11 + $0x15a] sm:$0xff] }
  0xa6   : > { %4805 = vmatmul.mubr.f32.gmra.mrb[54].mxu0 %v550_v31  ;;  %1205 = vmatmul.mubr.f32.gmra.mrb[54].mxu1 %v6322_v32  ;;  %v6343_v31 = vld [vmem:[%s5735_s11 + $0x169] sm:$0xff] }
  0xa7   : > { %4807 = vmatprep.mubr.f32.mxu0 %v551_v34  ;;  %1210 = vmatprep.mubr.f32.mxu1 %v8471_v35  ;;  %8477 = vst [vmem:[#allocation17_spill] sm:$0xff] %v6343_v31  ;;  %v557_v34 = vld [vmem:[%s5735_s11 + $0x16a] sm:$0xff] }
  0xaa   : > { %4808 = vmatmul.mubr.f32.gmra.mrb[56].mxu0 %v552_v43  ;;  %1211 = vmatmul.mubr.f32.gmra.mrb[56].mxu1 %v6329_v51  ;;  %v558_v43 = vld [vmem:[%s5735_s11 + $0x172] sm:$0xff] }
  0xab   : > { %4810 = vmatprep.mubr.f32.mxu0 %v553_v52  ;;  %1216 = vmatprep.mubr.f32.mxu1 %v8471_v35  ;;  %v6350_v52 = vld [vmem:[%s5735_s11 + $0x171] sm:$0xff] }
  0xac   : > { %8478 = vst [vmem:[#allocation18_spill] sm:$0xff] %v6350_v52 }
  0xae   : > { %4811 = vmatmul.mubr.f32.gmra.mrb[58].mxu0 %v554_v7  ;;  %1217 = vmatmul.mubr.f32.gmra.mrb[58].mxu1 %v6336_v2  ;;  %v2762_v7 = vld [vmem:[%s8417_s3 + $0x50] sm:$0xff]  ;;  %v2769_v2 = vld [vmem:[%s8417_s3 + $0x1d8] sm:$0xff] }
  0xaf   : > { %4813 = vmatprep.mubr.f32.mxu0 %v555_v5  ;;  %1222 = vmatprep.mubr.f32.mxu1 %v8471_v35  ;;  %v2764_v5 = vld [vmem:[%s8417_s3 + $0xd0] sm:$0xff] }
  0xb0   : > { %v5173_v51 = vpack.c.bf16 %v2764_v5, %v2762_v7  ;;  %v2037_v7 = vld [vmem:[%s8417_s3 + $0x1c0] sm:$0xff] }
  0xb2   : > { %4814 = vmatmul.mubr.f32.gmra.mrb[60].mxu0 %v556_v22  ;;  %1223 = vmatmul.mubr.f32.gmra.mrb[60].mxu1 %v6343_v31  ;;  %v2025_v22 = vld [vmem:[%s8417_s3 + $0x40] sm:$0xff]  ;;  %v2767_v31 = vld [vmem:[%s8417_s3 + $0x158] sm:$0xff] }
  0xb3   : > { %4816 = vmatprep.mubr.f32.mxu0 %v557_v34  ;;  %1228 = vmatprep.mubr.f32.mxu1 %v8471_v35  ;;  %v2029_v34 = vld [vmem:[%s8417_s3 + $0xc0] sm:$0xff]  ;;  %v5175_v32 = vpack.c.bf16 %v2769_v2, %v2767_v31  ;;  %v2771_v2 = vld [vmem:[%s8417_s3 + $0x258] sm:$0xff] }
  0xb4   : > { %v5141_v17 = vpack.c.bf16 %v2029_v34, %v2025_v22  ;;  %v2773_v31 = vld [vmem:[%s8417_s3 + $0x2d8] sm:$0xff]  ;;  %v5145_v22 = vpack.c.bf16 %v2037_v7, %v2033_v24 }
  0xb5   : > { %v5179_v34 = vpack.c.bf16 %v2773_v31, %v2771_v2  ;;  %v2775_v24 = vld [vmem:[%s8417_s3 + $0x358] sm:$0xff]  ;;  %v2776_v2 = vld [vmem:[%s8417_s3 + $0x3d0] sm:$0xff]  ;;  %v2049_v31 = vld [vmem:[%s8417_s3 + $0x340] sm:$0xff] }
  0xb6   : > { %4817 = vmatmul.mubr.f32.gmra.mrb[62].mxu0 %v558_v43  ;;  %1229 = vmatmul.mubr.f32.gmra.mrb[62].mxu1 %v6350_v52  ;;  %v2034_v43 = vld [vmem:[%s8417_s3 + $0x148] sm:$0xff]  ;;  %v2768_v52 = vld [vmem:[%s8417_s3 + $0x1d0] sm:$0xff] }
  0xb7   : > { %1733 = vmatprep.mubr.f32.mxu0 %v8471_v35  ;;  %2151 = vmatprep.mubr.f32.mxu1 %v8471_v35  ;;  %v5143_v14 = vpack.c.bf16 %v2038_v20, %v2034_v43  ;;  %v2046_v20 = vld [vmem:[%s8417_s3 + $0x2c8] sm:$0xff]  ;;  %v5177_v5 = vpack.c.bf16 %v2768_v52, %v2766_v15  ;;  %v2772_v43 = vld [vmem:[%s8417_s3 + $0x2d0] sm:$0xff] }
  0xba   : > { %1734 = vmatmul.mubr.f32.vlgmr.msra.gmra.mrb[64].mxu0 %v5828_v26  ;;  %2152 = vmatmul.mubr.f32.vlgmr.msra.gmra.mrb[64].mxu1 %v5882_v48  ;;  %v2042_v26 = vld [vmem:[%s8417_s3 + $0x248] sm:$0xff]  ;;  %v2770_v48 = vld [vmem:[%s8417_s3 + $0x250] sm:$0xff] }
  0xbb   : > { %1739 = vmatprep.mubr.f32.mxu0 %v8471_v35  ;;  %5174 = vmatpush1.bf16.msra.mxu1 %v5173_v51  ;;  %v5147_v15 = vpack.c.bf16 %v2046_v20, %v2042_v26  ;;  %v5181_v51 = vpack.c.bf16 %v2772_v43, %v2770_v48  ;;  %v2779_v20 = vld [vmem:[%s8417_s3 + $0x458] sm:$0xff] }
  0xbc   : > { %2157 = vmatprep.mubr.f32.mxu1 %v8471_v35  ;;  %5142 = vmatpush1.bf16.msra.mxu0 %v5141_v17  ;;  %v2045_v17 = vld [vmem:[%s8417_s3 + $0x2c0] sm:$0xff] }
  0xbd   : > { %5176 = vmatprep.subr.bf16.mxu1 %v5175_v32  ;;  %5144 = vmatprep.subr.bf16.mxu0 %v5143_v14  ;;  %v2777_v32 = vld [vmem:[%s8417_s3 + $0x3d8] sm:$0xff]  ;;  %v2054_v14 = vld [vmem:[%s8417_s3 + $0x3c8] sm:$0xff]  ;;  %v5149_v52 = vpack.c.bf16 %v2045_v17, %v2041_v58  ;;  %v2053_v58 = vld [vmem:[%s8417_s3 + $0x3c0] sm:$0xff] }
  0xbe   : > { %1740 = vmatmul.mubr.f32.gmra.mrb[66].mxu0 %v5844_v33  ;;  %2158 = vmatmul.mubr.f32.gmra.mrb[66].mxu1 %v5913_v60  ;;  %v2050_v33 = vld [vmem:[%s8417_s3 + $0x348] sm:$0xff]  ;;  %v5183_v7 = vpack.c.bf16 %v2777_v32, %v2775_v24  ;;  %v2774_v60 = vld [vmem:[%s8417_s3 + $0x350] sm:$0xff]  ;;  %v5153_v48 = vpack.c.bf16 %v2053_v58, %v2049_v31  ;;  %v2057_v17 = vld [vmem:[%s8417_s3 + $0x440] sm:$0xff] }
  0xbf   : > { %1745 = vmatprep.mubr.f32.mxu0 %v8471_v35  ;;  %2163 = vmatprep.mubr.f32.mxu1 %v8471_v35  ;;  %v5151_v26 = vpack.c.bf16 %v2054_v14, %v2050_v33  ;;  %v2061_v32 = vld [vmem:[%s8417_s3 + $0x4c0] sm:$0xff]  ;;  %v2783_v33 = vld [vmem:[%s8417_s3 + $0x558] sm:$0xff] }
  0xc0   : > { %5178 = vmatpush1.bf16.msra.mxu1 %v5177_v5  ;;  %5146 = vmatpush1.bf16.msra.mxu0 %v5145_v22  ;;  %v2781_v5 = vld [vmem:[%s8417_s3 + $0x4d8] sm:$0xff]  ;;  %v2062_v22 = vld [vmem:[%s8417_s3 + $0x4c8] sm:$0xff]  ;;  %v2065_v31 = vld [vmem:[%s8417_s3 + $0x540] sm:$0xff] }
  0xc1   : > { %5180 = vmatprep.subr.bf16.mxu1 %v5179_v34  ;;  %5148 = vmatprep.subr.bf16.mxu0 %v5147_v15  ;;  %v5185_v34 = vpack.c.bf16 %v2776_v2, %v2774_v60  ;;  %v5187_v43 = vpack.c.bf16 %v2781_v5, %v2779_v20  ;;  %v2780_v15 = vld [vmem:[%s8417_s3 + $0x4d0] sm:$0xff]  ;;  %v2785_v14 = vld [vmem:[%s8417_s3 + $0x5d8] sm:$0xff]  ;;  %v2069_v58 = vld [vmem:[%s8417_s3 + $0x5c0] sm:$0xff] }
  0xc2   : > { %1746 = vmatmul.mubr.f32.gmra.mrb[68].mxu0 %v5855_v37  ;;  %2164 = vmatmul.mubr.f32.gmra.mrb[68].mxu1 %v5938_v6  ;;  %v2058_v37 = vld [vmem:[%s8417_s3 + $0x448] sm:$0xff]  ;;  %v2778_v6 = vld [vmem:[%s8417_s3 + $0x450] sm:$0xff]  ;;  %v5191_v60 = vpack.c.bf16 %v2785_v14, %v2783_v33  ;;  %v2787_v20 = vld [vmem:[%s8417_s3 + $0x658] sm:$0xff] }
  0xc3   : > { %1751 = vmatprep.mubr.f32.mxu0 %v8471_v35  ;;  %2169 = vmatprep.mubr.f32.mxu1 %v8471_v35  ;;  %v5155_v24 = vpack.c.bf16 %v2062_v22, %v2058_v37  ;;  %v2784_v2 = vld [vmem:[%s8417_s3 + $0x5d0] sm:$0xff]  ;;  %v2789_v5 = vld [vmem:[%s8417_s3 + $0x6d8] sm:$0xff]  ;;  %v2078_v37 = vld [vmem:[%s8417_s3 + $0x6c8] sm:$0xff] }
  0xc4   : > { %5182 = vmatpush1.bf16.msra.mxu1 %v5181_v51  ;;  %5150 = vmatpush1.bf16.msra.mxu0 %v5149_v52  ;;  %v2070_v51 = vld [vmem:[%s8417_s3 + $0x5c8] sm:$0xff]  ;;  %v5189_v52 = vpack.c.bf16 %v2780_v15, %v2778_v6  ;;  %v2073_v6 = vld [vmem:[%s8417_s3 + $0x640] sm:$0xff] }
  0xc5   : > { %5184 = vmatprep.subr.bf16.mxu1 %v5183_v7  ;;  %5152 = vmatprep.subr.bf16.mxu0 %v5151_v26  ;;  %v5157_v7 = vpack.c.bf16 %v2061_v32, %v2057_v17  ;;  %v2077_v17 = vld [vmem:[%s8417_s3 + $0x6c0] sm:$0xff]  ;;  %v2793_v32 = vld [vmem:[%s8417_s3 + $0x7d8] sm:$0xff]  ;;  %v2086_v33 = vld [vmem:[%s8417_s3 + $0x7c8] sm:$0xff] }
  0xc6   : > { %1752 = vmatmul.mubr.f32.gmra.mrb[70].mxu0 %v5872_v45  ;;  %2170 = vmatmul.mubr.f32.gmra.mrb[70].mxu1 %v5969_v18  ;;  %v2066_v45 = vld [vmem:[%s8417_s3 + $0x548] sm:$0xff]  ;;  %v2782_v18 = vld [vmem:[%s8417_s3 + $0x550] sm:$0xff] }
  0xc7   : > { %1757 = vmatprep.mubr.f32.mxu0 %v8471_v35  ;;  %2175 = vmatprep.mubr.f32.mxu1 %v8471_v35  ;;  %v5159_v26 = vpack.c.bf16 %v2070_v51, %v2066_v45  ;;  %v5193_v22 = vpack.c.bf16 %v2784_v2, %v2782_v18  ;;  %v5165_v45 = vpack.c.bf16 %v2077_v17, %v2073_v6  ;;  %v2085_v18 = vld [vmem:[%s8417_s3 + $0x7c0] sm:$0xff]  ;;  %v3455_v2 = vld [vmem:[%s8417_s3 + $0x70] sm:$0xff] }
  0xc8   : > { %5186 = vmatpush1.bf16.msra.mxu1 %v5185_v34  ;;  %5154 = vmatpush1.bf16.msra.mxu0 %v5153_v48  ;;  %v5161_v34 = vpack.c.bf16 %v2069_v58, %v2065_v31  ;;  %v5195_v48 = vpack.c.bf16 %v2789_v5, %v2787_v20  ;;  %v3457_v31 = vld [vmem:[%s8417_s3 + $0xf0] sm:$0xff] }
  0xc9   : > { %5188 = vmatprep.subr.bf16.mxu1 %v5187_v43  ;;  %5156 = vmatprep.subr.bf16.mxu0 %v5155_v24  ;;  %v2788_v43 = vld [vmem:[%s8417_s3 + $0x6d0] sm:$0xff]  ;;  %v2791_v24 = vld [vmem:[%s8417_s3 + $0x758] sm:$0xff]  ;;  %v5235_v5 = vpack.c.bf16 %v3457_v31, %v3455_v2  ;;  %v8488_v2 = vld [vmem:[#allocation10_spill] sm:$0xff] }
  0xca   : > { %1758 = vmatmul.mubr.f32.gmra.mrb[72].mxu0 %v5885_v49  ;;  %2176 = vmatmul.mubr.f32.gmra.mrb[72].mxu1 %v5988_v27  ;;  %v2074_v49 = vld [vmem:[%s8417_s3 + $0x648] sm:$0xff]  ;;  %v2786_v27 = vld [vmem:[%s8417_s3 + $0x650] sm:$0xff]  ;;  %v5199_v51 = vpack.c.bf16 %v2793_v32, %v2791_v24 }
  0xcb   : > { %1763 = vmatprep.mubr.f32.mxu0 %v8471_v35  ;;  %2181 = vmatprep.mubr.f32.mxu1 %v8471_v35  ;;  %v5163_v15 = vpack.c.bf16 %v2078_v37, %v2074_v49  ;;  %v5197_v14 = vpack.c.bf16 %v2788_v43, %v2786_v27  ;;  %v8484_v43 = vld [vmem:[#allocation8_spill] sm:$0xff]  ;;  %v8485_v24 = vld [vmem:[#allocation15_spill] sm:$0xff] }
  0xcc   : > { %5190 = vmatpush1.bf16.msra.mxu1 %v5189_v52  ;;  %5158 = vmatpush1.bf16.msra.mxu0 %v5157_v7  ;;  %v2792_v52 = vld [vmem:[%s8417_s3 + $0x7d0] sm:$0xff]  ;;  %v2081_v7 = vld [vmem:[%s8417_s3 + $0x740] sm:$0xff] }
  0xcd   : > { %5192 = vmatprep.subr.bf16.mxu1 %v5191_v60  ;;  %5160 = vmatprep.subr.bf16.mxu0 %v5159_v26  ;;  %v3149_v26 = vld [vmem:[%s8417_s3 + $0xe0] sm:$0xff]  ;;  %v5169_v20 = vpack.c.bf16 %v2085_v18, %v2081_v7 }
  0xce   : > { %1764 = vmatmul.mubr.f32.gmra.mrb[74].mxu0 %v5895_v54  ;;  %2182 = vmatmul.mubr.f32.gmra.mrb[74].mxu1 %v6019_v39  ;;  %v2082_v54 = vld [vmem:[%s8417_s3 + $0x748] sm:$0xff]  ;;  %v2790_v39 = vld [vmem:[%s8417_s3 + $0x750] sm:$0xff] }
  0xcf   : > { %1769 = vmatprep.mubr.f32.mxu0 %v8471_v35  ;;  %2187 = vmatprep.mubr.f32.mxu1 %v8471_v35  ;;  %v5167_v60 = vpack.c.bf16 %v2086_v33, %v2082_v54  ;;  %v5201_v58 = vpack.c.bf16 %v2792_v52, %v2790_v39  ;;  %v8487_v52 = vld [vmem:[#allocation16_spill] sm:$0xff] }
  0xd0   : > { %5194 = vmatpush1.bf16.msra.mxu1 %v5193_v22  ;;  %5162 = vmatpush1.bf16.msra.mxu0 %v5161_v34  ;;  %v8483_v22 = vld [vmem:[#allocation14_spill] sm:$0xff] }
  0xd1   : > { %5196 = vmatprep.subr.bf16.mxu1 %v5195_v48  ;;  %5164 = vmatprep.subr.bf16.mxu0 %v5163_v15 }
  0xd2   : > { %1770 = vmatmul.mubr.f32.gmra.mrb[76].mxu0 %v5916_v61  ;;  %2188 = vmatmul.mubr.f32.gmra.mrb[76].mxu1 %v6032_v46  ;;  %v3148_v61 = vld [vmem:[%s8417_s3 + $0x60] sm:$0xff] }
  0xd3   : > { %1775 = vmatprep.mubr.f32.mxu0 %v8471_v35  ;;  %2193 = vmatprep.mubr.f32.mxu1 %v8471_v35  ;;  %v6576_v46 = vpack.c.bf16 %v3149_v26, %v3148_v61 }
  0xd4   : > { %5198 = vmatpush1.bf16.msra.mxu1 %v5197_v14  ;;  %5166 = vmatpush1.bf16.msra.mxu0 %v5165_v45  ;;  %v8486_v14 = vld [vmem:[#allocation9_spill] sm:$0xff] }
  0xd5   : > { %5200 = vmatprep.subr.bf16.mxu1 %v5199_v51  ;;  %5168 = vmatprep.subr.bf16.mxu0 %v5167_v60 }
  0xd6   : > { %1776 = vmatmul.mubr.f32.gmra.mrb[78].mxu0 %v5928_v3  ;;  %2194 = vmatmul.mubr.f32.gmra.mrb[78].mxu1 %v6057_v56  ;;  %v6636_v3 = vld [vmem:[%s8418_s4] ss:$0 sm:$0xff] }
  0xd7   : > { %1781 = vmatprep.mubr.f32.mxu0 %v8471_v35  ;;  %2199 = vmatprep.mubr.f32.mxu1 %v8471_v35 }
  0xd8   : > { %5202 = vmatpush1.bf16.msra.mxu1 %v5201_v58  ;;  %5170 = vmatpush1.bf16.msra.mxu0 %v5169_v20  ;;  %v8489_v58 = vld [vmem:[#allocation17_spill] sm:$0xff] }
  0xd9   : > { %5236 = vmatprep.subr.bf16.mxu1 %v5235_v5  ;;  %5204 = vmatprep.subr.bf16.mxu0 %v6576_v46 }
  0xda   : > { %1782 = vmatmul.mubr.f32.gmra.mrb[80].mxu0 %v5941_v8  ;;  %2200 = vmatmul.mubr.f32.gmra.mrb[80].mxu1 %v6070_v63 }
  0xdb   : > { %1787 = vmatprep.mubr.f32.mxu0 %v8471_v35  ;;  %2205 = vmatprep.mubr.f32.mxu1 %v8471_v35 }
  0xde   : > { %1788 = vmatmul.mubr.f32.gmra.mrb[82].mxu0 %v5944_v10  ;;  %2206 = vmatmul.mubr.f32.gmra.mrb[82].mxu1 %v6089_v9 }
  0xdf   : > { %1793 = vmatprep.mubr.f32.mxu0 %v8471_v35  ;;  %2211 = vmatprep.mubr.f32.mxu1 %v8471_v35 }
  0xe2   : > { %1794 = vmatmul.mubr.f32.gmra.mrb[84].mxu0 %v5972_v19  ;;  %2212 = vmatmul.mubr.f32.gmra.mrb[84].mxu1 %v6102_v13  ;;  %v8479_v13 = vld [vmem:[#allocation12_spill] sm:$0xff] }
  0xe3   : > { %1799 = vmatprep.mubr.f32.mxu0 %v8471_v35  ;;  %2217 = vmatprep.mubr.f32.mxu1 %v8471_v35 }
  0xe6   : > { %1800 = vmatmul.mubr.f32.gmra.mrb[86].mxu0 %v5978_v23  ;;  %2218 = vmatmul.mubr.f32.gmra.mrb[86].mxu1 %v6115_v16 }
  0xe7   : > { %1805 = vmatprep.mubr.f32.mxu0 %v8471_v35  ;;  %2223 = vmatprep.mubr.f32.mxu1 %v8471_v35 }
  0xea   : > { %1806 = vmatmul.mubr.f32.gmra.mrb[88].mxu0 %v5991_v28  ;;  %2224 = vmatmul.mubr.f32.gmra.mrb[88].mxu1 %v6128_v21 }
  0xeb   : > { %1811 = vmatprep.mubr.f32.mxu0 %v8471_v35  ;;  %2229 = vmatprep.mubr.f32.mxu1 %v8471_v35 }
  0xee   : > { %1812 = vmatmul.mubr.f32.gmra.mrb[90].mxu0 %v5994_v29  ;;  %2230 = vmatmul.mubr.f32.gmra.mrb[90].mxu1 %v6141_v25 }
  0xef   : > { %1817 = vmatprep.mubr.f32.mxu0 %v8471_v35  ;;  %2235 = vmatprep.mubr.f32.mxu1 %v8471_v35 }
  0xf2   : > { %1818 = vmatmul.mubr.f32.gmra.mrb[92].mxu0 %v6022_v40  ;;  %2236 = vmatmul.mubr.f32.gmra.mrb[92].mxu1 %v6161_v38  ;;  %v8480_v38 = vld [vmem:[#allocation6_spill] sm:$0xff] }
  0xf3   : > { %1823 = vmatprep.mubr.f32.mxu0 %v8471_v35  ;;  %2241 = vmatprep.mubr.f32.mxu1 %v8471_v35 }
  0xf6   : > { %1824 = vmatmul.mubr.f32.gmra.mrb[94].mxu0 %v6028_v44  ;;  %2242 = vmatmul.mubr.f32.gmra.mrb[94].mxu1 %v6180_v59 }
  0xf7   : > { %1829 = vmatprep.mubr.f32.mxu0 %v8471_v35  ;;  %2247 = vmatprep.mubr.f32.mxu1 %v8471_v35 }
  0xfa   : > { %1830 = vmatmul.mubr.f32.gmra.mrb[96].mxu0 %v6035_v47  ;;  %2248 = vmatmul.mubr.f32.gmra.mrb[96].mxu1 %v6199_v36 }
  0xfb   : > { %1835 = vmatprep.mubr.f32.mxu0 %v8471_v35  ;;  %2253 = vmatprep.mubr.f32.mxu1 %v8471_v35 }
  0xfe   : > { %1836 = vmatmul.mubr.f32.gmra.mrb[98].mxu0 %v6039_v50  ;;  %2254 = vmatmul.mubr.f32.gmra.mrb[98].mxu1 %v6218_v1  ;;  %v8481_v1 = vld [vmem:[#allocation13_spill] sm:$0xff] }
  0xff   : > { %1841 = vmatprep.mubr.f32.mxu0 %v8471_v35  ;;  %2259 = vmatprep.mubr.f32.mxu1 %v8471_v35 }
 0x102   : > { %1842 = vmatmul.mubr.f32.gmra.mrb[100].mxu0 %v6060_v57  ;;  %2260 = vmatmul.mubr.f32.gmra.mrb[100].mxu1 %v6237_v42 }
 0x103   : > { %1847 = vmatprep.mubr.f32.mxu0 %v8471_v35  ;;  %2265 = vmatprep.mubr.f32.mxu1 %v8471_v35 }
 0x106   : > { %1848 = vmatmul.mubr.f32.gmra.mrb[102].mxu0 %v6066_v62  ;;  %2266 = vmatmul.mubr.f32.gmra.mrb[102].mxu1 %v6256_v30 }
 0x107   : > { %1853 = vmatprep.mubr.f32.mxu0 %v8471_v35  ;;  %2271 = vmatprep.mubr.f32.mxu1 %v8471_v35 }
 0x10a   : > { %1854 = vmatmul.mubr.f32.gmra.mrb[104].mxu0 %v6073_v0  ;;  %2272 = vmatmul.mubr.f32.gmra.mrb[104].mxu1 %v6275_v53 }
 0x10b   : > { %1859 = vmatprep.mubr.f32.mxu0 %v8471_v35  ;;  %2277 = vmatprep.mubr.f32.mxu1 %v8471_v35 }
 0x10d   : > { %v4693_v8 = vpop.f32.mrb[0].mxu0  ;;  %v1044_v10 = vpop.f32.mrb[0].mxu1 }
 0x10e   : > { %v723_v19 = vpop.f32.mrb[1].mxu0  ;;  %1860 = vmatmul.mubr.f32.gmra.mrb[106].mxu0 %v6085_v4  ;;  %v883_v23 = vadd.f32 %v4693_v8, %v6636_v3  ;;  %v6642_v29 = vpop.f32.mrb[1].mxu1  ;;  %2278 = vmatmul.mubr.f32.gmra.mrb[106].mxu1 %v6294_v41  ;;  %v8482_v41 = vld [vmem:[#allocation7_spill] sm:$0xff] }
 0x10f   : > { %v882_v28 = vadd.f32 %v6636_v3, %v723_v19  ;;  %1865 = vmatprep.mubr.f32.mxu0 %v8471_v35  ;;  %2283 = vmatprep.mubr.f32.mxu1 %v8471_v35 }
 0x111   : > { %v4696_v40 = vpop.f32.mrb[2].mxu0  ;;  %v6647_v44 = vadd.f32 %v1044_v10, %v882_v28  ;;  %v1050_v47 = vpop.f32.mrb[2].mxu1  ;;  %v8490_v10 = vld [vmem:[#allocation11_spill] sm:$0xff] }
 0x112   : > { %1866 = vmatmul.mubr.f32.gmra.mrb[108].mxu0 %v6092_v11  ;;  %v733_v50 = vpop.f32.mrb[3].mxu0  ;;  %v6650_v56 = vadd.f32 %v1050_v47, %v883_v23  ;;  %v6652_v57 = vpop.f32.mrb[3].mxu1  ;;  %2284 = vmatmul.mubr.f32.gmra.mrb[108].mxu1 %v6301_v55  ;;  %v885_v16 = vadd.f32 %v4696_v40, %v6636_v3  ;;  %v8491_v40 = vld [vmem:[#allocation18_spill] sm:$0xff] }
 0x113   : > { %v884_v62 = vadd.f32 %v6636_v3, %v733_v50  ;;  %1871 = vmatprep.mubr.f32.mxu0 %v8471_v35  ;;  %2289 = vmatprep.mubr.f32.mxu1 %v8471_v35  ;;  %v442_v47 = vld [vmem:[%s6725_s13] sm:$0xff] }
 0x114   : > { %v517_v50 = vld [vmem:[%s6725_s13 + $0x1] sm:$0xff] }
 0x115   : > { %v4699_v63 = vpop.f32.mrb[4].mxu0  ;;  %v1056_v0 = vpop.f32.mrb[4].mxu1 }
 0x116   : > { %1872 = vmatmul.mubr.f32.gmra.mrb[110].mxu0 %v6098_v12  ;;  %v743_v4 = vpop.f32.mrb[5].mxu0  ;;  %v6659_v9 = vadd.f32 %v1056_v0, %v884_v62  ;;  %v6661_v11 = vpop.f32.mrb[5].mxu1  ;;  %2290 = vmatmul.mubr.f32.gmra.mrb[110].mxu1 %v8479_v13  ;;  %v887_v34 = vadd.f32 %v4699_v63, %v6636_v3 }
 0x117   : > { %1877 = vmatprep.mubr.f32.mxu0 %v8471_v35  ;;  %2295 = vmatprep.mubr.f32.mxu1 %v8471_v35  ;;  %v886_v42 = vadd.f32 %v6636_v3, %v743_v4 }
 0x119   : > { %v4702_v21 = vpop.f32.mrb[6].mxu0  ;;  %v1062_v25 = vpop.f32.mrb[6].mxu1 }
 0x11a   : > { %1878 = vmatmul.mubr.f32.gmra.mrb[112].mxu0 %v8480_v38  ;;  %v753_v59 = vpop.f32.mrb[7].mxu0  ;;  %v6668_v36 = vadd.f32 %v1062_v25, %v885_v16  ;;  %v6670_v12 = vpop.f32.mrb[7].mxu1  ;;  %2296 = vmatmul.mubr.f32.gmra.mrb[112].mxu1 %v8481_v1  ;;  %v889_v7 = vadd.f32 %v4702_v21, %v6636_v3  ;;  %v443_v21 = vld [vmem:[%s6725_s13 + $0x8] sm:$0xff] }
 0x11b   : > { %1883 = vmatprep.mubr.f32.mxu0 %v8471_v35  ;;  %2301 = vmatprep.mubr.f32.mxu1 %v8471_v35  ;;  %v888_v32 = vadd.f32 %v6636_v3, %v753_v59  ;;  %v518_v25 = vld [vmem:[%s6725_s13 + $0x9] sm:$0xff] }
 0x11c   : > { %v3454_v1 = vld [vmem:[%s8417_s3 + $0x68] sm:$0xff] }
 0x11d   : > { %v4705_v30 = vpop.f32.mrb[8].mxu0  ;;  %v1068_v53 = vpop.f32.mrb[8].mxu1 }
 0x11e   : > { %1884 = vmatmul.mubr.f32.gmra.mrb[114].mxu0 %v8482_v41  ;;  %v763_v55 = vpop.f32.mrb[9].mxu0  ;;  %v6677_v49 = vadd.f32 %v1068_v53, %v886_v42  ;;  %v6679_v37 = vpop.f32.mrb[9].mxu1  ;;  %2302 = vmatmul.mubr.f32.gmra.mrb[114].mxu1 %v8483_v22  ;;  %v891_v62 = vadd.f32 %v4705_v30, %v6636_v3  ;;  %v3456_v42 = vld [vmem:[%s8417_s3 + $0xe8] sm:$0xff]  ;;  %v3459_v41 = vld [vmem:[%s8417_s3 + $0x170] sm:$0xff] }
 0x11f   : > { %1889 = vmatprep.mubr.f32.mxu0 %v8471_v35  ;;  %2307 = vmatprep.mubr.f32.mxu1 %v8471_v35  ;;  %v890_v20 = vadd.f32 %v6636_v3, %v763_v55  ;;  %v3461_v55 = vld [vmem:[%s8417_s3 + $0x1f0] sm:$0xff] }
 0x121   : > { %v6685_v48 = vpop.f32.mrb[10].mxu0  ;;  %v1074_v27 = vpop.f32.mrb[10].mxu1 }
 0x122   : > { %1890 = vmatmul.mubr.f32.gmra.mrb[116].mxu0 %v8484_v43  ;;  %v773_v6 = vpop.f32.mrb[11].mxu0  ;;  %v6688_v15 = vadd.f32 %v1074_v27, %v887_v34  ;;  %v6690_v17 = vpop.f32.mrb[11].mxu1  ;;  %2308 = vmatmul.mubr.f32.gmra.mrb[116].mxu1 %v8485_v24  ;;  %v3150_v27 = vld [vmem:[%s8417_s3 + $0x160] sm:$0xff]  ;;  %v893_v24 = vadd.f32 %v6685_v48, %v6636_v3  ;;  %v3463_v48 = vld [vmem:[%s8417_s3 + $0x270] sm:$0xff] }
 0x123   : > { %1895 = vmatprep.mubr.f32.mxu0 %v8471_v35  ;;  %2313 = vmatprep.mubr.f32.mxu1 %v8471_v35  ;;  %v892_v38 = vadd.f32 %v6636_v3, %v773_v6  ;;  %v3151_v43 = vld [vmem:[%s8417_s3 + $0x1e0] sm:$0xff]  ;;  %v5237_v6 = vpack.c.bf16 %v3456_v42, %v3454_v1  ;;  %v3464_v1 = vld [vmem:[%s8417_s3 + $0x2e8] sm:$0xff] }
 0x125   : > { %v6696_v54 = vpop.f32.mrb[12].mxu0  ;;  %v1080_v33 = vpop.f32.mrb[12].mxu1 }
 0x126   : > { %1896 = vmatmul.mubr.f32.gmra.mrb[118].mxu0 %v8486_v14  ;;  %v6699_v45 = vpop.f32.mrb[13].mxu0  ;;  %v6701_v51 = vadd.f32 %v1080_v33, %v888_v32  ;;  %v6703_v39 = vpop.f32.mrb[13].mxu1  ;;  %2314 = vmatmul.mubr.f32.gmra.mrb[118].mxu1 %v8487_v52  ;;  %v5239_v33 = vpack.c.bf16 %v3461_v55, %v3459_v41  ;;  %v3458_v14 = vld [vmem:[%s8417_s3 + $0x168] sm:$0xff]  ;;  %v3469_v55 = vld [vmem:[%s8417_s3 + $0x3f0] sm:$0xff] }
 0x127   : > { %1901 = vmatprep.mubr.f32.mxu0 %v8471_v35  ;;  %2319 = vmatprep.mubr.f32.mxu1 %v8471_v35  ;;  %v3460_v52 = vld [vmem:[%s8417_s3 + $0x1e8] sm:$0xff] }
 0x129   : > { %v6709_v60 = vpop.f32.mrb[14].mxu0  ;;  %v1086_v18 = vpop.f32.mrb[14].mxu1 }
 0x12a   : > { %1902 = vmatmul.mubr.f32.gmra.mrb[120].mxu0 %v8488_v2  ;;  %v6713_v31 = vpop.f32.mrb[15].mxu0  ;;  %v6715_v61 = vadd.f32 %v1086_v18, %v889_v7  ;;  %v6717_v26 = vpop.f32.mrb[15].mxu1  ;;  %2320 = vmatmul.mubr.f32.gmra.mrb[120].mxu1 %v8489_v58  ;;  %v5360_v18 = vld [vmem:[%s5735_s11 + $0x19] sm:$0xff]  ;;  %v5207_v58 = vpack.c.bf16 %v3151_v43, %v3150_v27 }
 0x12b   : > { %1907 = vmatprep.mubr.f32.mxu0 %v8471_v35  ;;  %2325 = vmatprep.mubr.f32.mxu1 %v8471_v35 }
 0x12d   : > { %v6728_v5 = vpop.f32.mrb[16].mxu0  ;;  %v1092_v8 = vpop.f32.mrb[16].mxu1 }
 0x12e   : > { %1908 = vmatmul.mubr.f32.gmra.mrb[122].mxu0 %v8490_v10  ;;  %v6731_v19 = vpop.f32.mrb[17].mxu0  ;;  %v6733_v23 = vadd.f32 %v1092_v8, %v890_v20  ;;  %v6735_v28 = vpop.f32.mrb[17].mxu1  ;;  %2326 = vmatmul.mubr.f32.gmra.mrb[122].mxu1 %v8491_v40  ;;  %v3465_v20 = vld [vmem:[%s8417_s3 + $0x2f0] sm:$0xff]  ;;  %v5361_v40 = vld [vmem:[%s5735_s11 + $0x1a] sm:$0xff] }
 0x12f   : > { %1913 = vmatprep.mubr.f32.mxu0 %v8471_v35  ;;  %2331 = vmatprep.mubr.f32.mxu1 %v8471_v35 }
 0x131   : > { %v6743_v63 = vpop.f32.mrb[18].mxu0  ;;  %v1098_v0 = vpop.f32.mrb[18].mxu1 }
 0x132   : > { %1914 = vmatmul.mubr.f32.gmra.mrb[124].mxu0 %v442_v47  ;;  %v6745_v4 = vpop.f32.mrb[19].mxu0  ;;  %v6747_v13 = vadd.f32 %v1098_v0, %v891_v62  ;;  %v6749_v16 = vpop.f32.mrb[19].mxu1  ;;  %2332 = vmatmul.mubr.f32.gmra.mrb[124].mxu1 %v517_v50  ;;  %v3152_v47 = vld [vmem:[%s8417_s3 + $0x260] sm:$0xff]  ;;  %v5241_v62 = vpack.c.bf16 %v3460_v52, %v3458_v14  ;;  %v894_v0 = vadd.f32 %v6636_v3, %v6699_v45  ;;  %v3467_v45 = vld [vmem:[%s8417_s3 + $0x370] sm:$0xff] }
 0x133   : > { %1919 = vmatprep.mubr.f32.mxu0 %v8471_v35  ;;  %2337 = vmatprep.mubr.f32.mxu1 %v8471_v35  ;;  %v3153_v50 = vld [vmem:[%s8417_s3 + $0x2e0] sm:$0xff]  ;;  %v895_v52 = vadd.f32 %v6696_v54, %v6636_v3 }
 0x135   : > { %v6756_v59 = vpop.f32.mrb[20].mxu0  ;;  %v1104_v30 = vpop.f32.mrb[20].mxu1 }
 0x136   : > { %1920 = vmatmul.mubr.f32.gmra.mrb[126].mxu0 %v443_v21  ;;  %v6764_v53 = vpop.f32.mrb[21].mxu0  ;;  %v6772_v22 = vadd.f32 %v1104_v30, %v892_v38  ;;  %v6774_v34 = vpop.f32.mrb[21].mxu1  ;;  %2338 = vmatmul.mubr.f32.gmra.mrb[126].mxu1 %v518_v25  ;;  %v5243_v25 = vpack.c.bf16 %v3465_v20, %v3463_v48  ;;  %v3462_v38 = vld [vmem:[%s8417_s3 + $0x268] sm:$0xff] }
 0x137   : > { %2408 = vmatprep.mubr.f32.mxu0 %v8471_v35  ;;  %2858 = vmatprep.mubr.f32.mxu1 %v8471_v35  ;;  %v5362_v30 = vld [vmem:[%s5735_s11 + $0x21] sm:$0xff]  ;;  %v5245_v14 = vpack.c.bf16 %v3464_v1, %v3462_v38  ;;  %v5365_v38 = vld [vmem:[%s5735_s11 + $0x32] sm:$0xff] }
 0x138   : > { %v3466_v48 = vld [vmem:[%s8417_s3 + $0x368] sm:$0xff]  ;;  %v3156_v1 = vld [vmem:[%s8417_s3 + $0x460] sm:$0xff] }
 0x139   : > { %v6786_v32 = vpop.f32.mrb[22].mxu0  ;;  %v1110_v7 = vpop.f32.mrb[22].mxu1  ;;  %v3468_v20 = vld [vmem:[%s8417_s3 + $0x3e8] sm:$0xff] }
 0x13a   : > { %2409 = vmatmul.mubr.f32.vlgmr.msra.gmra.mrb[128].mxu0 %v5360_v18  ;;  %v6795_v2 = vpop.f32.mrb[23].mxu0  ;;  %v6803_v8 = vadd.f32 %v1110_v7, %v893_v24  ;;  %v6805_v10 = vpop.f32.mrb[23].mxu1  ;;  %2859 = vmatmul.mubr.f32.vlgmr.msra.gmra.mrb[128].mxu1 %v5361_v40  ;;  %v3154_v24 = vld [vmem:[%s8417_s3 + $0x360] sm:$0xff]  ;;  %v5247_v18 = vpack.c.bf16 %v3469_v55, %v3467_v45  ;;  %v896_v45 = vadd.f32 %v6636_v3, %v6713_v31 }
 0x13b   : > { %2414 = vmatprep.mubr.f32.mxu0 %v8471_v35  ;;  %5238 = vmatpush1.bf16.msra.mxu1 %v5237_v6  ;;  %v5363_v6 = vld [vmem:[%s5735_s11 + $0x22] sm:$0xff] }
 0x13c   : > { %2864 = vmatprep.mubr.f32.mxu1 %v8471_v35  ;;  %5206 = vmatpush3.bf16.msra.mxu0 %v6576_v46  ;;  %v5211_v46 = vpack.c.bf16 %v3153_v50, %v3152_v47  ;;  %v6860_v47 = vld [vmem:[%s5735_s11 + $0x31] sm:$0xff] }
 0x13d   : > { %v6819_v21 = vpop.f32.mrb[24].mxu0  ;;  %5240 = vmatprep.subr.bf16.mxu1 %v5239_v33  ;;  %v1116_v42 = vpop.f32.mrb[24].mxu1  ;;  %5208 = vmatprep.subr.bf16.mxu0 %v5207_v58  ;;  %v3155_v33 = vld [vmem:[%s8417_s3 + $0x3e0] sm:$0xff] }
 0x13e   : > { %2415 = vmatmul.mubr.f32.gmra.mrb[130].mxu0 %v5362_v30  ;;  %v6828_v41 = vpop.f32.mrb[25].mxu0  ;;  %v6836_v27 = vadd.f32 %v1116_v42, %v894_v0  ;;  %v6838_v43 = vpop.f32.mrb[25].mxu1  ;;  %2865 = vmatmul.mubr.f32.gmra.mrb[130].mxu1 %v5363_v6  ;;  %v5215_v50 = vpack.c.bf16 %v3155_v33, %v3154_v24  ;;  %v3157_v42 = vld [vmem:[%s8417_s3 + $0x4e0] sm:$0xff]  ;;  %v5249_v30 = vpack.c.bf16 %v3468_v20, %v3466_v48  ;;  %v3470_v24 = vld [vmem:[%s8417_s3 + $0x468] sm:$0xff] }
 0x13f   : > { %2420 = vmatprep.mubr.f32.mxu0 %v8471_v35  ;;  %2870 = vmatprep.mubr.f32.mxu1 %v8471_v35  ;;  %v3472_v33 = vld [vmem:[%s8417_s3 + $0x4e8] sm:$0xff]  ;;  %v5219_v48 = vpack.c.bf16 %v3157_v42, %v3156_v1  ;;  %v897_v42 = vadd.f32 %v6709_v60, %v6636_v3 }
 0x140   : > { %8492 = vst [vmem:[#allocation12_spill] sm:$0xff] %v6836_v27  ;;  %5242 = vmatpush1.bf16.msra.mxu1 %v5241_v62  ;;  %5210 = vmatpush3.bf16.msra.mxu0 %v5207_v58  ;;  %v3471_v58 = vld [vmem:[%s8417_s3 + $0x470] sm:$0xff]  ;;  %v5253_v1 = vpack.c.bf16 %v3472_v33, %v3470_v24  ;;  %v3478_v27 = vld [vmem:[%s8417_s3 + $0x668] sm:$0xff] }
 0x141   : > { %v6851_v7 = vpop.f32.mrb[26].mxu0  ;;  %5244 = vmatprep.subr.bf16.mxu1 %v5243_v25  ;;  %v1122_v40 = vpop.f32.mrb[26].mxu1  ;;  %5212 = vmatprep.subr.bf16.mxu0 %v5211_v46  ;;  %v3473_v62 = vld [vmem:[%s8417_s3 + $0x4f0] sm:$0xff] }
 0x142   : > { %2421 = vmatmul.mubr.f32.gmra.mrb[132].mxu0 %v6860_v47  ;;  %v6863_v54 = vpop.f32.mrb[27].mxu0  ;;  %v6871_v0 = vadd.f32 %v1122_v40, %v895_v52  ;;  %v6873_v25 = vpop.f32.mrb[27].mxu1  ;;  %2871 = vmatmul.mubr.f32.gmra.mrb[132].mxu1 %v5365_v38  ;;  %v5251_v6 = vpack.c.bf16 %v3473_v62, %v3471_v58  ;;  %v5367_v58 = vld [vmem:[%s5735_s11 + $0x3a] sm:$0xff] }
 0x143   : > { %2426 = vmatprep.mubr.f32.mxu0 %v8471_v35  ;;  %2876 = vmatprep.mubr.f32.mxu1 %v8471_v35  ;;  %v3158_v62 = vld [vmem:[%s8417_s3 + $0x560] sm:$0xff] }
 0x144   : > { %8493 = vst [vmem:[#allocation6_spill] sm:$0xff] %v6871_v0  ;;  %5246 = vmatpush1.bf16.msra.mxu1 %v5245_v14  ;;  %5214 = vmatpush3.bf16.msra.mxu0 %v5211_v46  ;;  %v6895_v14 = vld [vmem:[%s5735_s11 + $0x39] sm:$0xff]  ;;  %v3475_v46 = vld [vmem:[%s8417_s3 + $0x570] sm:$0xff] }
 0x145   : > { %v6886_v55 = vpop.f32.mrb[28].mxu0  ;;  %5248 = vmatprep.subr.bf16.mxu1 %v5247_v18  ;;  %v1128_v52 = vpop.f32.mrb[28].mxu1  ;;  %8494 = vst [vmem:[#allocation13_spill] sm:$0xff] %v6895_v14  ;;  %5216 = vmatprep.subr.bf16.mxu0 %v5215_v50  ;;  %v3477_v18 = vld [vmem:[%s8417_s3 + $0x5f0] sm:$0xff]  ;;  %v3159_v38 = vld [vmem:[%s8417_s3 + $0x5e0] sm:$0xff] }
 0x146   : > { %2427 = vmatmul.mubr.f32.gmra.mrb[134].mxu0 %v6895_v14  ;;  %v6898_v31 = vpop.f32.mrb[29].mxu0  ;;  %v6906_v20 = vadd.f32 %v1128_v52, %v896_v45  ;;  %v6908_v40 = vpop.f32.mrb[29].mxu1  ;;  %2877 = vmatmul.mubr.f32.gmra.mrb[134].mxu1 %v5367_v58  ;;  %v5255_v52 = vpack.c.bf16 %v3477_v18, %v3475_v46  ;;  %v3474_v58 = vld [vmem:[%s8417_s3 + $0x568] sm:$0xff]  ;;  %v5223_v24 = vpack.c.bf16 %v3159_v38, %v3158_v62  ;;  %v3160_v62 = vld [vmem:[%s8417_s3 + $0x660] sm:$0xff] }
 0x147   : > { %2432 = vmatprep.mubr.f32.mxu0 %v8471_v35  ;;  %2882 = vmatprep.mubr.f32.mxu1 %v8471_v35  ;;  %v5369_v18 = vld [vmem:[%s5735_s11 + $0x4a] sm:$0xff]  ;;  %v3161_v38 = vld [vmem:[%s8417_s3 + $0x6e0] sm:$0xff] }
 0x148   : > { %8495 = vst [vmem:[#allocation7_spill] sm:$0xff] %v6906_v20  ;;  %5250 = vmatpush1.bf16.msra.mxu1 %v5249_v30  ;;  %5218 = vmatpush3.bf16.msra.mxu0 %v5215_v50  ;;  %v3476_v20 = vld [vmem:[%s8417_s3 + $0x5e8] sm:$0xff]  ;;  %v3479_v50 = vld [vmem:[%s8417_s3 + $0x670] sm:$0xff] }
 0x149   : > { %v6921_v45 = vpop.f32.mrb[30].mxu0  ;;  %5252 = vmatprep.subr.bf16.mxu1 %v5251_v6  ;;  %v1134_v0 = vpop.f32.mrb[30].mxu1  ;;  %v6930_v30 = vld [vmem:[%s5735_s11 + $0x49] sm:$0xff]  ;;  %5220 = vmatprep.subr.bf16.mxu0 %v5219_v48 }
 0x14a   : > { %8496 = vst [vmem:[#allocation14_spill] sm:$0xff] %v6930_v30  ;;  %2433 = vmatmul.mubr.f32.gmra.mrb[136].mxu0 %v6930_v30  ;;  %v6933_v60 = vpop.f32.mrb[31].mxu0  ;;  %v3481_v6 = vld [vmem:[%s8417_s3 + $0x6f0] sm:$0xff]  ;;  %v6941_v33 = vadd.f32 %v1134_v0, %v897_v42  ;;  %v6943_v46 = vpop.f32.mrb[31].mxu1  ;;  %2883 = vmatmul.mubr.f32.gmra.mrb[136].mxu1 %v5369_v18  ;;  %v1268_v30 = vadd.f32 %v6636_v3, %v6652_v57  ;;  %v3480_v57 = vld [vmem:[%s8417_s3 + $0x6e8] sm:$0xff] }
 0x14b   : > { %2438 = vmatprep.mubr.f32.mxu0 %v8471_v35  ;;  %2888 = vmatprep.mubr.f32.mxu1 %v8471_v35  ;;  %v5257_v0 = vpack.c.bf16 %v3476_v20, %v3474_v58  ;;  %v1267_v42 = vadd.f32 %v6636_v3, %v6642_v29  ;;  %v898_v18 = vadd.f32 %v6636_v3, %v6731_v19  ;;  %v6969_v58 = vld [vmem:[%s5735_s11 + $0x51] sm:$0xff] }
 0x14c   : > { %8497 = vst [vmem:[#allocation8_spill] sm:$0xff] %v6941_v33  ;;  %5254 = vmatpush1.bf16.msra.mxu1 %v5253_v1  ;;  %5222 = vmatpush3.bf16.msra.mxu0 %v5219_v48  ;;  %v5259_v14 = vpack.c.bf16 %v3481_v6, %v3479_v50  ;;  %8498 = vst [vmem:[#allocation15_spill] sm:$0xff] %v6969_v58  ;;  %v5227_v19 = vpack.c.bf16 %v3161_v38, %v3160_v62  ;;  %v3483_v48 = vld [vmem:[%s8417_s3 + $0x770] sm:$0xff]  ;;  %v3162_v62 = vld [vmem:[%s8417_s3 + $0x760] sm:$0xff] }
 0x14d   : > { %v4773_v33 = vpop.f32.mrb[32].mxu0  ;;  %5256 = vmatprep.subr.bf16.mxu1 %v5255_v52  ;;  %v1140_v20 = vpop.f32.mrb[32].mxu1  ;;  %5224 = vmatprep.subr.bf16.mxu0 %v5223_v24  ;;  %v3485_v52 = vld [vmem:[%s8417_s3 + $0x7f0] sm:$0xff]  ;;  %v3163_v38 = vld [vmem:[%s8417_s3 + $0x7e0] sm:$0xff] }
 0x14e   : > { %v6966_v1 = vadd.f32 %v4773_v33, %v1268_v30  ;;  %v1413_v29 = vpop.f32.mrb[33].mxu0  ;;  %2439 = vmatmul.mubr.f32.gmra.mrb[138].mxu0 %v6969_v58  ;;  %v6978_v50 = vadd.f32 %v1140_v20, %v898_v18  ;;  %v6980_v6 = vpop.f32.mrb[33].mxu1  ;;  %v5371_v33 = vld [vmem:[%s5735_s11 + $0x52] sm:$0xff]  ;;  %v1270_v18 = vadd.f32 %v6636_v3, %v6670_v12  ;;  %v1269_v20 = vadd.f32 %v6636_v3, %v6661_v11  ;;  %v3482_v58 = vld [vmem:[%s8417_s3 + $0x768] sm:$0xff] }
 0x14f   : > { %v6982_v30 = vadd.f32 %v1413_v29, %v1267_v42  ;;  %2889 = vmatmul.mubr.f32.gmra.mrb[138].mxu1 %v5371_v33  ;;  %2444 = vmatprep.mubr.f32.mxu0 %v8471_v35  ;;  %v5261_v42 = vpack.c.bf16 %v3480_v57, %v3478_v27  ;;  %v899_v29 = vadd.f32 %v6728_v5, %v6636_v3  ;;  %v3484_v12 = vld [vmem:[%s8417_s3 + $0x7e8] sm:$0xff] }
 0x150   : > { %8499 = vst [vmem:[#allocation9_spill] sm:$0xff] %v6978_v50  ;;  %2894 = vmatprep.mubr.f32.mxu1 %v8471_v35  ;;  %5258 = vmatpush1.bf16.msra.mxu1 %v5257_v0  ;;  %v5263_v50 = vpack.c.bf16 %v3485_v52, %v3483_v48  ;;  %v7008_v57 = vld [vmem:[%s5735_s11 + $0x61] sm:$0xff]  ;;  %v5231_v5 = vpack.c.bf16 %v3163_v38, %v3162_v62 }
 0x151   : > { %v4776_v33 = vpop.f32.mrb[34].mxu0  ;;  %5226 = vmatpush3.bf16.msra.mxu0 %v5223_v24  ;;  %5260 = vmatprep.subr.bf16.mxu1 %v5259_v14  ;;  %v1146_v27 = vpop.f32.mrb[34].mxu1  ;;  %8500 = vst [vmem:[#allocation16_spill] sm:$0xff] %v7008_v57  ;;  %v5373_v52 = vld [vmem:[%s5735_s11 + $0x62] sm:$0xff]  ;;  %v1272_v62 = vadd.f32 %v6636_v3, %v6690_v17  ;;  %v5265_v38 = vpack.c.bf16 %v3484_v12, %v3482_v58 }
 0x152   : > { %v7005_v0 = vadd.f32 %v4776_v33, %v1270_v18  ;;  %v1423_v11 = vpop.f32.mrb[35].mxu0  ;;  %2445 = vmatmul.mubr.f32.gmra.mrb[140].mxu0 %v7008_v57  ;;  %5228 = vmatprep.subr.bf16.mxu0 %v5227_v19  ;;  %v7011_v14 = vadd.f32 %v1146_v27, %v899_v29  ;;  %v7013_v24 = vpop.f32.mrb[35].mxu1  ;;  %v3840_v18 = vld [vmem:[%s8417_s3 + $0x78] sm:$0xff]  ;;  %v900_v29 = vadd.f32 %v6636_v3, %v6745_v4  ;;  %v7035_v57 = vld [vmem:[%s5735_s11 + $0x69] sm:$0xff] }
 0x153   : > { %v7015_v48 = vadd.f32 %v1423_v11, %v1269_v20  ;;  %2895 = vmatmul.mubr.f32.gmra.mrb[140].mxu1 %v5373_v52  ;;  %2450 = vmatprep.mubr.f32.mxu0 %v8471_v35  ;;  %v3841_v33 = vld [vmem:[%s8417_s3 + $0xf8] sm:$0xff]  ;;  %v1271_v20 = vadd.f32 %v6636_v3, %v6679_v37  ;;  %v901_v12 = vadd.f32 %v6743_v63, %v6636_v3 }
 0x154   : > { %8501 = vst [vmem:[#allocation10_spill] sm:$0xff] %v7011_v14  ;;  %2900 = vmatprep.mubr.f32.mxu1 %v8471_v35  ;;  %5262 = vmatpush1.bf16.msra.mxu1 %v5261_v42  ;;  %v7038_v17 = vpack.c.bf16 %v3841_v33, %v3840_v18  ;;  %v1273_v42 = vadd.f32 %v6636_v3, %v6703_v39  ;;  %v5377_v63 = vld [vmem:[%s5735_s11 + $0x7a] sm:$0xff] }
 0x155   : > { %v4779_v27 = vpop.f32.mrb[36].mxu0  ;;  %5230 = vmatpush3.bf16.msra.mxu0 %v5227_v19  ;;  %5264 = vmatprep.subr.bf16.mxu1 %v5263_v50  ;;  %v1152_v11 = vpop.f32.mrb[36].mxu1  ;;  %v5375_v19 = vld [vmem:[%s5735_s11 + $0x6a] sm:$0xff]  ;;  %v1274_v50 = vadd.f32 %v6636_v3, %v6717_v26 }
 0x156   : > { %v7032_v52 = vadd.f32 %v4779_v27, %v1272_v62  ;;  %v1433_v14 = vpop.f32.mrb[37].mxu0  ;;  %2451 = vmatmul.mubr.f32.gmra.mrb[142].mxu0 %v7035_v57  ;;  %5232 = vmatprep.subr.bf16.mxu0 %v5231_v5  ;;  %v7040_v58 = vadd.f32 %v1152_v11, %v900_v29  ;;  %v7042_v37 = vpop.f32.mrb[37].mxu1  ;;  %v1275_v29 = vadd.f32 %v6636_v3, %v6735_v28  ;;  %v5379_v28 = vld [vmem:[%s5735_s11 + $0x82] sm:$0xff] }
 0x157   : > { %v7044_v4 = vadd.f32 %v1433_v14, %v1271_v20  ;;  %2901 = vmatmul.mubr.f32.gmra.mrb[142].mxu1 %v5375_v19  ;;  %2456 = vmatprep.mubr.f32.mxu0 %v8471_v35  ;;  %v7058_v20 = vld [vmem:[%s5735_s11 + $0x79] sm:$0xff]  ;;  %v902_v27 = vadd.f32 %v6636_v3, %v6764_v53  ;;  %v1278_v53 = vadd.f32 %v6636_v3, %v6805_v10 }
 0x158   : > { %2906 = vmatprep.mubr.f32.mxu1 %v8471_v35  ;;  %5266 = vmatpush1.bf16.msra.mxu1 %v5265_v38 }
 0x159   : > { %v4782_v18 = vpop.f32.mrb[38].mxu0  ;;  %5234 = vmatpush3.bf16.msra.mxu0 %v5231_v5  ;;  %v1158_v14 = vpop.f32.mrb[38].mxu1  ;;  %v1276_v5 = vadd.f32 %v6636_v3, %v6749_v16 }
 0x15a   : > { %v7055_v33 = vadd.f32 %v4782_v18, %v1274_v50  ;;  %v1443_v62 = vpop.f32.mrb[39].mxu0  ;;  %2457 = vmatmul.mubr.f32.gmra.mrb[144].mxu0 %v7058_v20  ;;  %5268 = vmatprep.subr.bf16.mxu0 %v7038_v17  ;;  %v7062_v26 = vadd.f32 %v1158_v14, %v901_v12  ;;  %v7064_v38 = vpop.f32.mrb[39].mxu1  ;;  %v7080_v12 = vld [vmem:[%s5735_s11 + $0x81] sm:$0xff] }
 0x15b   : > { %v7066_v39 = vadd.f32 %v1443_v62, %v1273_v42  ;;  %2907 = vmatmul.mubr.f32.gmra.mrb[144].mxu1 %v5377_v63  ;;  %2462 = vmatprep.mubr.f32.mxu0 %v8471_v35  ;;  %v1277_v62 = vadd.f32 %v6636_v3, %v6774_v34  ;;  %v903_v63 = vadd.f32 %v6756_v59, %v6636_v3  ;;  %v5381_v34 = vld [vmem:[%s5735_s11 + $0x92] sm:$0xff] }
 0x15c   : > { %2912 = vmatprep.mubr.f32.mxu1 %v8471_v35  ;;  %v1280_v59 = vadd.f32 %v6636_v3, %v6873_v25 }
 0x15d   : > { %v4785_v11 = vpop.f32.mrb[40].mxu0  ;;  %v1164_v19 = vpop.f32.mrb[40].mxu1 }
 0x15e   : > { %v7077_v50 = vadd.f32 %v4785_v11, %v1276_v5  ;;  %v1453_v42 = vpop.f32.mrb[41].mxu0  ;;  %2463 = vmatmul.mubr.f32.gmra.mrb[146].mxu0 %v7080_v12  ;;  %v7083_v18 = vadd.f32 %v1164_v19, %v902_v27  ;;  %v7085_v16 = vpop.f32.mrb[41].mxu1  ;;  %v7101_v19 = vld [vmem:[%s5735_s11 + $0x91] sm:$0xff] }
 0x15f   : > { %v7087_v14 = vadd.f32 %v1453_v42, %v1275_v29  ;;  %2913 = vmatmul.mubr.f32.gmra.mrb[146].mxu1 %v5379_v28  ;;  %2468 = vmatprep.mubr.f32.mxu0 %v8471_v35  ;;  %8503 = vst [vmem:[#allocation11_spill] sm:$0xff] %v7101_v19 }
 0x160   : > { %8502 = vst [vmem:[#allocation17_spill] sm:$0xff] %v7083_v18  ;;  %2918 = vmatprep.mubr.f32.mxu1 %v8471_v35 }
 0x161   : > { %v4788_v5 = vpop.f32.mrb[42].mxu0  ;;  %v1170_v27 = vpop.f32.mrb[42].mxu1 }
 0x162   : > { %v7098_v29 = vadd.f32 %v4788_v5, %v1278_v53  ;;  %v1463_v11 = vpop.f32.mrb[43].mxu0  ;;  %2469 = vmatmul.mubr.f32.gmra.mrb[148].mxu0 %v7101_v19  ;;  %v7104_v42 = vadd.f32 %v1170_v27, %v903_v63  ;;  %v7106_v10 = vpop.f32.mrb[43].mxu1  ;;  %v904_v53 = vadd.f32 %v6636_v3, %v6795_v2  ;;  %v1279_v63 = vadd.f32 %v6636_v3, %v6838_v43  ;;  %v5383_v2 = vld [vmem:[%s5735_s11 + $0x9a] sm:$0xff]  ;;  %v5385_v19 = vld [vmem:[%s5735_s11 + $0xaa] sm:$0xff] }
 0x163   : > { %v7108_v28 = vadd.f32 %v1463_v11, %v1277_v62  ;;  %2919 = vmatmul.mubr.f32.gmra.mrb[148].mxu1 %v5381_v34  ;;  %2474 = vmatprep.mubr.f32.mxu0 %v8471_v35  ;;  %v1282_v43 = vadd.f32 %v6636_v3, %v6943_v46 }
 0x164   : > { %8504 = vst [vmem:[#allocation18_spill] sm:$0xff] %v7104_v42  ;;  %2924 = vmatprep.mubr.f32.mxu1 %v8471_v35  ;;  %v7122_v42 = vld [vmem:[%s5735_s11 + $0x99] sm:$0xff] }
 0x165   : > { %v4791_v5 = vpop.f32.mrb[44].mxu0  ;;  %v1176_v27 = vpop.f32.mrb[44].mxu1  ;;  %8505 = vst [vmem:[#allocation19_spill] sm:$0xff] %v7122_v42 }
 0x166   : > { %v7119_v62 = vadd.f32 %v4791_v5, %v1280_v59  ;;  %v1473_v11 = vpop.f32.mrb[45].mxu0  ;;  %2475 = vmatmul.mubr.f32.gmra.mrb[150].mxu0 %v7122_v42  ;;  %v7125_v34 = vadd.f32 %v1176_v27, %v904_v53  ;;  %v7127_v25 = vpop.f32.mrb[45].mxu1  ;;  %v905_v59 = vadd.f32 %v6786_v32, %v6636_v3  ;;  %v1281_v53 = vadd.f32 %v6636_v3, %v6908_v40 }
 0x167   : > { %v7129_v18 = vadd.f32 %v1473_v11, %v1279_v63  ;;  %2925 = vmatmul.mubr.f32.gmra.mrb[150].mxu1 %v5383_v2  ;;  %2480 = vmatprep.mubr.f32.mxu0 %v8471_v35  ;;  %v1284_v32 = vadd.f32 %v6636_v3, %v7013_v24  ;;  %v906_v40 = vadd.f32 %v6636_v3, %v6828_v41 }
 0x168   : > { %8506 = vst [vmem:[#allocation20_spill] sm:$0xff] %v7125_v34  ;;  %2930 = vmatprep.mubr.f32.mxu1 %v8471_v35  ;;  %v7143_v34 = vld [vmem:[%s5735_s11 + $0xa9] sm:$0xff]  ;;  %v1286_v41 = vadd.f32 %v6636_v3, %v7064_v38 }
 0x169   : > { %v4794_v5 = vpop.f32.mrb[46].mxu0  ;;  %v1182_v27 = vpop.f32.mrb[46].mxu1  ;;  %8507 = vst [vmem:[#allocation21_spill] sm:$0xff] %v7143_v34 }
 0x16a   : > { %v7140_v63 = vadd.f32 %v4794_v5, %v1282_v43  ;;  %v1483_v11 = vpop.f32.mrb[47].mxu0  ;;  %2481 = vmatmul.mubr.f32.gmra.mrb[152].mxu0 %v7143_v34  ;;  %v7146_v2 = vadd.f32 %v1182_v27, %v905_v59  ;;  %v1184_v46 = vpop.f32.mrb[47].mxu1  ;;  %v1283_v43 = vadd.f32 %v6636_v3, %v6980_v6  ;;  %v5387_v34 = vld [vmem:[%s5735_s11 + $0xb2] sm:$0xff]  ;;  %v907_v6 = vadd.f32 %v6819_v21, %v6636_v3 }
 0x16b   : > { %v7148_v42 = vadd.f32 %v1483_v11, %v1281_v53  ;;  %2931 = vmatmul.mubr.f32.gmra.mrb[152].mxu1 %v5385_v19  ;;  %2486 = vmatprep.mubr.f32.mxu0 %v8471_v35  ;;  %v7162_v11 = vld [vmem:[%s5735_s11 + $0xb1] sm:$0xff]  ;;  %v1288_v21 = vadd.f32 %v6636_v3, %v7106_v10 }
 0x16c   : > { %8508 = vst [vmem:[#allocation22_spill] sm:$0xff] %v7146_v2  ;;  %2936 = vmatprep.mubr.f32.mxu1 %v8471_v35  ;;  %8509 = vst [vmem:[#allocation23_spill] sm:$0xff] %v7162_v11 }
 0x16d   : > { %v4797_v59 = vpop.f32.mrb[48].mxu0  ;;  %v1188_v5 = vpop.f32.mrb[48].mxu1 }
 0x16e   : > { %v7159_v53 = vadd.f32 %v4797_v59, %v1284_v32  ;;  %v1493_v27 = vpop.f32.mrb[49].mxu0  ;;  %2487 = vmatmul.mubr.f32.gmra.mrb[154].mxu0 %v7162_v11  ;;  %v7165_v19 = vadd.f32 %v1188_v5, %v906_v40  ;;  %v1190_v24 = vpop.f32.mrb[49].mxu1  ;;  %v1285_v32 = vadd.f32 %v6636_v3, %v7042_v37  ;;  %v5389_v11 = vld [vmem:[%s5735_s11 + $0xc2] sm:$0xff]  ;;  %v908_v37 = vadd.f32 %v6636_v3, %v6863_v54 }
 0x16f   : > { %v7167_v2 = vadd.f32 %v1493_v27, %v1283_v43  ;;  %2937 = vmatmul.mubr.f32.gmra.mrb[154].mxu1 %v5387_v34  ;;  %2492 = vmatprep.mubr.f32.mxu0 %v8471_v35  ;;  %v7181_v27 = vld [vmem:[%s5735_s11 + $0xc1] sm:$0xff]  ;;  %v1290_v54 = vadd.f32 %v6636_v3, %v1184_v46 }
 0x170   : > { %8510 = vst [vmem:[#allocation24_spill] sm:$0xff] %v7165_v19  ;;  %2942 = vmatprep.mubr.f32.mxu1 %v8471_v35  ;;  %8511 = vst [vmem:[#allocation25_spill] sm:$0xff] %v7181_v27 }
 0x171   : > { %v4800_v40 = vpop.f32.mrb[50].mxu0  ;;  %v1194_v59 = vpop.f32.mrb[50].mxu1 }
 0x172   : > { %v7178_v43 = vadd.f32 %v4800_v40, %v1286_v41  ;;  %v1503_v5 = vpop.f32.mrb[51].mxu0  ;;  %2493 = vmatmul.mubr.f32.gmra.mrb[156].mxu0 %v7181_v27  ;;  %v7184_v34 = vadd.f32 %v1194_v59, %v907_v6  ;;  %v1196_v38 = vpop.f32.mrb[51].mxu1  ;;  %v1287_v41 = vadd.f32 %v6636_v3, %v7085_v16  ;;  %v5391_v27 = vld [vmem:[%s5735_s11 + $0xca] sm:$0xff]  ;;  %v909_v16 = vadd.f32 %v6851_v7, %v6636_v3 }
 0x173   : > { %v7186_v19 = vadd.f32 %v1503_v5, %v1285_v32  ;;  %2943 = vmatmul.mubr.f32.gmra.mrb[156].mxu1 %v5389_v11  ;;  %2498 = vmatprep.mubr.f32.mxu0 %v8471_v35  ;;  %v7200_v5 = vld [vmem:[%s5735_s11 + $0xc9] sm:$0xff]  ;;  %v1292_v7 = vadd.f32 %v6636_v3, %v1196_v38 }
 0x174   : > { %8512 = vst [vmem:[#allocation26_spill] sm:$0xff] %v7184_v34  ;;  %2948 = vmatprep.mubr.f32.mxu1 %v8471_v35  ;;  %8513 = vst [vmem:[#allocation27_spill] sm:$0xff] %v7200_v5 }
 0x175   : > { %v4803_v6 = vpop.f32.mrb[52].mxu0  ;;  %v1200_v40 = vpop.f32.mrb[52].mxu1 }
 0x176   : > { %v7197_v32 = vadd.f32 %v4803_v6, %v1288_v21  ;;  %v1513_v59 = vpop.f32.mrb[53].mxu0  ;;  %2499 = vmatmul.mubr.f32.gmra.mrb[158].mxu0 %v7200_v5  ;;  %v7203_v11 = vadd.f32 %v1200_v40, %v908_v37  ;;  %v1202_v10 = vpop.f32.mrb[53].mxu1  ;;  %v1289_v21 = vadd.f32 %v6636_v3, %v7127_v25  ;;  %v5393_v5 = vld [vmem:[%s5735_s11 + $0xda] sm:$0xff]  ;;  %v910_v25 = vadd.f32 %v6636_v3, %v6898_v31 }
 0x177   : > { %v7205_v34 = vadd.f32 %v1513_v59, %v1287_v41  ;;  %2949 = vmatmul.mubr.f32.gmra.mrb[158].mxu1 %v5391_v27  ;;  %2504 = vmatprep.mubr.f32.mxu0 %v8471_v35  ;;  %v7218_v59 = vld [vmem:[%s5735_s11 + $0xd9] sm:$0xff] }
 0x178   : > { %8514 = vst [vmem:[#allocation28_spill] sm:$0xff] %v7203_v11  ;;  %2954 = vmatprep.mubr.f32.mxu1 %v8471_v35  ;;  %8515 = vst [vmem:[#allocation29_spill] sm:$0xff] %v7218_v59 }
 0x179   : > { %v4806_v37 = vpop.f32.mrb[54].mxu0  ;;  %v1206_v6 = vpop.f32.mrb[54].mxu1 }
 0x17a   : > { %v7215_v40 = vadd.f32 %v4806_v37, %v1290_v54  ;;  %v1523_v41 = vpop.f32.mrb[55].mxu0  ;;  %2505 = vmatmul.mubr.f32.gmra.mrb[160].mxu0 %v7218_v59  ;;  %v7221_v27 = vadd.f32 %v1206_v6, %v909_v16  ;;  %v1208_v46 = vpop.f32.mrb[55].mxu1  ;;  %v1291_v54 = vadd.f32 %v6636_v3, %v1190_v24  ;;  %v7243_v59 = vld [vmem:[%s5735_s11 + $0xe2] sm:$0xff]  ;;  %v911_v24 = vadd.f32 %v6886_v55, %v6636_v3 }
 0x17b   : > { %v7223_v11 = vadd.f32 %v1523_v41, %v1289_v21  ;;  %2955 = vmatmul.mubr.f32.gmra.mrb[160].mxu1 %v5393_v5  ;;  %2510 = vmatprep.mubr.f32.mxu0 %v8471_v35  ;;  %v7235_v41 = vld [vmem:[%s5735_s11 + $0xe1] sm:$0xff]  ;;  %8519 = vst [vmem:[#allocation33_spill] sm:$0xff] %v7243_v59  ;;  %v1294_v31 = vadd.f32 %v6636_v3, %v1208_v46 }
 0x17c   : > { %8516 = vst [vmem:[#allocation30_spill] sm:$0xff] %v7221_v27  ;;  %2960 = vmatprep.mubr.f32.mxu1 %v8471_v35  ;;  %8517 = vst [vmem:[#allocation31_spill] sm:$0xff] %v7235_v41 }
 0x17d   : > { %v4809_v37 = vpop.f32.mrb[56].mxu0  ;;  %v1212_v16 = vpop.f32.mrb[56].mxu1 }
 0x17e   : > { %v7232_v6 = vadd.f32 %v4809_v37, %v1292_v7  ;;  %v1533_v21 = vpop.f32.mrb[57].mxu0  ;;  %2511 = vmatmul.mubr.f32.gmra.mrb[162].mxu0 %v7235_v41  ;;  %v7238_v5 = vadd.f32 %v1212_v16, %v910_v25  ;;  %v1214_v38 = vpop.f32.mrb[57].mxu1  ;;  %v1293_v7 = vadd.f32 %v6636_v3, %v1202_v10  ;;  %v7263_v41 = vld [vmem:[%s5735_s11 + $0xf2] sm:$0xff]  ;;  %v912_v10 = vadd.f32 %v6636_v3, %v6933_v60  ;;  %v7283_v60 = vld [vmem:[%s5735_s11 + $0xfa] sm:$0xff] }
 0x17f   : > { %v7240_v27 = vadd.f32 %v1533_v21, %v1291_v54  ;;  %2961 = vmatmul.mubr.f32.gmra.mrb[162].mxu1 %v7243_v59  ;;  %2516 = vmatprep.mubr.f32.mxu0 %v8471_v35  ;;  %v7255_v21 = vld [vmem:[%s5735_s11 + $0xf1] sm:$0xff]  ;;  %8521 = vst [vmem:[#allocation35_spill] sm:$0xff] %v7263_v41  ;;  %8524 = vst [vmem:[#allocation38_spill] sm:$0xff] %v7283_v60 }
 0x180   : > { %8518 = vst [vmem:[#allocation32_spill] sm:$0xff] %v7238_v5  ;;  %2966 = vmatprep.mubr.f32.mxu1 %v8471_v35 }
 0x181   : > { %v4812_v25 = vpop.f32.mrb[58].mxu0  ;;  %v1218_v37 = vpop.f32.mrb[58].mxu1 }
 0x182   : > { %v7252_v54 = vadd.f32 %v4812_v25, %v1294_v31  ;;  %v1543_v16 = vpop.f32.mrb[59].mxu0  ;;  %2517 = vmatmul.mubr.f32.gmra.mrb[164].mxu0 %v7255_v21  ;;  %v7258_v59 = vadd.f32 %v1218_v37, %v911_v24  ;;  %v1220_v46 = vpop.f32.mrb[59].mxu1  ;;  %v1295_v31 = vadd.f32 %v6636_v3, %v1214_v38  ;;  %v913_v38 = vadd.f32 %v6921_v45, %v6636_v3 }
 0x183   : > { %v7260_v5 = vadd.f32 %v1543_v16, %v1293_v7  ;;  %2967 = vmatmul.mubr.f32.gmra.mrb[164].mxu1 %v7263_v41  ;;  %2522 = vmatprep.mubr.f32.mxu0 %v8471_v35  ;;  %v1296_v55 = vadd.f32 %v6636_v3, %v1220_v46  ;;  %v7275_v16 = vld [vmem:[%s5735_s11 + $0xf9] sm:$0xff] }
 0x184   : > { %8520 = vst [vmem:[#allocation34_spill] sm:$0xff] %v7258_v59  ;;  %2972 = vmatprep.mubr.f32.mxu1 %v8471_v35 }
 0x185   : > { %v4815_v24 = vpop.f32.mrb[60].mxu0  ;;  %v1224_v7 = vpop.f32.mrb[60].mxu1 }
 0x186   : > { %v7272_v25 = vadd.f32 %v4815_v24, %v1296_v55  ;;  %v1553_v37 = vpop.f32.mrb[61].mxu0  ;;  %2523 = vmatmul.mubr.f32.gmra.mrb[166].mxu0 %v7275_v16  ;;  %v7278_v41 = vadd.f32 %v1224_v7, %v912_v10  ;;  %v1226_v46 = vpop.f32.mrb[61].mxu1  ;;  %v7293_v7 = vld [vmem:[%s5735_s11 + $0x109] sm:$0xff] }
 0x187   : > { %v7280_v59 = vadd.f32 %v1553_v37, %v1295_v31  ;;  %2973 = vmatmul.mubr.f32.gmra.mrb[166].mxu1 %v7283_v60  ;;  %2528 = vmatprep.mubr.f32.mxu0 %v8471_v35  ;;  %v1297_v55 = vadd.f32 %v6636_v3, %v1226_v46 }
 0x188   : > { %8522 = vst [vmem:[#allocation36_spill] sm:$0xff] %v7272_v25  ;;  %8523 = vst [vmem:[#allocation37_spill] sm:$0xff] %v7278_v41  ;;  %2978 = vmatprep.mubr.f32.mxu1 %v8471_v35  ;;  %v7301_v25 = vld [vmem:[%s5735_s11 + $0x10a] sm:$0xff] }
 0x189   : > { %v4818_v10 = vpop.f32.mrb[62].mxu0  ;;  %v1230_v24 = vpop.f32.mrb[62].mxu1  ;;  %8526 = vst [vmem:[#allocation40_spill] sm:$0xff] %v7301_v25 }
 0x18a   : > { %v1563_v31 = vpop.f32.mrb[63].mxu0  ;;  %2529 = vmatmul.mubr.f32.gmra.mrb[168].mxu0 %v7293_v7  ;;  %v7296_v37 = vadd.f32 %v1230_v24, %v913_v38  ;;  %v1232_v60 = vpop.f32.mrb[63].mxu1 }
 0x18b   : > { %v7298_v41 = vadd.f32 %v1563_v31, %v1297_v55  ;;  %2979 = vmatmul.mubr.f32.gmra.mrb[168].mxu1 %v7301_v25  ;;  %2534 = vmatprep.mubr.f32.mxu0 %v8471_v35  ;;  %v1298_v45 = vadd.f32 %v6636_v3, %v1232_v60  ;;  %v7319_v3 = vld [vmem:[%s5735_s11 + $0x112] sm:$0xff] }
 0x18c   : > { %8525 = vst [vmem:[#allocation39_spill] sm:$0xff] %v7296_v37  ;;  %2984 = vmatprep.mubr.f32.mxu1 %v8471_v35  ;;  %v7311_v37 = vld [vmem:[%s5735_s11 + $0x111] sm:$0xff]  ;;  %8528 = vst [vmem:[#allocation42_spill] sm:$0xff] %v7319_v3 }
 0x18d   : > { %v1735_v46 = vpop.f32.mrb[64].mxu0  ;;  %v2153_v24 = vpop.f32.mrb[64].mxu1  ;;  %v7316_v31 = vadd.f32 %v4818_v10, %v1298_v45 }
 0x18e   : > { %v1926_v38 = vadd.f32 %v1735_v46, %v6647_v44  ;;  %2535 = vmatmul.mubr.f32.gmra.mrb[170].mxu0 %v7311_v37  ;;  %v7314_v55 = vpop.f32.mrb[65].mxu0  ;;  %v2155_v25 = vpop.f32.mrb[65].mxu1 }
 0x18f   : > { %8527 = vst [vmem:[#allocation41_spill] sm:$0xff] %v7316_v31  ;;  %2985 = vmatmul.mubr.f32.gmra.mrb[170].mxu1 %v7319_v3  ;;  %2540 = vmatprep.mubr.f32.mxu0 %v8471_v35  ;;  %v7324_v44 = vadd.f32 %v2155_v25, %v6982_v30  ;;  %v7332_v31 = vld [vmem:[%s5735_s11 + $0x121] sm:$0xff] }
 0x190   : > { %v2601_v60 = vadd.f32 %v2153_v24, %v1926_v38  ;;  %2990 = vmatprep.mubr.f32.mxu1 %v8471_v35  ;;  %v7338_v25 = vld [vmem:[%s5735_s11 + $0x122] sm:$0xff] }
 0x191   : > { %v1741_v46 = vpop.f32.mrb[66].mxu0  ;;  %v2159_v45 = vpop.f32.mrb[66].mxu1  ;;  %8530 = vst [vmem:[#allocation44_spill] sm:$0xff] %v7338_v25 }
 0x192   : > { %4113 = vst [vmem:[%s7327_s9] sm:$0xff] %v2601_v60  ;;  %v1927_v10 = vadd.f32 %v1741_v46, %v6650_v56  ;;  %2541 = vmatmul.mubr.f32.gmra.mrb[172].mxu0 %v7332_v31  ;;  %v7335_v38 = vpop.f32.mrb[67].mxu0  ;;  %v2161_v30 = vpop.f32.mrb[67].mxu1 }
 0x193   : > { %8529 = vst [vmem:[#allocation43_spill] sm:$0xff] %v7335_v38  ;;  %2991 = vmatmul.mubr.f32.gmra.mrb[172].mxu1 %v7338_v25  ;;  %2546 = vmatprep.mubr.f32.mxu0 %v8471_v35  ;;  %v7343_v60 = vadd.f32 %v2161_v30, %v6966_v1  ;;  %v7349_v38 = vld [vmem:[%s5735_s11 + $0x129] sm:$0xff] }
 0x194   : > { %v2602_v24 = vadd.f32 %v2159_v45, %v1927_v10  ;;  %2996 = vmatprep.mubr.f32.mxu1 %v8471_v35  ;;  %v7355_v45 = vld [vmem:[%s5735_s11 + $0x12a] sm:$0xff] }
 0x195   : > { %v1747_v56 = vpop.f32.mrb[68].mxu0  ;;  %v2165_v3 = vpop.f32.mrb[68].mxu1  ;;  %8532 = vst [vmem:[#allocation46_spill] sm:$0xff] %v7355_v45 }
 0x196   : > { %4115 = vst [vmem:[%s7327_s9 + $0x10] sm:$0xff] %v2602_v24  ;;  %v1928_v46 = vadd.f32 %v1747_v56, %v6659_v9  ;;  %2547 = vmatmul.mubr.f32.gmra.mrb[174].mxu0 %v7349_v38  ;;  %v7352_v25 = vpop.f32.mrb[69].mxu0  ;;  %v2167_v10 = vpop.f32.mrb[69].mxu1 }
 0x197   : > { %8531 = vst [vmem:[#allocation45_spill] sm:$0xff] %v7352_v25  ;;  %2997 = vmatmul.mubr.f32.gmra.mrb[174].mxu1 %v7355_v45  ;;  %2552 = vmatprep.mubr.f32.mxu0 %v8471_v35  ;;  %v7360_v30 = vadd.f32 %v2167_v10, %v7015_v48  ;;  %v7366_v25 = vld [vmem:[%s5735_s11 + $0x139] sm:$0xff] }
 0x198   : > { %v2603_v1 = vadd.f32 %v2165_v3, %v1928_v46  ;;  %3002 = vmatprep.mubr.f32.mxu1 %v8471_v35  ;;  %v7372_v46 = vld [vmem:[%s5735_s11 + $0x13a] sm:$0xff] }
 0x199   : > { %v1753_v9 = vpop.f32.mrb[70].mxu0  ;;  %v2171_v56 = vpop.f32.mrb[70].mxu1  ;;  %8534 = vst [vmem:[#allocation48_spill] sm:$0xff] %v7372_v46 }
 0x19a   : > { %4117 = vst [vmem:[%s7327_s9 + $0x40] sm:$0xff] %v2603_v1  ;;  %v1929_v24 = vadd.f32 %v1753_v9, %v6668_v36  ;;  %2553 = vmatmul.mubr.f32.gmra.mrb[176].mxu0 %v7366_v25  ;;  %v7369_v45 = vpop.f32.mrb[71].mxu0  ;;  %v2173_v3 = vpop.f32.mrb[71].mxu1 }
 0x19b   : > { %8533 = vst [vmem:[#allocation47_spill] sm:$0xff] %v7369_v45  ;;  %3003 = vmatmul.mubr.f32.gmra.mrb[176].mxu1 %v7372_v46  ;;  %2558 = vmatprep.mubr.f32.mxu0 %v8471_v35  ;;  %v7377_v10 = vadd.f32 %v2173_v3, %v7005_v0  ;;  %v7383_v45 = vld [vmem:[%s5735_s11 + $0x141] sm:$0xff] }
 0x19c   : > { %v2604_v48 = vadd.f32 %v2171_v56, %v1929_v24  ;;  %3008 = vmatprep.mubr.f32.mxu1 %v8471_v35  ;;  %v7389_v56 = vld [vmem:[%s5735_s11 + $0x142] sm:$0xff] }
 0x19d   : > { %v1759_v36 = vpop.f32.mrb[72].mxu0  ;;  %v2177_v9 = vpop.f32.mrb[72].mxu1  ;;  %8536 = vst [vmem:[#allocation50_spill] sm:$0xff] %v7389_v56 }
 0x19e   : > { %4119 = vst [vmem:[%s7327_s9 + $0x50] sm:$0xff] %v2604_v48  ;;  %v1930_v1 = vadd.f32 %v1759_v36, %v6677_v49  ;;  %2559 = vmatmul.mubr.f32.gmra.mrb[178].mxu0 %v7383_v45  ;;  %v7386_v46 = vpop.f32.mrb[73].mxu0  ;;  %v2179_v24 = vpop.f32.mrb[73].mxu1 }
 0x19f   : > { %8535 = vst [vmem:[#allocation49_spill] sm:$0xff] %v7386_v46  ;;  %3009 = vmatmul.mubr.f32.gmra.mrb[178].mxu1 %v7389_v56  ;;  %2564 = vmatprep.mubr.f32.mxu0 %v8471_v35  ;;  %v7394_v3 = vadd.f32 %v2179_v24, %v7044_v4  ;;  %v7400_v46 = vld [vmem:[%s5735_s11 + $0x151] sm:$0xff] }
 0x1a0   : > { %v2605_v0 = vadd.f32 %v2177_v9, %v1930_v1  ;;  %3014 = vmatprep.mubr.f32.mxu1 %v8471_v35  ;;  %v7406_v9 = vld [vmem:[%s5735_s11 + $0x152] sm:$0xff] }
 0x1a1   : > { %v1765_v49 = vpop.f32.mrb[74].mxu0  ;;  %v2183_v36 = vpop.f32.mrb[74].mxu1  ;;  %8538 = vst [vmem:[#allocation52_spill] sm:$0xff] %v7406_v9 }
 0x1a2   : > { %4121 = vst [vmem:[%s7327_s9 + $0x80] sm:$0xff] %v2605_v0  ;;  %v1931_v48 = vadd.f32 %v1765_v49, %v6688_v15  ;;  %2565 = vmatmul.mubr.f32.gmra.mrb[180].mxu0 %v7400_v46  ;;  %v7403_v56 = vpop.f32.mrb[75].mxu0  ;;  %v2185_v1 = vpop.f32.mrb[75].mxu1 }
 0x1a3   : > { %8537 = vst [vmem:[#allocation51_spill] sm:$0xff] %v7403_v56  ;;  %3015 = vmatmul.mubr.f32.gmra.mrb[180].mxu1 %v7406_v9  ;;  %2570 = vmatprep.mubr.f32.mxu0 %v8471_v35  ;;  %v7411_v24 = vadd.f32 %v2185_v1, %v7032_v52  ;;  %v7417_v56 = vld [vmem:[%s5735_s11 + $0x159] sm:$0xff] }
 0x1a4   : > { %v2606_v4 = vadd.f32 %v2183_v36, %v1931_v48  ;;  %3020 = vmatprep.mubr.f32.mxu1 %v8471_v35  ;;  %v7423_v36 = vld [vmem:[%s5735_s11 + $0x15a] sm:$0xff] }
 0x1a5   : > { %v1771_v15 = vpop.f32.mrb[76].mxu0  ;;  %v2189_v49 = vpop.f32.mrb[76].mxu1  ;;  %8540 = vst [vmem:[#allocation54_spill] sm:$0xff] %v7423_v36 }
 0x1a6   : > { %4123 = vst [vmem:[%s7327_s9 + $0x90] sm:$0xff] %v2606_v4  ;;  %v1932_v0 = vadd.f32 %v1771_v15, %v6701_v51  ;;  %2571 = vmatmul.mubr.f32.gmra.mrb[182].mxu0 %v7417_v56  ;;  %v7420_v9 = vpop.f32.mrb[77].mxu0  ;;  %v2191_v48 = vpop.f32.mrb[77].mxu1 }
 0x1a7   : > { %8539 = vst [vmem:[#allocation53_spill] sm:$0xff] %v7420_v9  ;;  %3021 = vmatmul.mubr.f32.gmra.mrb[182].mxu1 %v7423_v36  ;;  %2576 = vmatprep.mubr.f32.mxu0 %v8471_v35  ;;  %v7428_v1 = vadd.f32 %v2191_v48, %v7066_v39  ;;  %v7434_v9 = vld [vmem:[%s5735_s11 + $0x169] sm:$0xff] }
 0x1a8   : > { %v2607_v52 = vadd.f32 %v2189_v49, %v1932_v0  ;;  %3026 = vmatprep.mubr.f32.mxu1 %v8471_v35  ;;  %v7440_v49 = vld [vmem:[%s5735_s11 + $0x16a] sm:$0xff] }
 0x1a9   : > { %v1777_v51 = vpop.f32.mrb[78].mxu0  ;;  %v2195_v15 = vpop.f32.mrb[78].mxu1  ;;  %8542 = vst [vmem:[#allocation56_spill] sm:$0xff] %v7440_v49 }
 0x1aa   : > { %4125 = vst [vmem:[%s7327_s9 + $0xc0] sm:$0xff] %v2607_v52  ;;  %v1933_v4 = vadd.f32 %v1777_v51, %v6715_v61  ;;  %2577 = vmatmul.mubr.f32.gmra.mrb[184].mxu0 %v7434_v9  ;;  %v7437_v36 = vpop.f32.mrb[79].mxu0  ;;  %v2197_v0 = vpop.f32.mrb[79].mxu1 }
 0x1ab   : > { %8541 = vst [vmem:[#allocation55_spill] sm:$0xff] %v7437_v36  ;;  %3027 = vmatmul.mubr.f32.gmra.mrb[184].mxu1 %v7440_v49  ;;  %2582 = vmatprep.mubr.f32.mxu0 %v8471_v35  ;;  %v7445_v48 = vadd.f32 %v2197_v0, %v7055_v33  ;;  %v7451_v36 = vld [vmem:[%s5735_s11 + $0x171] sm:$0xff] }
 0x1ac   : > { %v2608_v39 = vadd.f32 %v2195_v15, %v1933_v4  ;;  %3032 = vmatprep.mubr.f32.mxu1 %v8471_v35  ;;  %v7457_v15 = vld [vmem:[%s5735_s11 + $0x172] sm:$0xff] }
 0x1ad   : > { %8543 = vst [vmem:[#allocation57_spill] sm:$0xff] %v7445_v48  ;;  %v1783_v61 = vpop.f32.mrb[80].mxu0  ;;  %v2201_v51 = vpop.f32.mrb[80].mxu1  ;;  %8545 = vst [vmem:[#allocation59_spill] sm:$0xff] %v7457_v15  ;;  %v7471_v48 = vld [vmem:[%s6725_s13 + $0x1] sm:$0xff] }
 0x1ae   : > { %4127 = vst [vmem:[%s7327_s9 + $0xd0] sm:$0xff] %v2608_v39  ;;  %v1934_v52 = vadd.f32 %v1783_v61, %v6733_v23  ;;  %2583 = vmatmul.mubr.f32.gmra.mrb[186].mxu0 %v7451_v36  ;;  %v7454_v49 = vpop.f32.mrb[81].mxu0  ;;  %v2203_v4 = vpop.f32.mrb[81].mxu1  ;;  %v7466_v23 = vld [vmem:[%s6725_s13 + $0x2] sm:$0xff]  ;;  %8548 = vst [vmem:[#allocation62_spill] sm:$0xff] %v7471_v48 }
 0x1af   : > { %8544 = vst [vmem:[#allocation58_spill] sm:$0xff] %v7454_v49  ;;  %3033 = vmatmul.mubr.f32.gmra.mrb[186].mxu1 %v7457_v15  ;;  %2588 = vmatprep.mubr.f32.mxu0 %v8471_v35  ;;  %v7462_v0 = vadd.f32 %v2203_v4, %v7087_v14  ;;  %8547 = vst [vmem:[#allocation61_spill] sm:$0xff] %v7466_v23  ;;  %v5423_v15 = vld [vmem:[%s5735_s11 + $0x38] sm:$0xff] }
 0x1b0   : > { %v2609_v33 = vadd.f32 %v2201_v51, %v1934_v52  ;;  %3038 = vmatprep.mubr.f32.mxu1 %v8471_v35 }
 0x1b1   : > { %8546 = vst [vmem:[#allocation60_spill] sm:$0xff] %v7462_v0  ;;  %v1789_v39 = vpop.f32.mrb[82].mxu0  ;;  %v2207_v49 = vpop.f32.mrb[82].mxu1  ;;  %v7488_v0 = vld [vmem:[%s6725_s13 + $0x9] sm:$0xff] }
 0x1b2   : > { %4129 = vst [vmem:[%s7327_s9 + $0x100] sm:$0xff] %v2609_v33  ;;  %v1935_v61 = vadd.f32 %v1789_v39, %v6747_v13  ;;  %2589 = vmatmul.mubr.f32.gmra.mrb[188].mxu0 %v7471_v48  ;;  %v7474_v52 = vpop.f32.mrb[83].mxu0  ;;  %v2209_v14 = vpop.f32.mrb[83].mxu1  ;;  %v7483_v13 = vld [vmem:[%s6725_s13 + $0xa] sm:$0xff]  ;;  %8551 = vst [vmem:[#allocation65_spill] sm:$0xff] %v7488_v0 }
 0x1b3   : > { %8549 = vst [vmem:[#allocation63_spill] sm:$0xff] %v7474_v52  ;;  %3039 = vmatmul.mubr.f32.gmra.mrb[188].mxu1 %v7466_v23  ;;  %2594 = vmatprep.mubr.f32.mxu0 %v8471_v35  ;;  %v7479_v4 = vadd.f32 %v2209_v14, %v7077_v50  ;;  %v3842_v50 = vld [vmem:[%s8417_s3 + $0x178] sm:$0xff] }
 0x1b4   : > { %v2610_v51 = vadd.f32 %v2207_v49, %v1935_v61  ;;  %3044 = vmatprep.mubr.f32.mxu1 %v8471_v35  ;;  %v3843_v49 = vld [vmem:[%s8417_s3 + $0x1f8] sm:$0xff] }
 0x1b5   : > { %8550 = vst [vmem:[#allocation64_spill] sm:$0xff] %v7479_v4  ;;  %v1795_v33 = vpop.f32.mrb[84].mxu0  ;;  %v2213_v52 = vpop.f32.mrb[84].mxu1 }
 0x1b6   : > { %4131 = vst [vmem:[%s7327_s9 + $0x110] sm:$0xff] %v2610_v51  ;;  %v1936_v39 = vadd.f32 %v1795_v33, %v6772_v22  ;;  %2595 = vmatmul.mubr.f32.gmra.mrb[190].mxu0 %v7488_v0  ;;  %v7491_v23 = vpop.f32.mrb[85].mxu0  ;;  %v2215_v61 = vpop.f32.mrb[85].mxu1  ;;  %v5422_v22 = vld [vmem:[%s5735_s11 + $0x30] sm:$0xff] }
 0x1b7   : > { %8552 = vst [vmem:[#allocation66_spill] sm:$0xff] %v7491_v23  ;;  %3045 = vmatmul.mubr.f32.gmra.mrb[190].mxu1 %v7483_v13  ;;  %4851 = vmatprep.mubr.f32.mxu0 %v5422_v22  ;;  %v7502_v51 = vadd.f32 %v2215_v61, %v7108_v28  ;;  %v5271_v23 = vpack.c.bf16 %v3843_v49, %v3842_v50  ;;  %v3845_v28 = vld [vmem:[%s8417_s3 + $0x2f8] sm:$0xff]  ;;  %v5424_v50 = vld [vmem:[%s5735_s11 + $0x48] sm:$0xff]  ;;  %v8554_v22 = vld [vmem:[#allocation12_spill] sm:$0xff] }
 0x1b8   : > { %v2611_v14 = vadd.f32 %v2213_v52, %v1936_v39  ;;  %3550 = vmatprep.mubr.f32.mxu1 %v8471_v35  ;;  %v3844_v52 = vld [vmem:[%s8417_s3 + $0x278] sm:$0xff] }
 0x1b9   : > { %v1801_v33 = vpop.f32.mrb[86].mxu0  ;;  %v2219_v0 = vpop.f32.mrb[86].mxu1  ;;  %v5275_v61 = vpack.c.bf16 %v3845_v28, %v3844_v52  ;;  %v5426_v52 = vld [vmem:[%s5735_s11 + $0x60] sm:$0xff] }
 0x1ba   : > { %4133 = vst [vmem:[%s7327_s9 + $0x140] sm:$0xff] %v2611_v14  ;;  %v1937_v4 = vadd.f32 %v1801_v33, %v6803_v8  ;;  %4852 = vmatmul.mubr.f32.vlgmr.msra.gmra.mrb[192].mxu0 %v5423_v15  ;;  %v7508_v48 = vpop.f32.mrb[87].mxu0  ;;  %v2221_v39 = vpop.f32.mrb[87].mxu1 }
 0x1bb   : > { %8553 = vst [vmem:[#allocation67_spill] sm:$0xff] %v7508_v48  ;;  %3551 = vmatmul.mubr.f32.vlgmr.msra.gmra.mrb[192].mxu1 %v6860_v47  ;;  %4854 = vmatprep.mubr.f32.mxu0 %v5424_v50  ;;  %v7519_v49 = vadd.f32 %v2221_v39, %v7098_v29  ;;  %v5425_v48 = vld [vmem:[%s5735_s11 + $0x50] sm:$0xff]  ;;  %v3846_v29 = vld [vmem:[%s8417_s3 + $0x378] sm:$0xff] }
 0x1bc   : > { %v2612_v8 = vadd.f32 %v2219_v0, %v1937_v4  ;;  %3556 = vmatprep.mubr.f32.mxu1 %v8471_v35  ;;  %5270 = vmatpush3.bf16.msra.mxu0 %v7038_v17  ;;  %v3847_v17 = vld [vmem:[%s8417_s3 + $0x3f8] sm:$0xff] }
 0x1bd   : > { %v1807_v15 = vpop.f32.mrb[88].mxu0  ;;  %5272 = vmatprep.subr.bf16.mxu0 %v5271_v23  ;;  %v2225_v33 = vpop.f32.mrb[88].mxu1  ;;  %v8556_v4 = vld [vmem:[#allocation13_spill] sm:$0xff]  ;;  %v5279_v50 = vpack.c.bf16 %v3847_v17, %v3846_v29 }
 0x1be   : > { %4135 = vst [vmem:[%s7327_s9 + $0x150] sm:$0xff] %v2612_v8  ;;  %v1938_v14 = vadd.f32 %v1807_v15, %v8554_v22  ;;  %4855 = vmatmul.mubr.f32.gmra.mrb[194].mxu0 %v5425_v48  ;;  %v7526_v47 = vpop.f32.mrb[89].mxu0  ;;  %v2227_v0 = vpop.f32.mrb[89].mxu1  ;;  %v8557_v8 = vld [vmem:[#allocation6_spill] sm:$0xff]  ;;  %v5428_v29 = vld [vmem:[%s5735_s11 + $0x78] sm:$0xff] }
 0x1bf   : > { %8555 = vst [vmem:[#allocation12_spill] sm:$0xff] %v7526_v47  ;;  %3557 = vmatmul.mubr.f32.gmra.mrb[194].mxu1 %v8556_v4  ;;  %4857 = vmatprep.mubr.f32.mxu0 %v5426_v52  ;;  %v7537_v39 = vadd.f32 %v2227_v0, %v7129_v18  ;;  %v5427_v47 = vld [vmem:[%s5735_s11 + $0x68] sm:$0xff]  ;;  %v3848_v18 = vld [vmem:[%s8417_s3 + $0x478] sm:$0xff] }
 0x1c0   : > { %v2613_v28 = vadd.f32 %v2225_v33, %v1938_v14  ;;  %3562 = vmatprep.mubr.f32.mxu1 %v8471_v35  ;;  %5274 = vmatpush3.bf16.msra.mxu0 %v5271_v23  ;;  %v3849_v23 = vld [vmem:[%s8417_s3 + $0x4f8] sm:$0xff]  ;;  %v8559_v33 = vld [vmem:[#allocation14_spill] sm:$0xff] }
 0x1c1   : > { %v1813_v48 = vpop.f32.mrb[90].mxu0  ;;  %5276 = vmatprep.subr.bf16.mxu0 %v5275_v61  ;;  %v2231_v22 = vpop.f32.mrb[90].mxu1  ;;  %v5283_v52 = vpack.c.bf16 %v3849_v23, %v3848_v18  ;;  %v5430_v18 = vld [vmem:[%s5735_s11 + $0x90] sm:$0xff] }
 0x1c2   : > { %4137 = vst [vmem:[%s7327_s9 + $0x180] sm:$0xff] %v2613_v28  ;;  %v1939_v15 = vadd.f32 %v1813_v48, %v8557_v8  ;;  %4858 = vmatmul.mubr.f32.gmra.mrb[196].mxu0 %v5427_v47  ;;  %v7543_v4 = vpop.f32.mrb[91].mxu0  ;;  %v2233_v14 = vpop.f32.mrb[91].mxu1  ;;  %v8560_v28 = vld [vmem:[#allocation7_spill] sm:$0xff] }
 0x1c3   : > { %8558 = vst [vmem:[#allocation13_spill] sm:$0xff] %v7543_v4  ;;  %3563 = vmatmul.mubr.f32.gmra.mrb[196].mxu1 %v8559_v33  ;;  %4860 = vmatprep.mubr.f32.mxu0 %v5428_v29  ;;  %v7554_v0 = vadd.f32 %v2233_v14, %v7119_v62  ;;  %v5429_v4 = vld [vmem:[%s5735_s11 + $0x80] sm:$0xff]  ;;  %v3850_v62 = vld [vmem:[%s8417_s3 + $0x578] sm:$0xff] }
 0x1c4   : > { %v2614_v17 = vadd.f32 %v2231_v22, %v1939_v15  ;;  %3568 = vmatprep.mubr.f32.mxu1 %v8471_v35  ;;  %5278 = vmatpush3.bf16.msra.mxu0 %v5275_v61  ;;  %v3851_v61 = vld [vmem:[%s8417_s3 + $0x5f8] sm:$0xff]  ;;  %v8562_v22 = vld [vmem:[#allocation15_spill] sm:$0xff] }
 0x1c5   : > { %v1819_v47 = vpop.f32.mrb[92].mxu0  ;;  %5280 = vmatprep.subr.bf16.mxu0 %v5279_v50  ;;  %v2237_v8 = vpop.f32.mrb[92].mxu1  ;;  %v5287_v29 = vpack.c.bf16 %v3851_v61, %v3850_v62  ;;  %v5432_v62 = vld [vmem:[%s5735_s11 + $0xa8] sm:$0xff] }
 0x1c6   : > { %4139 = vst [vmem:[%s7327_s9 + $0x190] sm:$0xff] %v2614_v17  ;;  %v1940_v48 = vadd.f32 %v1819_v47, %v8560_v28  ;;  %4861 = vmatmul.mubr.f32.gmra.mrb[198].mxu0 %v5429_v4  ;;  %v7560_v33 = vpop.f32.mrb[93].mxu0  ;;  %v2239_v15 = vpop.f32.mrb[93].mxu1  ;;  %v8563_v17 = vld [vmem:[#allocation8_spill] sm:$0xff] }
 0x1c7   : > { %8561 = vst [vmem:[#allocation6_spill] sm:$0xff] %v7560_v33  ;;  %3569 = vmatmul.mubr.f32.gmra.mrb[198].mxu1 %v8562_v22  ;;  %4863 = vmatprep.mubr.f32.mxu0 %v5430_v18  ;;  %v7571_v14 = vadd.f32 %v2239_v15, %v7148_v42  ;;  %v5431_v33 = vld [vmem:[%s5735_s11 + $0x98] sm:$0xff] }
 0x1c8   : > { %v2615_v23 = vadd.f32 %v2237_v8, %v1940_v48  ;;  %3574 = vmatprep.mubr.f32.mxu1 %v8471_v35  ;;  %5282 = vmatpush3.bf16.msra.mxu0 %v5279_v50  ;;  %v3852_v42 = vld [vmem:[%s8417_s3 + $0x678] sm:$0xff]  ;;  %v8565_v8 = vld [vmem:[#allocation16_spill] sm:$0xff] }
 0x1c9   : > { %v1825_v4 = vpop.f32.mrb[94].mxu0  ;;  %5284 = vmatprep.subr.bf16.mxu0 %v5283_v52  ;;  %v2243_v28 = vpop.f32.mrb[94].mxu1  ;;  %v3853_v50 = vld [vmem:[%s8417_s3 + $0x6f8] sm:$0xff] }
 0x1ca   : > { %4141 = vst [vmem:[%s7327_s9 + $0x1c0] sm:$0xff] %v2615_v23  ;;  %v1941_v47 = vadd.f32 %v1825_v4, %v8563_v17  ;;  %4864 = vmatmul.mubr.f32.gmra.mrb[200].mxu0 %v5431_v33  ;;  %v7577_v22 = vpop.f32.mrb[95].mxu0  ;;  %v2245_v48 = vpop.f32.mrb[95].mxu1  ;;  %v5291_v18 = vpack.c.bf16 %v3853_v50, %v3852_v42  ;;  %v8566_v23 = vld [vmem:[#allocation9_spill] sm:$0xff] }
 0x1cb   : > { %8564 = vst [vmem:[#allocation14_spill] sm:$0xff] %v7577_v22  ;;  %3575 = vmatmul.mubr.f32.gmra.mrb[200].mxu1 %v8565_v8  ;;  %4866 = vmatprep.mubr.f32.mxu0 %v5432_v62  ;;  %v7588_v15 = vadd.f32 %v2245_v48, %v7140_v63  ;;  %v5433_v22 = vld [vmem:[%s5735_s11 + $0xb0] sm:$0xff]  ;;  %v3854_v63 = vld [vmem:[%s8417_s3 + $0x778] sm:$0xff]  ;;  %v8567_v62 = vld [vmem:[#allocation10_spill] sm:$0xff] }
 0x1cc   : > { %v2616_v61 = vadd.f32 %v2243_v28, %v1941_v47  ;;  %3580 = vmatprep.mubr.f32.mxu1 %v8471_v35  ;;  %5286 = vmatpush3.bf16.msra.mxu0 %v5283_v52  ;;  %v3855_v52 = vld [vmem:[%s8417_s3 + $0x7f8] sm:$0xff]  ;;  %v5434_v28 = vld [vmem:[%s5735_s11 + $0xc0] sm:$0xff] }
 0x1cd   : > { %v1831_v33 = vpop.f32.mrb[96].mxu0  ;;  %5288 = vmatprep.subr.bf16.mxu0 %v5287_v29  ;;  %v2249_v17 = vpop.f32.mrb[96].mxu1  ;;  %v5295_v48 = vpack.c.bf16 %v3855_v52, %v3854_v63 }
 0x1ce   : > { %4143 = vst [vmem:[%s7327_s9 + $0x1d0] sm:$0xff] %v2616_v61  ;;  %v1942_v4 = vadd.f32 %v1831_v33, %v8566_v23  ;;  %4867 = vmatmul.mubr.f32.gmra.mrb[202].mxu0 %v5433_v22  ;;  %v7594_v8 = vpop.f32.mrb[97].mxu0  ;;  %v2251_v47 = vpop.f32.mrb[97].mxu1  ;;  %v5435_v23 = vld [vmem:[%s5735_s11 + $0xc8] sm:$0xff] }
 0x1cf   : > { %3581 = vmatmul.mubr.f32.gmra.mrb[202].mxu1 %v7035_v57  ;;  %4869 = vmatprep.mubr.f32.mxu0 %v5434_v28  ;;  %v7605_v22 = vadd.f32 %v2251_v47, %v7167_v2  ;;  %v5436_v2 = vld [vmem:[%s5735_s11 + $0xd8] sm:$0xff]  ;;  %v5437_v28 = vld [vmem:[%s5735_s11 + $0xe0] sm:$0xff] }
 0x1d0   : > { %v2617_v42 = vadd.f32 %v2249_v17, %v1942_v4  ;;  %3586 = vmatprep.mubr.f32.mxu1 %v8471_v35  ;;  %5290 = vmatpush3.bf16.msra.mxu0 %v5287_v29 }
 0x1d1   : > { %v1837_v50 = vpop.f32.mrb[98].mxu0  ;;  %5292 = vmatprep.subr.bf16.mxu0 %v5291_v18  ;;  %v2255_v33 = vpop.f32.mrb[98].mxu1 }
 0x1d2   : > { %4145 = vst [vmem:[%s7327_s9 + $0x200] sm:$0xff] %v2617_v42  ;;  %v1943_v61 = vadd.f32 %v1837_v50, %v8567_v62  ;;  %4870 = vmatmul.mubr.f32.gmra.mrb[204].mxu0 %v5435_v23  ;;  %v7611_v57 = vpop.f32.mrb[99].mxu0  ;;  %v2257_v4 = vpop.f32.mrb[99].mxu1 }
 0x1d3   : > { %3587 = vmatmul.mubr.f32.gmra.mrb[204].mxu1 %v7058_v20  ;;  %4872 = vmatprep.mubr.f32.mxu0 %v5436_v2  ;;  %v7616_v17 = vadd.f32 %v2257_v4, %v7159_v53  ;;  %v5438_v53 = vld [vmem:[%s5735_s11 + $0xf0] sm:$0xff]  ;;  %v8568_v4 = vld [vmem:[#allocation11_spill] sm:$0xff] }
 0x1d4   : > { %v2618_v29 = vadd.f32 %v2255_v33, %v1943_v61  ;;  %3592 = vmatprep.mubr.f32.mxu1 %v8471_v35  ;;  %5294 = vmatpush3.bf16.msra.mxu0 %v5291_v18  ;;  %v5439_v33 = vld [vmem:[%s5735_s11 + $0xf8] sm:$0xff] }
 0x1d5   : > { %v1843_v63 = vpop.f32.mrb[100].mxu0  ;;  %5296 = vmatprep.subr.bf16.mxu0 %v5295_v48  ;;  %v2261_v47 = vpop.f32.mrb[100].mxu1 }
 0x1d6   : > { %4147 = vst [vmem:[%s7327_s9 + $0x210] sm:$0xff] %v2618_v29  ;;  %v1944_v52 = vadd.f32 %v1843_v63, %v7040_v58  ;;  %4873 = vmatmul.mubr.f32.gmra.mrb[206].mxu0 %v5437_v28  ;;  %v7622_v20 = vpop.f32.mrb[101].mxu0  ;;  %v2263_v42 = vpop.f32.mrb[101].mxu1  ;;  %v8569_v29 = vld [vmem:[#allocation17_spill] sm:$0xff] }
 0x1d7   : > { %3593 = vmatmul.mubr.f32.gmra.mrb[206].mxu1 %v7080_v12  ;;  %4875 = vmatprep.mubr.f32.mxu0 %v5438_v53  ;;  %v7627_v18 = vadd.f32 %v2263_v42, %v7186_v19  ;;  %v5440_v19 = vld [vmem:[%s5735_s11 + $0x108] sm:$0xff] }
 0x1d8   : > { %v2619_v50 = vadd.f32 %v2261_v47, %v1944_v52  ;;  %3598 = vmatprep.mubr.f32.mxu1 %v8471_v35  ;;  %5298 = vmatpush3.bf16.msra.mxu0 %v5295_v48  ;;  %v5441_v47 = vld [vmem:[%s5735_s11 + $0x110] sm:$0xff]  ;;  %v8570_v53 = vld [vmem:[#allocation19_spill] sm:$0xff] }
 0x1d9   : > { %v1849_v58 = vpop.f32.mrb[102].mxu0  ;;  %v2267_v61 = vpop.f32.mrb[102].mxu1 }
 0x1da   : > { %4149 = vst [vmem:[%s7327_s9 + $0x240] sm:$0xff] %v2619_v50  ;;  %v1945_v62 = vadd.f32 %v1849_v58, %v7062_v26  ;;  %4876 = vmatmul.mubr.f32.gmra.mrb[208].mxu0 %v5439_v33  ;;  %v7633_v12 = vpop.f32.mrb[103].mxu0  ;;  %v2269_v23 = vpop.f32.mrb[103].mxu1  ;;  %v5442_v50 = vld [vmem:[%s5735_s11 + $0x120] sm:$0xff] }
 0x1db   : > { %3599 = vmatmul.mubr.f32.gmra.mrb[208].mxu1 %v8568_v4  ;;  %4878 = vmatprep.mubr.f32.mxu0 %v5440_v19  ;;  %v7638_v48 = vadd.f32 %v2269_v23, %v7178_v43  ;;  %v5443_v4 = vld [vmem:[%s5735_s11 + $0x128] sm:$0xff] }
 0x1dc   : > { %v2620_v2 = vadd.f32 %v2267_v61, %v1945_v62  ;;  %3604 = vmatprep.mubr.f32.mxu1 %v8471_v35  ;;  %v8571_v61 = vld [vmem:[#allocation18_spill] sm:$0xff] }
 0x1dd   : > { %v1855_v26 = vpop.f32.mrb[104].mxu0  ;;  %v2273_v52 = vpop.f32.mrb[104].mxu1 }
 0x1de   : > { %4151 = vst [vmem:[%s7327_s9 + $0x250] sm:$0xff] %v2620_v2  ;;  %v1946_v63 = vadd.f32 %v1855_v26, %v8569_v29  ;;  %4879 = vmatmul.mubr.f32.gmra.mrb[210].mxu0 %v5441_v47  ;;  %v7644_v28 = vpop.f32.mrb[105].mxu0  ;;  %v2275_v42 = vpop.f32.mrb[105].mxu1  ;;  %v8572_v26 = vld [vmem:[#allocation21_spill] sm:$0xff]  ;;  %v8573_v47 = vld [vmem:[#allocation20_spill] sm:$0xff] }
 0x1df   : > { %3605 = vmatmul.mubr.f32.gmra.mrb[210].mxu1 %v8570_v53  ;;  %4881 = vmatprep.mubr.f32.mxu0 %v5442_v50  ;;  %v7649_v58 = vadd.f32 %v2275_v42, %v7205_v34  ;;  %v5444_v29 = vld [vmem:[%s5735_s11 + $0x138] sm:$0xff]  ;;  %v5445_v50 = vld [vmem:[%s5735_s11 + $0x140] sm:$0xff] }
 0x1e0   : > { %v2621_v43 = vadd.f32 %v2273_v52, %v1946_v63  ;;  %3610 = vmatprep.mubr.f32.mxu1 %v8471_v35 }
 0x1e1   : > { %v1861_v62 = vpop.f32.mrb[106].mxu0  ;;  %v2279_v23 = vpop.f32.mrb[106].mxu1 }
 0x1e2   : > { %4153 = vst [vmem:[%s7327_s9 + $0x280] sm:$0xff] %v2621_v43  ;;  %v1947_v33 = vadd.f32 %v1861_v62, %v8571_v61  ;;  %4882 = vmatmul.mubr.f32.gmra.mrb[212].mxu0 %v5443_v4  ;;  %v7655_v19 = vpop.f32.mrb[107].mxu0  ;;  %v2281_v2 = vpop.f32.mrb[107].mxu1  ;;  %v8574_v61 = vld [vmem:[#allocation23_spill] sm:$0xff] }
 0x1e3   : > { %3611 = vmatmul.mubr.f32.gmra.mrb[212].mxu1 %v8572_v26  ;;  %4884 = vmatprep.mubr.f32.mxu0 %v5444_v29  ;;  %v7660_v63 = vadd.f32 %v2281_v2, %v7197_v32  ;;  %v5446_v32 = vld [vmem:[%s5735_s11 + $0x150] sm:$0xff]  ;;  %v8575_v2 = vld [vmem:[#allocation22_spill] sm:$0xff] }
 0x1e4   : > { %v2622_v34 = vadd.f32 %v2279_v23, %v1947_v33  ;;  %3616 = vmatprep.mubr.f32.mxu1 %v8471_v35 }
 0x1e5   : > { %v1867_v52 = vpop.f32.mrb[108].mxu0  ;;  %v2285_v53 = vpop.f32.mrb[108].mxu1 }
 0x1e6   : > { %4155 = vst [vmem:[%s7327_s9 + $0x290] sm:$0xff] %v2622_v34  ;;  %v1948_v42 = vadd.f32 %v1867_v52, %v8573_v47  ;;  %4885 = vmatmul.mubr.f32.gmra.mrb[214].mxu0 %v5445_v50  ;;  %v7666_v43 = vpop.f32.mrb[109].mxu0  ;;  %v2287_v62 = vpop.f32.mrb[109].mxu1  ;;  %v5447_v34 = vld [vmem:[%s5735_s11 + $0x158] sm:$0xff] }
 0x1e7   : > { %3617 = vmatmul.mubr.f32.gmra.mrb[214].mxu1 %v8574_v61  ;;  %4887 = vmatprep.mubr.f32.mxu0 %v5446_v32  ;;  %v7671_v23 = vadd.f32 %v2287_v62, %v7223_v11  ;;  %v8576_v50 = vld [vmem:[#allocation25_spill] sm:$0xff]  ;;  %v5448_v11 = vld [vmem:[%s5735_s11 + $0x168] sm:$0xff]  ;;  %v8577_v61 = vld [vmem:[#allocation24_spill] sm:$0xff] }
 0x1e8   : > { %v2623_v33 = vadd.f32 %v2285_v53, %v1948_v42  ;;  %3622 = vmatprep.mubr.f32.mxu1 %v8471_v35 }
 0x1e9   : > { %v1873_v4 = vpop.f32.mrb[110].mxu0  ;;  %v2291_v29 = vpop.f32.mrb[110].mxu1 }
 0x1ea   : > { %4157 = vst [vmem:[%s7327_s9 + $0x2c0] sm:$0xff] %v2623_v33  ;;  %v1949_v26 = vadd.f32 %v1873_v4, %v8575_v2  ;;  %4888 = vmatmul.mubr.f32.gmra.mrb[216].mxu0 %v5447_v34  ;;  %v7677_v52 = vpop.f32.mrb[111].mxu0  ;;  %v2293_v47 = vpop.f32.mrb[111].mxu1  ;;  %v5449_v4 = vld [vmem:[%s5735_s11 + $0x170] sm:$0xff] }
 0x1eb   : > { %3623 = vmatmul.mubr.f32.gmra.mrb[216].mxu1 %v8576_v50  ;;  %4890 = vmatprep.mubr.f32.mxu0 %v5448_v11  ;;  %v7683_v53 = vadd.f32 %v2293_v47, %v7215_v40  ;;  %v447_v50 = vld [vmem:[%s7689_s14] sm:$0xff] }
 0x1ec   : > { %v2624_v42 = vadd.f32 %v2291_v29, %v1949_v26  ;;  %3628 = vmatprep.mubr.f32.mxu1 %v8471_v35  ;;  %v8579_v26 = vld [vmem:[#allocation27_spill] sm:$0xff]  ;;  %v5450_v29 = vld [vmem:[%s6725_s13] sm:$0xff] }
 0x1ed   : > { %v1879_v62 = vpop.f32.mrb[112].mxu0  ;;  %v2297_v33 = vpop.f32.mrb[112].mxu1 }
 0x1ee   : > { %4159 = vst [vmem:[%s7327_s9 + $0x2d0] sm:$0xff] %v2624_v42  ;;  %v1950_v32 = vadd.f32 %v1879_v62, %v8577_v61  ;;  %4891 = vmatmul.mubr.f32.gmra.mrb[218].mxu0 %v5449_v4  ;;  %v7694_v2 = vpop.f32.mrb[113].mxu0  ;;  %v2299_v40 = vpop.f32.mrb[113].mxu1  ;;  %v8580_v42 = vld [vmem:[#allocation26_spill] sm:$0xff]  ;;  %v5451_v4 = vld [vmem:[%s6725_s13 + $0x8] sm:$0xff] }
 0x1ef   : > { %8578 = vst [vmem:[#allocation7_spill] sm:$0xff] %v7694_v2  ;;  %3629 = vmatmul.mubr.f32.gmra.mrb[218].mxu1 %v8579_v26  ;;  %4893 = vmatprep.mubr.f32.mxu0 %v5450_v29  ;;  %v7699_v47 = vadd.f32 %v2299_v40, %v7240_v27  ;;  %v8582_v29 = vld [vmem:[#allocation29_spill] sm:$0xff]  ;;  %v448_v27 = vld [vmem:[%s7689_s14 + $0x8] sm:$0xff] }
 0x1f0   : > { %v2625_v34 = vadd.f32 %v2297_v33, %v1950_v32  ;;  %3634 = vmatprep.mubr.f32.mxu1 %v8471_v35 }
 0x1f1   : > { %v1885_v11 = vpop.f32.mrb[114].mxu0  ;;  %v2303_v61 = vpop.f32.mrb[114].mxu1 }
 0x1f2   : > { %4161 = vst [vmem:[%s7327_s9 + $0x300] sm:$0xff] %v2625_v34  ;;  %v1951_v62 = vadd.f32 %v1885_v11, %v8580_v42  ;;  %4894 = vmatmul.mubr.f32.gmra.mrb[220].mxu0 %v5451_v4  ;;  %v7706_v2 = vpop.f32.mrb[115].mxu0  ;;  %v2305_v26 = vpop.f32.mrb[115].mxu1  ;;  %v8583_v34 = vld [vmem:[#allocation28_spill] sm:$0xff] }
 0x1f3   : > { %8581 = vst [vmem:[#allocation15_spill] sm:$0xff] %v7706_v2  ;;  %3635 = vmatmul.mubr.f32.gmra.mrb[220].mxu1 %v8582_v29  ;;  %4896 = vmatprep.mubr.f32.mxu0 %v447_v50  ;;  %v7711_v33 = vadd.f32 %v2305_v26, %v7232_v6  ;;  %v8584_v29 = vld [vmem:[#allocation31_spill] sm:$0xff]  ;;  %v5452_v50 = vld [vmem:[%s5735_s11 + $0x32] sm:$0xff]  ;;  %v8585_v26 = vld [vmem:[#allocation30_spill] sm:$0xff] }
 0x1f4   : > { %v2626_v32 = vadd.f32 %v2303_v61, %v1951_v62  ;;  %3640 = vmatprep.mubr.f32.mxu1 %v8471_v35 }
 0x1f5   : > { %v1891_v40 = vpop.f32.mrb[116].mxu0  ;;  %v2309_v42 = vpop.f32.mrb[116].mxu1 }
 0x1f6   : > { %4163 = vst [vmem:[%s7327_s9 + $0x310] sm:$0xff] %v2626_v32  ;;  %v1952_v11 = vadd.f32 %v1891_v40, %v8583_v34  ;;  %4897 = vmatmul.mubr.f32.gmra.mrb[222].mxu0 %v448_v27  ;;  %v7716_v4 = vpop.f32.mrb[117].mxu0  ;;  %v2311_v2 = vpop.f32.mrb[117].mxu1  ;;  %v5453_v40 = vld [vmem:[%s5735_s11 + $0x3a] sm:$0xff] }
 0x1f7   : > { %3641 = vmatmul.mubr.f32.gmra.mrb[222].mxu1 %v8584_v29  ;;  %4931 = vmatprep.mubr.f32.mxu0 %v5452_v50  ;;  %v7721_v62 = vadd.f32 %v2311_v2, %v7260_v5  ;;  %v8586_v50 = vld [vmem:[#allocation32_spill] sm:$0xff] }
 0x1f8   : > { %v2627_v6 = vadd.f32 %v2309_v42, %v1952_v11  ;;  %3646 = vmatprep.mubr.f32.mxu1 %v8471_v35  ;;  %v5454_v11 = vld [vmem:[%s5735_s11 + $0x4a] sm:$0xff] }
 0x1f9   : > { %v1897_v61 = vpop.f32.mrb[118].mxu0  ;;  %v2315_v27 = vpop.f32.mrb[118].mxu1 }
 0x1fa   : > { %4165 = vst [vmem:[%s7327_s9 + $0x340] sm:$0xff] %v2627_v6  ;;  %v1953_v32 = vadd.f32 %v1897_v61, %v8585_v26  ;;  %4932 = vmatmul.mubr.f32.vlgmr.msra.gmra.mrb[224].mxu0 %v5453_v40  ;;  %v7727_v34 = vpop.f32.mrb[119].mxu0  ;;  %v2317_v29 = vpop.f32.mrb[119].mxu1  ;;  %v5455_v26 = vld [vmem:[%s5735_s11 + $0x52] sm:$0xff] }
 0x1fb   : > { %3647 = vmatmul.mubr.f32.gmra.mrb[224].mxu1 %v7255_v21  ;;  %4934 = vmatprep.mubr.f32.mxu0 %v5454_v11  ;;  %v7732_v2 = vadd.f32 %v2317_v29, %v7252_v54  ;;  %v8587_v11 = vld [vmem:[#allocation34_spill] sm:$0xff] }
 0x1fc   : > { %v2628_v5 = vadd.f32 %v2315_v27, %v1953_v32  ;;  %3652 = vmatprep.mubr.f32.mxu1 %v8471_v35  ;;  %v5456_v32 = vld [vmem:[%s5735_s11 + $0x62] sm:$0xff] }
 0x1fd   : > { %v1903_v42 = vpop.f32.mrb[120].mxu0  ;;  %v2321_v61 = vpop.f32.mrb[120].mxu1 }
 0x1fe   : > { %4167 = vst [vmem:[%s7327_s9 + $0x350] sm:$0xff] %v2628_v5  ;;  %v1954_v6 = vadd.f32 %v1903_v42, %v8586_v50  ;;  %4935 = vmatmul.mubr.f32.gmra.mrb[226].mxu0 %v5455_v26  ;;  %v7738_v40 = vpop.f32.mrb[121].mxu0  ;;  %v2323_v21 = vpop.f32.mrb[121].mxu1  ;;  %v5457_v50 = vld [vmem:[%s5735_s11 + $0x6a] sm:$0xff] }
 0x1ff   : > { %3653 = vmatmul.mubr.f32.gmra.mrb[226].mxu1 %v7275_v16  ;;  %4937 = vmatprep.mubr.f32.mxu0 %v5456_v32  ;;  %v7743_v27 = vadd.f32 %v2323_v21, %v7280_v59 }
 0x200   : > { %v2629_v54 = vadd.f32 %v2321_v61, %v1954_v6  ;;  %3658 = vmatprep.mubr.f32.mxu1 %v8471_v35  ;;  %v5458_v6 = vld [vmem:[%s5735_s11 + $0x7a] sm:$0xff]  ;;  %v8589_v61 = vld [vmem:[#allocation36_spill] sm:$0xff] }
 0x201   : > { %v1909_v29 = vpop.f32.mrb[122].mxu0  ;;  %v2327_v42 = vpop.f32.mrb[122].mxu1 }
 0x202   : > { %4169 = vst [vmem:[%s7327_s9 + $0x380] sm:$0xff] %v2629_v54  ;;  %v1955_v5 = vadd.f32 %v1909_v29, %v8587_v11  ;;  %4938 = vmatmul.mubr.f32.gmra.mrb[228].mxu0 %v5457_v50  ;;  %v7749_v26 = vpop.f32.mrb[123].mxu0  ;;  %v2329_v16 = vpop.f32.mrb[123].mxu1  ;;  %v8590_v54 = vld [vmem:[#allocation37_spill] sm:$0xff]  ;;  %v5459_v50 = vld [vmem:[%s5735_s11 + $0x82] sm:$0xff] }
 0x203   : > { %8588 = vst [vmem:[#allocation8_spill] sm:$0xff] %v7749_v26  ;;  %3659 = vmatmul.mubr.f32.gmra.mrb[228].mxu1 %v7293_v7  ;;  %4940 = vmatprep.mubr.f32.mxu0 %v5458_v6  ;;  %v7754_v21 = vadd.f32 %v2329_v16, %v8589_v61 }
 0x204   : > { %v2630_v59 = vadd.f32 %v2327_v42, %v1955_v5  ;;  %3664 = vmatprep.mubr.f32.mxu1 %v8471_v35  ;;  %v5460_v5 = vld [vmem:[%s5735_s11 + $0x92] sm:$0xff] }
 0x205   : > { %v1915_v32 = vpop.f32.mrb[124].mxu0  ;;  %v2333_v11 = vpop.f32.mrb[124].mxu1 }
 0x206   : > { %4171 = vst [vmem:[%s7327_s9 + $0x390] sm:$0xff] %v2630_v59  ;;  %v1956_v29 = vadd.f32 %v1915_v32, %v8590_v54  ;;  %4941 = vmatmul.mubr.f32.gmra.mrb[230].mxu0 %v5459_v50  ;;  %v7760_v26 = vpop.f32.mrb[125].mxu0  ;;  %v2335_v7 = vpop.f32.mrb[125].mxu1  ;;  %v8591_v59 = vld [vmem:[#allocation39_spill] sm:$0xff]  ;;  %v5461_v54 = vld [vmem:[%s5735_s11 + $0x9a] sm:$0xff] }
 0x207   : > { %3665 = vmatmul.mubr.f32.gmra.mrb[230].mxu1 %v7311_v37  ;;  %4943 = vmatprep.mubr.f32.mxu0 %v5460_v5  ;;  %v7765_v16 = vadd.f32 %v2335_v7, %v7298_v41  ;;  %v7778_v41 = vld [vmem:[%s8418_s4] ss:$0 sm:$0xff]  ;;  %v8593_v5 = vld [vmem:[#allocation41_spill] sm:$0xff] }
 0x208   : > { %v2631_v42 = vadd.f32 %v2333_v11, %v1956_v29  ;;  %3670 = vmatprep.mubr.f32.mxu1 %v8471_v35  ;;  %v5462_v29 = vld [vmem:[%s5735_s11 + $0xaa] sm:$0xff]  ;;  %v1958_v11 = vadd.f32 %v7778_v41, %v7314_v55 }
 0x209   : > { %v1921_v6 = vpop.f32.mrb[126].mxu0  ;;  %v2339_v32 = vpop.f32.mrb[126].mxu1 }
 0x20a   : > { %4173 = vst [vmem:[%s7327_s9 + $0x3c0] sm:$0xff] %v2631_v42  ;;  %v1957_v61 = vadd.f32 %v1921_v6, %v8591_v59  ;;  %4944 = vmatmul.mubr.f32.gmra.mrb[232].mxu0 %v5461_v54  ;;  %v7771_v50 = vpop.f32.mrb[127].mxu0  ;;  %v2341_v37 = vpop.f32.mrb[127].mxu1 }
 0x20b   : > { %8592 = vst [vmem:[#allocation16_spill] sm:$0xff] %v7771_v50  ;;  %3671 = vmatmul.mubr.f32.gmra.mrb[232].mxu1 %v7332_v31  ;;  %4946 = vmatprep.mubr.f32.mxu0 %v5462_v29  ;;  %v7783_v42 = vadd.f32 %v2341_v37, %v8593_v5  ;;  %v5464_v29 = vld [vmem:[%s5735_s11 + $0xb2] sm:$0xff]  ;;  %v8594_v37 = vld [vmem:[#allocation43_spill] sm:$0xff] }
 0x20c   : > { %v2632_v7 = vadd.f32 %v2339_v32, %v1957_v61  ;;  %3676 = vmatprep.mubr.f32.mxu1 %v8471_v35  ;;  %v5465_v32 = vld [vmem:[%s5735_s11 + $0xc2] sm:$0xff] }
 0x20d   : > { %v2410_v6 = vpop.f32.mrb[128].mxu0  ;;  %v2860_v59 = vpop.f32.mrb[128].mxu1 }
 0x20e   : > { %4175 = vst [vmem:[%s7327_s9 + $0x3d0] sm:$0xff] %v2632_v7  ;;  %v7787_v31 = vadd.f32 %v2410_v6, %v1958_v11  ;;  %v2412_v54 = vpop.f32.mrb[129].mxu0  ;;  %4947 = vmatmul.mubr.f32.gmra.mrb[234].mxu0 %v5464_v29  ;;  %v3051_v50 = vadd.f32 %v2860_v59, %v7324_v44  ;;  %v2862_v61 = vpop.f32.mrb[129].mxu1  ;;  %v1959_v7 = vadd.f32 %v7778_v41, %v8594_v37  ;;  %v5467_v37 = vld [vmem:[%s5735_s11 + $0xda] sm:$0xff] }
 0x20f   : > { %v2697_v55 = vadd.f32 %v7778_v41, %v2412_v54  ;;  %3677 = vmatmul.mubr.f32.gmra.mrb[234].mxu1 %v7349_v38  ;;  %4949 = vmatprep.mubr.f32.mxu0 %v5465_v32  ;;  %v5466_v54 = vld [vmem:[%s5735_s11 + $0xca] sm:$0xff]  ;;  %s4466_s11 = sshll.u32 %s5538_s21, 14  ;;  %s8368_s21 = scalar_lea.sflag [#allocation4], %s327_s7 }
 0x210   : > { %3682 = vmatprep.mubr.f32.mxu1 %v8471_v35  ;;  %4114 = vst [vmem:[%s7327_s9 + $0x8] sm:$0xff] %v3051_v50  ;;  %v8596_v50 = vld [vmem:[#allocation45_spill] sm:$0xff]  ;;  %s8361_s25 = scalar_lea.hbm %s8419_s5, %s4466_s11 }
 0x211   : > { %v7798_v11 = vadd.f32 %v2862_v61, %v2697_v55  ;;  %v2416_v5 = vpop.f32.mrb[130].mxu0  ;;  %v2866_v44 = vpop.f32.mrb[130].mxu1  ;;  %v1960_v55 = vadd.f32 %v7778_v41, %v8596_v50  ;;  %v8598_v50 = vld [vmem:[#allocation35_spill] sm:$0xff] }
 0x212   : > { %v7800_v6 = vadd.f32 %v2416_v5, %v1959_v7  ;;  %v2418_v59 = vpop.f32.mrb[131].mxu0  ;;  %4950 = vmatmul.mubr.f32.gmra.mrb[236].mxu0 %v5466_v54  ;;  %v3052_v38 = vadd.f32 %v2866_v44, %v7343_v60  ;;  %v2868_v32 = vpop.f32.mrb[131].mxu1 }
 0x213   : > { %8595 = vst [vmem:[#allocation9_spill] sm:$0xff] %v7798_v11  ;;  %v2698_v29 = vadd.f32 %v7778_v41, %v2418_v59  ;;  %3683 = vmatmul.mubr.f32.gmra.mrb[236].mxu1 %v7366_v25  ;;  %4952 = vmatprep.mubr.f32.mxu0 %v5467_v37  ;;  %v8597_v59 = vld [vmem:[#allocation33_spill] sm:$0xff]  ;;  %v8599_v11 = vld [vmem:[#allocation47_spill] sm:$0xff] }
 0x214   : > { %3688 = vmatprep.mubr.f32.mxu1 %v8471_v35  ;;  %4116 = vst [vmem:[%s7327_s9 + $0x18] sm:$0xff] %v3052_v38  ;;  %v1961_v38 = vadd.f32 %v7778_v41, %v8599_v11  ;;  %v8601_v11 = vld [vmem:[#allocation40_spill] sm:$0xff] }
 0x215   : > { %v7811_v61 = vadd.f32 %v2868_v32, %v2698_v29  ;;  %v2422_v7 = vpop.f32.mrb[132].mxu0  ;;  %v2872_v60 = vpop.f32.mrb[132].mxu1 }
 0x216   : > { %v7813_v5 = vadd.f32 %v2422_v7, %v1960_v55  ;;  %v2424_v44 = vpop.f32.mrb[133].mxu0  ;;  %4953 = vmatmul.mubr.f32.gmra.mrb[238].mxu0 %v8597_v59  ;;  %v3053_v25 = vadd.f32 %v2872_v60, %v7360_v30  ;;  %v2874_v37 = vpop.f32.mrb[133].mxu1  ;;  %v8600_v60 = vld [vmem:[#allocation38_spill] sm:$0xff] }
 0x217   : > { %v2699_v54 = vadd.f32 %v7778_v41, %v2424_v44  ;;  %3689 = vmatmul.mubr.f32.gmra.mrb[238].mxu1 %v7383_v45  ;;  %4955 = vmatprep.mubr.f32.mxu0 %v8598_v50  ;;  %v8602_v50 = vld [vmem:[#allocation49_spill] sm:$0xff] }
 0x218   : > { %3694 = vmatprep.mubr.f32.mxu1 %v8471_v35  ;;  %4118 = vst [vmem:[%s7327_s9 + $0x48] sm:$0xff] %v3053_v25  ;;  %v1962_v25 = vadd.f32 %v7778_v41, %v8602_v50  ;;  %v8606_v50 = vld [vmem:[#allocation51_spill] sm:$0xff] }
 0x219   : > { %v7824_v29 = vadd.f32 %v2874_v37, %v2699_v54  ;;  %v2428_v32 = vpop.f32.mrb[134].mxu0  ;;  %v2878_v30 = vpop.f32.mrb[134].mxu1 }
 0x21a   : > { %v7826_v55 = vadd.f32 %v2428_v32, %v1961_v38  ;;  %v2430_v7 = vpop.f32.mrb[135].mxu0  ;;  %4956 = vmatmul.mubr.f32.gmra.mrb[240].mxu0 %v8600_v60  ;;  %v3054_v45 = vadd.f32 %v2878_v30, %v7377_v10  ;;  %v2880_v59 = vpop.f32.mrb[135].mxu1  ;;  %v8604_v30 = vld [vmem:[#allocation42_spill] sm:$0xff] }
 0x21b   : > { %v2700_v44 = vadd.f32 %v7778_v41, %v2430_v7  ;;  %3695 = vmatmul.mubr.f32.gmra.mrb[240].mxu1 %v7400_v46  ;;  %4958 = vmatprep.mubr.f32.mxu0 %v8601_v11  ;;  %v8605_v11 = vld [vmem:[#allocation44_spill] sm:$0xff] }
 0x21c   : > { %3700 = vmatprep.mubr.f32.mxu1 %v8471_v35  ;;  %4120 = vst [vmem:[%s7327_s9 + $0x58] sm:$0xff] %v3054_v45  ;;  %v1963_v45 = vadd.f32 %v7778_v41, %v8606_v50  ;;  %v8610_v50 = vld [vmem:[#allocation53_spill] sm:$0xff] }
 0x21d   : > { %v7837_v54 = vadd.f32 %v2880_v59, %v2700_v44  ;;  %v2434_v37 = vpop.f32.mrb[136].mxu0  ;;  %v2884_v10 = vpop.f32.mrb[136].mxu1 }
 0x21e   : > { %v7839_v38 = vadd.f32 %v2434_v37, %v1962_v25  ;;  %v2436_v32 = vpop.f32.mrb[137].mxu0  ;;  %4959 = vmatmul.mubr.f32.gmra.mrb[242].mxu0 %v8604_v30  ;;  %v3055_v46 = vadd.f32 %v2884_v10, %v7394_v3  ;;  %v2886_v60 = vpop.f32.mrb[137].mxu1  ;;  %v8608_v10 = vld [vmem:[#allocation46_spill] sm:$0xff] }
 0x21f   : > { %8603 = vst [vmem:[#allocation10_spill] sm:$0xff] %v7837_v54  ;;  %v2701_v7 = vadd.f32 %v7778_v41, %v2436_v32  ;;  %3701 = vmatmul.mubr.f32.gmra.mrb[242].mxu1 %v7417_v56  ;;  %4961 = vmatprep.mubr.f32.mxu0 %v8605_v11  ;;  %v8609_v11 = vld [vmem:[#allocation48_spill] sm:$0xff]  ;;  %v8629_v54 = vld [vmem:[#allocation66_spill] sm:$0xff] }
 0x220   : > { %3706 = vmatprep.mubr.f32.mxu1 %v8471_v35  ;;  %4122 = vst [vmem:[%s7327_s9 + $0x88] sm:$0xff] %v3055_v46  ;;  %v1964_v46 = vadd.f32 %v7778_v41, %v8610_v50  ;;  %v8614_v50 = vld [vmem:[#allocation55_spill] sm:$0xff] }
 0x221   : > { %v7850_v44 = vadd.f32 %v2886_v60, %v2701_v7  ;;  %v2440_v59 = vpop.f32.mrb[138].mxu0 }
 0x222   : > { %v7852_v25 = vadd.f32 %v2440_v59, %v1963_v45  ;;  %v2890_v3 = vpop.f32.mrb[138].mxu1  ;;  %v2442_v37 = vpop.f32.mrb[139].mxu0  ;;  %4962 = vmatmul.mubr.f32.gmra.mrb[244].mxu0 %v8608_v10 }
 0x223   : > { %8607 = vst [vmem:[#allocation11_spill] sm:$0xff] %v7850_v44  ;;  %v3056_v56 = vadd.f32 %v2890_v3, %v7411_v24  ;;  %v2702_v32 = vadd.f32 %v7778_v41, %v2442_v37  ;;  %v2892_v30 = vpop.f32.mrb[139].mxu1  ;;  %3707 = vmatmul.mubr.f32.gmra.mrb[244].mxu1 %v7434_v9  ;;  %4964 = vmatprep.mubr.f32.mxu0 %v8609_v11  ;;  %v8612_v3 = vld [vmem:[#allocation50_spill] sm:$0xff]  ;;  %v8613_v11 = vld [vmem:[#allocation52_spill] sm:$0xff] }
 0x224   : > { %3712 = vmatprep.mubr.f32.mxu1 %v8471_v35  ;;  %v8620_v44 = vld [vmem:[#allocation58_spill] sm:$0xff] }
 0x225   : > { %4124 = vst [vmem:[%s7327_s9 + $0x98] sm:$0xff] %v3056_v56  ;;  %v7863_v7 = vadd.f32 %v2892_v30, %v2702_v32  ;;  %v2446_v60 = vpop.f32.mrb[140].mxu0  ;;  %v1965_v56 = vadd.f32 %v7778_v41, %v8614_v50  ;;  %v8619_v50 = vld [vmem:[#allocation56_spill] sm:$0xff] }
 0x226   : > { %v7865_v45 = vadd.f32 %v2446_v60, %v1964_v46  ;;  %v2896_v24 = vpop.f32.mrb[140].mxu1  ;;  %v2448_v59 = vpop.f32.mrb[141].mxu0  ;;  %4965 = vmatmul.mubr.f32.gmra.mrb[246].mxu0 %v8612_v3 }
 0x227   : > { %8611 = vst [vmem:[#allocation17_spill] sm:$0xff] %v7863_v7  ;;  %v3057_v9 = vadd.f32 %v2896_v24, %v7428_v1  ;;  %v2703_v37 = vadd.f32 %v7778_v41, %v2448_v59  ;;  %v2898_v10 = vpop.f32.mrb[141].mxu1  ;;  %3713 = vmatmul.mubr.f32.gmra.mrb[246].mxu1 %v7451_v36  ;;  %4967 = vmatprep.mubr.f32.mxu0 %v8613_v11  ;;  %v8616_v24 = vld [vmem:[#allocation54_spill] sm:$0xff]  ;;  %v8617_v59 = vld [vmem:[#allocation57_spill] sm:$0xff] }
 0x228   : > { %3718 = vmatprep.mubr.f32.mxu1 %v8471_v35  ;;  %v8618_v7 = vld [vmem:[#allocation62_spill] sm:$0xff] }
 0x229   : > { %4126 = vst [vmem:[%s7327_s9 + $0xc8] sm:$0xff] %v3057_v9  ;;  %v7876_v32 = vadd.f32 %v2898_v10, %v2703_v37  ;;  %v2452_v30 = vpop.f32.mrb[142].mxu0  ;;  %v1966_v9 = vadd.f32 %v7778_v41, %v8620_v44 }
 0x22a   : > { %v7878_v46 = vadd.f32 %v2452_v30, %v1965_v56  ;;  %v2902_v1 = vpop.f32.mrb[142].mxu1  ;;  %v2454_v60 = vpop.f32.mrb[143].mxu0  ;;  %4968 = vmatmul.mubr.f32.gmra.mrb[248].mxu0 %v8616_v24 }
 0x22b   : > { %8615 = vst [vmem:[#allocation19_spill] sm:$0xff] %v7876_v32  ;;  %v3058_v36 = vadd.f32 %v2902_v1, %v8617_v59  ;;  %v2704_v3 = vadd.f32 %v7778_v41, %v2454_v60  ;;  %v2904_v11 = vpop.f32.mrb[143].mxu1  ;;  %3719 = vmatmul.mubr.f32.gmra.mrb[248].mxu1 %v8618_v7  ;;  %4970 = vmatprep.mubr.f32.mxu0 %v8619_v50  ;;  %v8623_v60 = vld [vmem:[#allocation59_spill] sm:$0xff]  ;;  %v8624_v7 = vld [vmem:[#allocation60_spill] sm:$0xff]  ;;  %v8625_v50 = vld [vmem:[#allocation65_spill] sm:$0xff] }
 0x22c   : > { %3724 = vmatprep.mubr.f32.mxu1 %v8471_v35  ;;  %v8626_v32 = vld [vmem:[#allocation61_spill] sm:$0xff] }
 0x22d   : > { %4128 = vst [vmem:[%s7327_s9 + $0xd8] sm:$0xff] %v3058_v36  ;;  %v7889_v37 = vadd.f32 %v2904_v11, %v2704_v3  ;;  %v2458_v10 = vpop.f32.mrb[144].mxu0  ;;  %v8627_v36 = vld [vmem:[#allocation63_spill] sm:$0xff] }
 0x22e   : > { %v7891_v56 = vadd.f32 %v2458_v10, %v1966_v9  ;;  %v2908_v30 = vpop.f32.mrb[144].mxu1  ;;  %v2460_v1 = vpop.f32.mrb[145].mxu0  ;;  %4971 = vmatmul.mubr.f32.gmra.mrb[250].mxu0 %v8623_v60  ;;  %v1967_v3 = vadd.f32 %v7778_v41, %v8627_v36  ;;  %v522_v11 = vld [vmem:[%s7689_s14 + $0x1] sm:$0xff] }
 0x22f   : > { %8621 = vst [vmem:[#allocation18_spill] sm:$0xff] %v7889_v37  ;;  %v3059_v24 = vadd.f32 %v2908_v30, %v8624_v7  ;;  %v2705_v59 = vadd.f32 %v7778_v41, %v2460_v1  ;;  %v2910_v44 = vpop.f32.mrb[145].mxu1  ;;  %3725 = vmatmul.mubr.f32.gmra.mrb[250].mxu1 %v8625_v50  ;;  %4973 = vmatprep.mubr.f32.mxu0 %v8626_v32  ;;  %v597_v9 = vld [vmem:[%s7689_s14 + $0x2] sm:$0xff]  ;;  %v8628_v32 = vld [vmem:[#allocation64_spill] sm:$0xff] }
 0x230   : > { %8622 = vst [vmem:[#allocation21_spill] sm:$0xff] %v7891_v56  ;;  %3730 = vmatprep.mubr.f32.mxu1 %v8471_v35  ;;  %v598_v56 = vld [vmem:[%s7689_s14 + $0xa] sm:$0xff] }
 0x231   : > { %4130 = vst [vmem:[%s7327_s9 + $0x108] sm:$0xff] %v3059_v24  ;;  %v7904_v10 = vadd.f32 %v2910_v44, %v2705_v59  ;;  %v2464_v30 = vpop.f32.mrb[146].mxu0  ;;  %v1968_v24 = vadd.f32 %v7778_v41, %v8629_v54  ;;  %v523_v59 = vld [vmem:[%s7689_s14 + $0x9] sm:$0xff] }
 0x232   : > { %v7906_v1 = vadd.f32 %v2464_v30, %v1967_v3  ;;  %v2914_v60 = vpop.f32.mrb[146].mxu1  ;;  %v2466_v7 = vpop.f32.mrb[147].mxu0  ;;  %4974 = vmatmul.mubr.f32.gmra.mrb[252].mxu0 %v7483_v13  ;;  %v8630_v54 = vld [vmem:[#allocation67_spill] sm:$0xff] }
 0x233   : > { %v3060_v50 = vadd.f32 %v2914_v60, %v8628_v32  ;;  %v2706_v36 = vadd.f32 %v7778_v41, %v2466_v7  ;;  %v2916_v37 = vpop.f32.mrb[147].mxu1  ;;  %3731 = vmatmul.mubr.f32.gmra.mrb[252].mxu1 %v522_v11  ;;  %4976 = vmatprep.mubr.f32.mxu0 %v597_v9 }
 0x234   : > { %3736 = vmatprep.mubr.f32.mxu1 %v8471_v35  ;;  %v1969_v35 = vadd.f32 %v7778_v41, %v8630_v54 }
 0x235   : > { %4132 = vst [vmem:[%s7327_s9 + $0x118] sm:$0xff] %v3060_v50  ;;  %v7917_v44 = vadd.f32 %v2916_v37, %v2706_v36  ;;  %v2470_v3 = vpop.f32.mrb[148].mxu0 }
 0x236   : > { %v7919_v13 = vadd.f32 %v2470_v3, %v1968_v24  ;;  %v2920_v30 = vpop.f32.mrb[148].mxu1  ;;  %v2472_v60 = vpop.f32.mrb[149].mxu0  ;;  %4977 = vmatmul.mubr.f32.gmra.mrb[254].mxu0 %v598_v56 }
 0x237   : > { %v3061_v11 = vadd.f32 %v2920_v30, %v7502_v51  ;;  %v2707_v9 = vadd.f32 %v7778_v41, %v2472_v60  ;;  %v2922_v7 = vpop.f32.mrb[149].mxu1  ;;  %3737 = vmatmul.mubr.f32.gmra.mrb[254].mxu1 %v523_v59  ;;  %v8632_v30 = vld [vmem:[#allocation12_spill] sm:$0xff] }
 0x238   : > { %v1970_v59 = vadd.f32 %v7778_v41, %v8632_v30 }
 0x239   : > { %4134 = vst [vmem:[%s7327_s9 + $0x148] sm:$0xff] %v3061_v11  ;;  %v7926_v32 = vadd.f32 %v2922_v7, %v2707_v9  ;;  %v2476_v37 = vpop.f32.mrb[150].mxu0 }
 0x23a   : > { %v7928_v50 = vadd.f32 %v2476_v37, %v1969_v35  ;;  %v2926_v36 = vpop.f32.mrb[150].mxu1  ;;  %v2478_v24 = vpop.f32.mrb[151].mxu0 }
 0x23b   : > { %8631 = vst [vmem:[#allocation20_spill] sm:$0xff] %v7926_v32  ;;  %v3062_v56 = vadd.f32 %v2926_v36, %v7519_v49  ;;  %v2708_v51 = vadd.f32 %v7778_v41, %v2478_v24  ;;  %v2928_v3 = vpop.f32.mrb[151].mxu1  ;;  %v8634_v36 = vld [vmem:[#allocation13_spill] sm:$0xff] }
 0x23c   : > { %v1971_v24 = vadd.f32 %v7778_v41, %v8634_v36 }
 0x23d   : > { %4136 = vst [vmem:[%s7327_s9 + $0x158] sm:$0xff] %v3062_v56  ;;  %v7935_v60 = vadd.f32 %v2928_v3, %v2708_v51  ;;  %v2482_v11 = vpop.f32.mrb[152].mxu0 }
 0x23e   : > { %v7937_v9 = vadd.f32 %v2482_v11, %v1970_v59  ;;  %v2932_v7 = vpop.f32.mrb[152].mxu1  ;;  %v2484_v54 = vpop.f32.mrb[153].mxu0 }
 0x23f   : > { %8633 = vst [vmem:[#allocation23_spill] sm:$0xff] %v7935_v60  ;;  %v3063_v35 = vadd.f32 %v2932_v7, %v7537_v39  ;;  %v2709_v37 = vadd.f32 %v7778_v41, %v2484_v54  ;;  %v2934_v49 = vpop.f32.mrb[153].mxu1  ;;  %v8636_v7 = vld [vmem:[#allocation6_spill] sm:$0xff] }
 0x240   : > { %v1972_v54 = vadd.f32 %v7778_v41, %v8636_v7 }
 0x241   : > { %4138 = vst [vmem:[%s7327_s9 + $0x188] sm:$0xff] %v3063_v35  ;;  %v7944_v32 = vadd.f32 %v2934_v49, %v2709_v37  ;;  %v2488_v56 = vpop.f32.mrb[154].mxu0 }
 0x242   : > { %v7946_v51 = vadd.f32 %v2488_v56, %v1971_v24  ;;  %v2938_v3 = vpop.f32.mrb[154].mxu1  ;;  %v2490_v30 = vpop.f32.mrb[155].mxu0 }
 0x243   : > { %8635 = vst [vmem:[#allocation22_spill] sm:$0xff] %v7944_v32  ;;  %v3064_v59 = vadd.f32 %v2938_v3, %v7554_v0  ;;  %v2710_v11 = vadd.f32 %v7778_v41, %v2490_v30  ;;  %v2940_v39 = vpop.f32.mrb[155].mxu1  ;;  %v8637_v3 = vld [vmem:[#allocation14_spill] sm:$0xff] }
 0x244   : > { %v1973_v30 = vadd.f32 %v7778_v41, %v8637_v3 }
 0x245   : > { %4140 = vst [vmem:[%s7327_s9 + $0x198] sm:$0xff] %v3064_v59  ;;  %v7953_v60 = vadd.f32 %v2940_v39, %v2710_v11  ;;  %v2494_v35 = vpop.f32.mrb[156].mxu0 }
 0x246   : > { %v7955_v37 = vadd.f32 %v2494_v35, %v1972_v54  ;;  %v2944_v49 = vpop.f32.mrb[156].mxu1  ;;  %v2496_v36 = vpop.f32.mrb[157].mxu0 }
 0x247   : > { %v3065_v24 = vadd.f32 %v2944_v49, %v7571_v14  ;;  %v2711_v56 = vadd.f32 %v7778_v41, %v2496_v36  ;;  %v2946_v0 = vpop.f32.mrb[157].mxu1  ;;  %v1974_v49 = vadd.f32 %v7778_v41, %v7594_v8 }
 0x249   : > { %4142 = vst [vmem:[%s7327_s9 + $0x1c8] sm:$0xff] %v3065_v24  ;;  %v7962_v32 = vadd.f32 %v2946_v0, %v2711_v56  ;;  %v2500_v59 = vpop.f32.mrb[158].mxu0 }
 0x24a   : > { %v7964_v11 = vadd.f32 %v2500_v59, %v1973_v30  ;;  %v2950_v39 = vpop.f32.mrb[158].mxu1  ;;  %v2502_v7 = vpop.f32.mrb[159].mxu0 }
 0x24b   : > { %v3066_v54 = vadd.f32 %v2950_v39, %v7588_v15  ;;  %v2712_v35 = vadd.f32 %v7778_v41, %v2502_v7  ;;  %v2952_v14 = vpop.f32.mrb[159].mxu1  ;;  %v1975_v39 = vadd.f32 %v7778_v41, %v7611_v57 }
 0x24d   : > { %4144 = vst [vmem:[%s7327_s9 + $0x1d8] sm:$0xff] %v3066_v54  ;;  %v7971_v36 = vadd.f32 %v2952_v14, %v2712_v35  ;;  %v2506_v24 = vpop.f32.mrb[160].mxu0 }
 0x24e   : > { %v7973_v56 = vadd.f32 %v2506_v24, %v1974_v49  ;;  %v2956_v0 = vpop.f32.mrb[160].mxu1  ;;  %v2508_v3 = vpop.f32.mrb[161].mxu0 }
 0x24f   : > { %v3067_v30 = vadd.f32 %v2956_v0, %v7605_v22  ;;  %v2713_v59 = vadd.f32 %v7778_v41, %v2508_v3  ;;  %v2958_v15 = vpop.f32.mrb[161].mxu1  ;;  %v1976_v0 = vadd.f32 %v7778_v41, %v7622_v20 }
 0x251   : > { %4146 = vst [vmem:[%s7327_s9 + $0x208] sm:$0xff] %v3067_v30  ;;  %v7980_v7 = vadd.f32 %v2958_v15, %v2713_v59  ;;  %v2512_v8 = vpop.f32.mrb[162].mxu0 }
 0x252   : > { %v7982_v54 = vadd.f32 %v2512_v8, %v1975_v39  ;;  %v2962_v35 = vpop.f32.mrb[162].mxu1  ;;  %v2514_v14 = vpop.f32.mrb[163].mxu0 }
 0x253   : > { %v3068_v49 = vadd.f32 %v2962_v35, %v7616_v17  ;;  %v2714_v24 = vadd.f32 %v7778_v41, %v2514_v14  ;;  %v2964_v22 = vpop.f32.mrb[163].mxu1  ;;  %v1977_v35 = vadd.f32 %v7778_v41, %v7633_v12 }
 0x255   : > { %4148 = vst [vmem:[%s7327_s9 + $0x218] sm:$0xff] %v3068_v49  ;;  %v7989_v3 = vadd.f32 %v2964_v22, %v2714_v24  ;;  %v2518_v57 = vpop.f32.mrb[164].mxu0 }
 0x256   : > { %v7991_v30 = vadd.f32 %v2518_v57, %v1976_v0  ;;  %v2968_v59 = vpop.f32.mrb[164].mxu1  ;;  %v2520_v15 = vpop.f32.mrb[165].mxu0 }
 0x257   : > { %v3069_v39 = vadd.f32 %v2968_v59, %v7627_v18  ;;  %v2715_v8 = vadd.f32 %v7778_v41, %v2520_v15  ;;  %v2970_v17 = vpop.f32.mrb[165].mxu1  ;;  %v1978_v59 = vadd.f32 %v7778_v41, %v7644_v28 }
 0x259   : > { %4150 = vst [vmem:[%s7327_s9 + $0x248] sm:$0xff] %v3069_v39  ;;  %v7998_v14 = vadd.f32 %v2970_v17, %v2715_v8  ;;  %v2524_v20 = vpop.f32.mrb[166].mxu0 }
 0x25a   : > { %v8000_v49 = vadd.f32 %v2524_v20, %v1977_v35  ;;  %v2974_v24 = vpop.f32.mrb[166].mxu1  ;;  %v2526_v22 = vpop.f32.mrb[167].mxu0 }
 0x25b   : > { %v3070_v0 = vadd.f32 %v2974_v24, %v7638_v48  ;;  %v2716_v57 = vadd.f32 %v7778_v41, %v2526_v22  ;;  %v2976_v18 = vpop.f32.mrb[167].mxu1  ;;  %v1979_v24 = vadd.f32 %v7778_v41, %v7655_v19 }
 0x25d   : > { %4152 = vst [vmem:[%s7327_s9 + $0x258] sm:$0xff] %v3070_v0  ;;  %v8007_v15 = vadd.f32 %v2976_v18, %v2716_v57  ;;  %v2530_v12 = vpop.f32.mrb[168].mxu0 }
 0x25e   : > { %v8009_v39 = vadd.f32 %v2530_v12, %v1978_v59  ;;  %v2980_v8 = vpop.f32.mrb[168].mxu1  ;;  %v2532_v17 = vpop.f32.mrb[169].mxu0 }
 0x25f   : > { %v3071_v35 = vadd.f32 %v2980_v8, %v7649_v58  ;;  %v2717_v20 = vadd.f32 %v7778_v41, %v2532_v17  ;;  %v2982_v48 = vpop.f32.mrb[169].mxu1  ;;  %v1980_v8 = vadd.f32 %v7778_v41, %v7666_v43 }
 0x261   : > { %4154 = vst [vmem:[%s7327_s9 + $0x288] sm:$0xff] %v3071_v35  ;;  %v8016_v22 = vadd.f32 %v2982_v48, %v2717_v20  ;;  %v2536_v28 = vpop.f32.mrb[170].mxu0 }
 0x262   : > { %v8018_v0 = vadd.f32 %v2536_v28, %v1979_v24  ;;  %v2986_v57 = vpop.f32.mrb[170].mxu1  ;;  %v2538_v18 = vpop.f32.mrb[171].mxu0 }
 0x263   : > { %v3072_v59 = vadd.f32 %v2986_v57, %v7660_v63  ;;  %v2718_v12 = vadd.f32 %v7778_v41, %v2538_v18  ;;  %v2988_v58 = vpop.f32.mrb[171].mxu1  ;;  %v1981_v57 = vadd.f32 %v7778_v41, %v7677_v52 }
 0x265   : > { %4156 = vst [vmem:[%s7327_s9 + $0x298] sm:$0xff] %v3072_v59  ;;  %v8025_v17 = vadd.f32 %v2988_v58, %v2718_v12  ;;  %v2542_v19 = vpop.f32.mrb[172].mxu0 }
 0x266   : > { %v8027_v35 = vadd.f32 %v2542_v19, %v1980_v8  ;;  %v2992_v20 = vpop.f32.mrb[172].mxu1  ;;  %v2544_v48 = vpop.f32.mrb[173].mxu0 }
 0x267   : > { %8638 = vst [vmem:[#allocation25_spill] sm:$0xff] %v8025_v17  ;;  %v3073_v24 = vadd.f32 %v2992_v20, %v7671_v23  ;;  %v2719_v28 = vadd.f32 %v7778_v41, %v2544_v48  ;;  %v2994_v63 = vpop.f32.mrb[173].mxu1  ;;  %v8640_v20 = vld [vmem:[#allocation7_spill] sm:$0xff] }
 0x268   : > { %v1982_v48 = vadd.f32 %v7778_v41, %v8640_v20 }
 0x269   : > { %4158 = vst [vmem:[%s7327_s9 + $0x2c8] sm:$0xff] %v3073_v24  ;;  %v8034_v18 = vadd.f32 %v2994_v63, %v2719_v28  ;;  %v2548_v43 = vpop.f32.mrb[174].mxu0 }
 0x26a   : > { %v8036_v59 = vadd.f32 %v2548_v43, %v1981_v57  ;;  %v2998_v12 = vpop.f32.mrb[174].mxu1  ;;  %v2550_v58 = vpop.f32.mrb[175].mxu0 }
 0x26b   : > { %8639 = vst [vmem:[#allocation24_spill] sm:$0xff] %v8034_v18  ;;  %v3074_v8 = vadd.f32 %v2998_v12, %v7683_v53  ;;  %v2720_v19 = vadd.f32 %v7778_v41, %v2550_v58  ;;  %v3000_v23 = vpop.f32.mrb[175].mxu1  ;;  %v8641_v12 = vld [vmem:[#allocation15_spill] sm:$0xff] }
 0x26c   : > { %v1983_v58 = vadd.f32 %v7778_v41, %v8641_v12 }
 0x26d   : > { %4160 = vst [vmem:[%s7327_s9 + $0x2d8] sm:$0xff] %v3074_v8  ;;  %v8043_v17 = vadd.f32 %v3000_v23, %v2720_v19  ;;  %v2554_v52 = vpop.f32.mrb[176].mxu0 }
 0x26e   : > { %v8045_v24 = vadd.f32 %v2554_v52, %v1982_v48  ;;  %v3004_v28 = vpop.f32.mrb[176].mxu1  ;;  %v2556_v63 = vpop.f32.mrb[177].mxu0 }
 0x26f   : > { %v3075_v57 = vadd.f32 %v3004_v28, %v7699_v47  ;;  %v2721_v43 = vadd.f32 %v7778_v41, %v2556_v63  ;;  %v3006_v53 = vpop.f32.mrb[177].mxu1  ;;  %v1984_v28 = vadd.f32 %v7778_v41, %v7716_v4 }
 0x271   : > { %4162 = vst [vmem:[%s7327_s9 + $0x308] sm:$0xff] %v3075_v57  ;;  %v8052_v18 = vadd.f32 %v3006_v53, %v2721_v43  ;;  %v2560_v8 = vpop.f32.mrb[178].mxu0 }
 0x272   : > { %v8054_v19 = vadd.f32 %v2560_v8, %v1983_v58  ;;  %v3010_v23 = vpop.f32.mrb[178].mxu1  ;;  %v2562_v20 = vpop.f32.mrb[179].mxu0 }
 0x273   : > { %v3076_v48 = vadd.f32 %v3010_v23, %v7711_v33  ;;  %v2722_v52 = vadd.f32 %v7778_v41, %v2562_v20  ;;  %v3012_v47 = vpop.f32.mrb[179].mxu1  ;;  %v1985_v23 = vadd.f32 %v7778_v41, %v7727_v34 }
 0x275   : > { %4164 = vst [vmem:[%s7327_s9 + $0x318] sm:$0xff] %v3076_v48  ;;  %v8061_v63 = vadd.f32 %v3012_v47, %v2722_v52  ;;  %v2566_v57 = vpop.f32.mrb[180].mxu0 }
 0x276   : > { %v8063_v43 = vadd.f32 %v2566_v57, %v1984_v28  ;;  %v3016_v53 = vpop.f32.mrb[180].mxu1  ;;  %v2568_v12 = vpop.f32.mrb[181].mxu0 }
 0x277   : > { %v3077_v58 = vadd.f32 %v3016_v53, %v7721_v62  ;;  %v2723_v8 = vadd.f32 %v7778_v41, %v2568_v12  ;;  %v3018_v33 = vpop.f32.mrb[181].mxu1  ;;  %v1986_v53 = vadd.f32 %v7778_v41, %v7738_v40 }
 0x279   : > { %4166 = vst [vmem:[%s7327_s9 + $0x348] sm:$0xff] %v3077_v58  ;;  %v8070_v20 = vadd.f32 %v3018_v33, %v2723_v8  ;;  %v2572_v4 = vpop.f32.mrb[182].mxu0 }
 0x27a   : > { %v8072_v48 = vadd.f32 %v2572_v4, %v1985_v23  ;;  %v3022_v52 = vpop.f32.mrb[182].mxu1  ;;  %v2574_v47 = vpop.f32.mrb[183].mxu0 }
 0x27b   : > { %8642 = vst [vmem:[#allocation27_spill] sm:$0xff] %v8070_v20  ;;  %v3078_v28 = vadd.f32 %v3022_v52, %v7732_v2  ;;  %v2724_v57 = vadd.f32 %v7778_v41, %v2574_v47  ;;  %v3024_v62 = vpop.f32.mrb[183].mxu1  ;;  %v8643_v52 = vld [vmem:[#allocation8_spill] sm:$0xff] }
 0x27c   : > { %v1987_v47 = vadd.f32 %v7778_v41, %v8643_v52 }
 0x27d   : > { %4168 = vst [vmem:[%s7327_s9 + $0x358] sm:$0xff] %v3078_v28  ;;  %v8079_v12 = vadd.f32 %v3024_v62, %v2724_v57  ;;  %v2578_v34 = vpop.f32.mrb[184].mxu0 }
 0x27e   : > { %v8081_v58 = vadd.f32 %v2578_v34, %v1986_v53  ;;  %v3028_v8 = vpop.f32.mrb[184].mxu1  ;;  %v2580_v33 = vpop.f32.mrb[185].mxu0 }
 0x27f   : > { %v3079_v23 = vadd.f32 %v3028_v8, %v7743_v27  ;;  %v2725_v4 = vadd.f32 %v7778_v41, %v2580_v33  ;;  %v3030_v2 = vpop.f32.mrb[185].mxu1  ;;  %v1988_v8 = vadd.f32 %v7778_v41, %v7760_v26 }
 0x281   : > { %4170 = vst [vmem:[%s7327_s9 + $0x388] sm:$0xff] %v3079_v23  ;;  %v8088_v20 = vadd.f32 %v3030_v2, %v2725_v4  ;;  %v2584_v40 = vpop.f32.mrb[186].mxu0 }
 0x282   : > { %v8090_v28 = vadd.f32 %v2584_v40, %v1987_v47  ;;  %v3034_v57 = vpop.f32.mrb[186].mxu1  ;;  %v2586_v62 = vpop.f32.mrb[187].mxu0 }
 0x283   : > { %8644 = vst [vmem:[#allocation26_spill] sm:$0xff] %v8088_v20  ;;  %v3080_v53 = vadd.f32 %v3034_v57, %v7754_v21  ;;  %v2726_v34 = vadd.f32 %v7778_v41, %v2586_v62  ;;  %v3036_v27 = vpop.f32.mrb[187].mxu1  ;;  %v8645_v57 = vld [vmem:[#allocation16_spill] sm:$0xff] }
 0x284   : > { %v1989_v62 = vadd.f32 %v7778_v41, %v8645_v57 }
 0x285   : > { %4172 = vst [vmem:[%s7327_s9 + $0x398] sm:$0xff] %v3080_v53  ;;  %v8097_v33 = vadd.f32 %v3036_v27, %v2726_v34  ;;  %v2590_v23 = vpop.f32.mrb[188].mxu0 }
 0x286   : > { %v8099_v4 = vadd.f32 %v2590_v23, %v1988_v8  ;;  %v3040_v2 = vpop.f32.mrb[188].mxu1  ;;  %v2592_v52 = vpop.f32.mrb[189].mxu0 }
 0x287   : > { %v3081_v47 = vadd.f32 %v3040_v2, %v7765_v16  ;;  %v2727_v40 = vadd.f32 %v7778_v41, %v2592_v52  ;;  %v3042_v21 = vpop.f32.mrb[189].mxu1 }
 0x289   : > { %4174 = vst [vmem:[%s7327_s9 + $0x3c8] sm:$0xff] %v3081_v47  ;;  %v8106_v20 = vadd.f32 %v3042_v21, %v2727_v40  ;;  %v2596_v26 = vpop.f32.mrb[190].mxu0 }
 0x28a   : > { %v8108_v53 = vadd.f32 %v2596_v26, %v1989_v62  ;;  %v3046_v34 = vpop.f32.mrb[190].mxu1  ;;  %v2598_v27 = vpop.f32.mrb[191].mxu0  ;;  %v8647_v26 = vld [vmem:[#allocation9_spill] sm:$0xff] }
 0x28b   : > { %8646 = vst [vmem:[#allocation29_spill] sm:$0xff] %v8106_v20  ;;  %v3082_v8 = vadd.f32 %v3046_v34, %v7783_v42  ;;  %v2728_v23 = vadd.f32 %v7778_v41, %v2598_v27  ;;  %v3048_v16 = vpop.f32.mrb[191].mxu1 }
 0x28d   : > { %4176 = vst [vmem:[%s7327_s9 + $0x3d8] sm:$0xff] %v3082_v8  ;;  %v8113_v2 = vadd.f32 %v3048_v16, %v2728_v23  ;;  %v4853_v52 = vpop.f32.mrb[192].mxu0 }
 0x28e   : > { %v3390_v57 = vadd.f32 %v4853_v52, %v7800_v6  ;;  %v3552_v47 = vpop.f32.mrb[192].mxu1  ;;  %v3230_v40 = vpop.f32.mrb[193].mxu0 }
 0x28f   : > { %v3389_v21 = vadd.f32 %v3230_v40, %v7787_v31  ;;  %v3554_v62 = vpop.f32.mrb[193].mxu1 }
 0x290   : > { %v8118_v20 = vadd.f32 %v3554_v62, %v8647_v26 }
 0x291   : > { %v3743_v42 = vadd.f32 %v3552_v47, %v3389_v21  ;;  %v4856_v34 = vpop.f32.mrb[194].mxu0 }
 0x292   : > { %v3392_v41 = vadd.f32 %v4856_v34, %v7826_v55  ;;  %v3558_v27 = vpop.f32.mrb[194].mxu1  ;;  %v3240_v8 = vpop.f32.mrb[195].mxu0 }
 0x293   : > { %4393 = vst [vmem:[%s7327_s9 + $0x20] sm:$0xff] %v3743_v42  ;;  %v3744_v23 = vadd.f32 %v3558_v27, %v3390_v57  ;;  %v3391_v6 = vadd.f32 %v3240_v8, %v7813_v5  ;;  %v3560_v16 = vpop.f32.mrb[195].mxu1 }
 0x294   : > { %v8124_v52 = vadd.f32 %v3560_v16, %v7811_v61 }
 0x295   : > { %4395 = vst [vmem:[%s7327_s9 + $0x30] sm:$0xff] %v3744_v23  ;;  %v4859_v31 = vpop.f32.mrb[196].mxu0  ;;  %v8648_v23 = vld [vmem:[#allocation10_spill] sm:$0xff] }
 0x296   : > { %v3394_v40 = vadd.f32 %v4859_v31, %v7852_v25  ;;  %v3564_v47 = vpop.f32.mrb[196].mxu1  ;;  %v3250_v21 = vpop.f32.mrb[197].mxu0 }
 0x297   : > { %v3745_v62 = vadd.f32 %v3564_v47, %v3391_v6  ;;  %v3393_v55 = vadd.f32 %v3250_v21, %v7839_v38  ;;  %v3566_v26 = vpop.f32.mrb[197].mxu1  ;;  %v8649_v21 = vld [vmem:[#allocation21_spill] sm:$0xff] }
 0x298   : > { %v8130_v42 = vadd.f32 %v3566_v26, %v7824_v29  ;;  %v8650_v26 = vld [vmem:[#allocation11_spill] sm:$0xff] }
 0x299   : > { %4397 = vst [vmem:[%s7327_s9 + $0x60] sm:$0xff] %v3745_v62  ;;  %v4862_v5 = vpop.f32.mrb[198].mxu0 }
 0x29a   : > { %v3396_v57 = vadd.f32 %v4862_v5, %v7878_v46  ;;  %v3570_v61 = vpop.f32.mrb[198].mxu1  ;;  %v3260_v34 = vpop.f32.mrb[199].mxu0 }
 0x29b   : > { %v3746_v27 = vadd.f32 %v3570_v61, %v3392_v41  ;;  %v3395_v25 = vadd.f32 %v3260_v34, %v7865_v45  ;;  %v3572_v8 = vpop.f32.mrb[199].mxu1 }
 0x29c   : > { %v8136_v16 = vadd.f32 %v3572_v8, %v8648_v23  ;;  %v8651_v23 = vld [vmem:[#allocation17_spill] sm:$0xff] }
 0x29d   : > { %4399 = vst [vmem:[%s7327_s9 + $0x70] sm:$0xff] %v3746_v27  ;;  %v4865_v38 = vpop.f32.mrb[200].mxu0 }
 0x29e   : > { %v3398_v6 = vadd.f32 %v4865_v38, %v7906_v1  ;;  %v3576_v29 = vpop.f32.mrb[200].mxu1  ;;  %v3270_v31 = vpop.f32.mrb[201].mxu0 }
 0x29f   : > { %v3747_v47 = vadd.f32 %v3576_v29, %v3393_v55  ;;  %v3397_v46 = vadd.f32 %v3270_v31, %v8649_v21  ;;  %v3578_v62 = vpop.f32.mrb[201].mxu1 }
 0x2a0   : > { %v8142_v5 = vadd.f32 %v3578_v62, %v8650_v26  ;;  %v8652_v26 = vld [vmem:[#allocation19_spill] sm:$0xff] }
 0x2a1   : > { %4401 = vst [vmem:[%s7327_s9 + $0xa0] sm:$0xff] %v3747_v47  ;;  %v4868_v45 = vpop.f32.mrb[202].mxu0 }
 0x2a2   : > { %v3400_v41 = vadd.f32 %v4868_v45, %v7928_v50  ;;  %v3582_v61 = vpop.f32.mrb[202].mxu1  ;;  %v3280_v34 = vpop.f32.mrb[203].mxu0 }
 0x2a3   : > { %v3748_v27 = vadd.f32 %v3582_v61, %v3394_v40  ;;  %v3399_v1 = vadd.f32 %v3280_v34, %v7919_v13  ;;  %v3584_v8 = vpop.f32.mrb[203].mxu1 }
 0x2a4   : > { %v8148_v38 = vadd.f32 %v3584_v8, %v8651_v23  ;;  %v8653_v23 = vld [vmem:[#allocation18_spill] sm:$0xff] }
 0x2a5   : > { %4403 = vst [vmem:[%s7327_s9 + $0xb0] sm:$0xff] %v3748_v27  ;;  %v4871_v55 = vpop.f32.mrb[204].mxu0 }
 0x2a6   : > { %v8152_v29 = vadd.f32 %v4871_v55, %v7946_v51  ;;  %v3588_v31 = vpop.f32.mrb[204].mxu1  ;;  %v3290_v47 = vpop.f32.mrb[205].mxu0 }
 0x2a7   : > { %v3749_v21 = vadd.f32 %v3588_v31, %v3395_v25  ;;  %v3401_v50 = vadd.f32 %v3290_v47, %v7937_v9  ;;  %v3590_v62 = vpop.f32.mrb[205].mxu1 }
 0x2a8   : > { %v8156_v40 = vadd.f32 %v3590_v62, %v8652_v26 }
 0x2a9   : > { %4405 = vst [vmem:[%s7327_s9 + $0xe0] sm:$0xff] %v3749_v21  ;;  %v4874_v13 = vpop.f32.mrb[206].mxu0 }
 0x2aa   : > { %v8160_v45 = vadd.f32 %v4874_v13, %v7964_v11  ;;  %v3594_v61 = vpop.f32.mrb[206].mxu1  ;;  %v3300_v34 = vpop.f32.mrb[207].mxu0 }
 0x2ab   : > { %v3750_v51 = vadd.f32 %v3594_v61, %v3396_v57  ;;  %v3403_v27 = vadd.f32 %v3300_v34, %v7955_v37  ;;  %v3596_v8 = vpop.f32.mrb[207].mxu1 }
 0x2ac   : > { %v8164_v25 = vadd.f32 %v3596_v8, %v8653_v23 }
 0x2ad   : > { %4407 = vst [vmem:[%s7327_s9 + $0xf0] sm:$0xff] %v3750_v51  ;;  %v4877_v9 = vpop.f32.mrb[208].mxu0 }
 0x2ae   : > { %v8168_v55 = vadd.f32 %v4877_v9, %v7982_v54  ;;  %v3600_v31 = vpop.f32.mrb[208].mxu1  ;;  %v3310_v47 = vpop.f32.mrb[209].mxu0 }
 0x2af   : > { %v3751_v11 = vadd.f32 %v3600_v31, %v3397_v46  ;;  %v8171_v21 = vadd.f32 %v3310_v47, %v7973_v56  ;;  %v3602_v62 = vpop.f32.mrb[209].mxu1  ;;  %v8654_v31 = vld [vmem:[#allocation20_spill] sm:$0xff] }
 0x2b0   : > { %v8174_v57 = vadd.f32 %v3602_v62, %v7904_v10 }
 0x2b1   : > { %4409 = vst [vmem:[%s7327_s9 + $0x120] sm:$0xff] %v3751_v11  ;;  %v4880_v37 = vpop.f32.mrb[210].mxu0 }
 0x2b2   : > { %v8178_v26 = vadd.f32 %v4880_v37, %v8000_v49  ;;  %v3606_v13 = vpop.f32.mrb[210].mxu1  ;;  %v3320_v54 = vpop.f32.mrb[211].mxu0 }
 0x2b3   : > { %v3752_v61 = vadd.f32 %v3606_v13, %v3398_v6  ;;  %v8181_v34 = vadd.f32 %v3320_v54, %v7991_v30  ;;  %v3608_v46 = vpop.f32.mrb[211].mxu1  ;;  %v8655_v13 = vld [vmem:[#allocation23_spill] sm:$0xff] }
 0x2b4   : > { %v8184_v56 = vadd.f32 %v3608_v46, %v7917_v44 }
 0x2b5   : > { %4411 = vst [vmem:[%s7327_s9 + $0x130] sm:$0xff] %v3752_v61  ;;  %v4883_v51 = vpop.f32.mrb[212].mxu0 }
 0x2b6   : > { %v8188_v10 = vadd.f32 %v4883_v51, %v8018_v0  ;;  %v3612_v8 = vpop.f32.mrb[212].mxu1  ;;  %v3330_v49 = vpop.f32.mrb[213].mxu0 }
 0x2b7   : > { %v3753_v23 = vadd.f32 %v3612_v8, %v3399_v1  ;;  %v8191_v9 = vadd.f32 %v3330_v49, %v8009_v39  ;;  %v3614_v6 = vpop.f32.mrb[213].mxu1  ;;  %v8656_v49 = vld [vmem:[#allocation22_spill] sm:$0xff] }
 0x2b8   : > { %v8194_v30 = vadd.f32 %v3614_v6, %v8654_v31 }
 0x2b9   : > { %4413 = vst [vmem:[%s7327_s9 + $0x160] sm:$0xff] %v3753_v23  ;;  %v4886_v47 = vpop.f32.mrb[214].mxu0 }
 0x2ba   : > { %v8198_v44 = vadd.f32 %v4886_v47, %v8036_v59  ;;  %v3618_v11 = vpop.f32.mrb[214].mxu1  ;;  %v3340_v0 = vpop.f32.mrb[215].mxu0 }
 0x2bb   : > { %v3754_v62 = vadd.f32 %v3618_v11, %v3400_v41  ;;  %v8201_v37 = vadd.f32 %v3340_v0, %v8027_v35  ;;  %v3620_v1 = vpop.f32.mrb[215].mxu1 }
 0x2bc   : > { %v8204_v39 = vadd.f32 %v3620_v1, %v8655_v13 }
 0x2bd   : > { %4415 = vst [vmem:[%s7327_s9 + $0x170] sm:$0xff] %v3754_v62  ;;  %v4889_v54 = vpop.f32.mrb[216].mxu0 }
 0x2be   : > { %v8208_v61 = vadd.f32 %v4889_v54, %v8054_v19  ;;  %v3624_v46 = vpop.f32.mrb[216].mxu1  ;;  %v3350_v59 = vpop.f32.mrb[217].mxu0 }
 0x2bf   : > { %v3755_v51 = vadd.f32 %v3624_v46, %v3401_v50  ;;  %v8211_v8 = vadd.f32 %v3350_v59, %v8045_v24  ;;  %v3626_v41 = vpop.f32.mrb[217].mxu1 }
 0x2c0   : > { %v8214_v35 = vadd.f32 %v3626_v41, %v8656_v49 }
 0x2c1   : > { %4417 = vst [vmem:[%s7327_s9 + $0x1a0] sm:$0xff] %v3755_v51  ;;  %v4892_v23 = vpop.f32.mrb[218].mxu0 }
 0x2c2   : > { %v8218_v6 = vadd.f32 %v4892_v23, %v8072_v48  ;;  %v3630_v31 = vpop.f32.mrb[218].mxu1  ;;  %v3360_v19 = vpop.f32.mrb[219].mxu0 }
 0x2c3   : > { %v3756_v47 = vadd.f32 %v3630_v31, %v8152_v29  ;;  %v8222_v11 = vadd.f32 %v3360_v19, %v8063_v43  ;;  %v3632_v50 = vpop.f32.mrb[219].mxu1 }
 0x2c4   : > { %v8225_v24 = vadd.f32 %v3632_v50, %v7953_v60 }
 0x2c5   : > { %4419 = vst [vmem:[%s7327_s9 + $0x1b0] sm:$0xff] %v3756_v47  ;;  %v4895_v0 = vpop.f32.mrb[220].mxu0 }
 0x2c6   : > { %v8229_v62 = vadd.f32 %v4895_v0, %v8090_v28  ;;  %v3636_v48 = vpop.f32.mrb[220].mxu1  ;;  %v3370_v1 = vpop.f32.mrb[221].mxu0 }
 0x2c7   : > { %v3757_v13 = vadd.f32 %v3636_v48, %v3403_v27  ;;  %v8232_v54 = vadd.f32 %v3370_v1, %v8081_v58  ;;  %v3638_v29 = vpop.f32.mrb[221].mxu1 }
 0x2c8   : > { %v8235_v43 = vadd.f32 %v3638_v29, %v7962_v32 }
 0x2c9   : > { %4421 = vst [vmem:[%s7327_s9 + $0x1e0] sm:$0xff] %v3757_v13  ;;  %v4898_v46 = vpop.f32.mrb[222].mxu0 }
 0x2ca   : > { %v8239_v60 = vadd.f32 %v4898_v46, %v8108_v53  ;;  %v3642_v59 = vpop.f32.mrb[222].mxu1  ;;  %v3380_v28 = vpop.f32.mrb[223].mxu0 }
 0x2cb   : > { %v3758_v51 = vadd.f32 %v3642_v59, %v8160_v45  ;;  %v8243_v27 = vadd.f32 %v3380_v28, %v8099_v4  ;;  %v3644_v58 = vpop.f32.mrb[223].mxu1 }
 0x2cc   : > { %v8246_v41 = vadd.f32 %v3644_v58, %v7971_v36 }
 0x2cd   : > { %4423 = vst [vmem:[%s7327_s9 + $0x1f0] sm:$0xff] %v3758_v51  ;;  %v4933_v32 = vpop.f32.mrb[224].mxu0 }
 0x2ce   : > { %v3648_v49 = vpop.f32.mrb[224].mxu1  ;;  %v4082_v23 = vadd.f32 %v4933_v32, %v8124_v52  ;;  %v3922_v53 = vpop.f32.mrb[225].mxu0 }
 0x2cf   : > { %v3759_v31 = vadd.f32 %v3648_v49, %v8171_v21  ;;  %v3650_v19 = vpop.f32.mrb[225].mxu1  ;;  %v4081_v45 = vadd.f32 %v3922_v53, %v8118_v20 }
 0x2d0   : > { %4396 = vst [vmem:[%s7327_s9 + $0x38] sm:$0xff] %v4082_v23  ;;  %v8254_v4 = vadd.f32 %v3650_v19, %v7980_v7 }
 0x2d1   : > { %4425 = vst [vmem:[%s7327_s9 + $0x220] sm:$0xff] %v3759_v31  ;;  %4394 = vst [vmem:[%s7327_s9 + $0x28] sm:$0xff] %v4081_v45  ;;  %v4936_v36 = vpop.f32.mrb[226].mxu0 }
 0x2d2   : > { %v3654_v47 = vpop.f32.mrb[226].mxu1  ;;  %v4084_v50 = vadd.f32 %v4936_v36, %v8136_v16  ;;  %v3932_v52 = vpop.f32.mrb[227].mxu0 }
 0x2d3   : > { %v3760_v0 = vadd.f32 %v3654_v47, %v8168_v55  ;;  %v3656_v21 = vpop.f32.mrb[227].mxu1  ;;  %v4083_v48 = vadd.f32 %v3932_v52, %v8130_v42 }
 0x2d4   : > { %4400 = vst [vmem:[%s7327_s9 + $0x78] sm:$0xff] %v4084_v50  ;;  %v8263_v20 = vadd.f32 %v3656_v21, %v7989_v3 }
 0x2d5   : > { %4427 = vst [vmem:[%s7327_s9 + $0x230] sm:$0xff] %v3760_v0  ;;  %4398 = vst [vmem:[%s7327_s9 + $0x68] sm:$0xff] %v4083_v48  ;;  %v4939_v7 = vpop.f32.mrb[228].mxu0 }
 0x2d6   : > { %v3660_v1 = vpop.f32.mrb[228].mxu1  ;;  %v4086_v13 = vadd.f32 %v4939_v7, %v8148_v38  ;;  %v3942_v16 = vpop.f32.mrb[229].mxu0 }
 0x2d7   : > { %v3761_v29 = vadd.f32 %v3660_v1, %v8181_v34  ;;  %v3662_v55 = vpop.f32.mrb[229].mxu1  ;;  %v4085_v46 = vadd.f32 %v3942_v16, %v8142_v5 }
 0x2d8   : > { %4404 = vst [vmem:[%s7327_s9 + $0xb8] sm:$0xff] %v4086_v13  ;;  %v8272_v42 = vadd.f32 %v3662_v55, %v7998_v14 }
 0x2d9   : > { %4429 = vst [vmem:[%s7327_s9 + $0x260] sm:$0xff] %v3761_v29  ;;  %4402 = vst [vmem:[%s7327_s9 + $0xa8] sm:$0xff] %v4085_v46  ;;  %v4942_v3 = vpop.f32.mrb[230].mxu0 }
 0x2da   : > { %v3666_v59 = vpop.f32.mrb[230].mxu1  ;;  %v4088_v28 = vadd.f32 %v4942_v3, %v8164_v25  ;;  %v3952_v38 = vpop.f32.mrb[231].mxu0 }
 0x2db   : > { %v3762_v51 = vadd.f32 %v3666_v59, %v8178_v26  ;;  %v3668_v34 = vpop.f32.mrb[231].mxu1  ;;  %v4087_v58 = vadd.f32 %v3952_v38, %v8156_v40 }
 0x2dc   : > { %4408 = vst [vmem:[%s7327_s9 + $0xf8] sm:$0xff] %v4088_v28  ;;  %v3794_v5 = vadd.f32 %v3668_v34, %v8007_v15 }
 0x2dd   : > { %4431 = vst [vmem:[%s7327_s9 + $0x270] sm:$0xff] %v3762_v51  ;;  %4406 = vst [vmem:[%s7327_s9 + $0xe8] sm:$0xff] %v4087_v58  ;;  %v4945_v14 = vpop.f32.mrb[232].mxu0 }
 0x2de   : > { %v3672_v32 = vpop.f32.mrb[232].mxu1  ;;  %v4090_v49 = vadd.f32 %v4945_v14, %v8184_v56  ;;  %v3962_v25 = vpop.f32.mrb[233].mxu0 }
 0x2df   : > { %v3763_v23 = vadd.f32 %v3672_v32, %v8191_v9  ;;  %v3674_v26 = vpop.f32.mrb[233].mxu1  ;;  %v4089_v53 = vadd.f32 %v3962_v25, %v8174_v57  ;;  %v8657_v57 = vld [vmem:[#allocation25_spill] sm:$0xff] }
 0x2e0   : > { %4412 = vst [vmem:[%s7327_s9 + $0x138] sm:$0xff] %v4090_v49  ;;  %v8288_v40 = vadd.f32 %v3674_v26, %v8016_v22 }
 0x2e1   : > { %4433 = vst [vmem:[%s7327_s9 + $0x2a0] sm:$0xff] %v3763_v23  ;;  %4410 = vst [vmem:[%s7327_s9 + $0x128] sm:$0xff] %v4089_v53  ;;  %v4948_v15 = vpop.f32.mrb[234].mxu0  ;;  %v8659_v23 = vld [vmem:[#allocation27_spill] sm:$0xff] }
 0x2e2   : > { %v3678_v31 = vpop.f32.mrb[234].mxu1  ;;  %v4092_v19 = vadd.f32 %v4948_v15, %v8204_v39  ;;  %v3972_v56 = vpop.f32.mrb[235].mxu0 }
 0x2e3   : > { %v3764_v45 = vadd.f32 %v3678_v31, %v8188_v10  ;;  %v3680_v9 = vpop.f32.mrb[235].mxu1  ;;  %v4091_v36 = vadd.f32 %v3972_v56, %v8194_v30  ;;  %v8658_v30 = vld [vmem:[#allocation24_spill] sm:$0xff] }
 0x2e4   : > { %4416 = vst [vmem:[%s7327_s9 + $0x178] sm:$0xff] %v4092_v19  ;;  %v3796_v47 = vadd.f32 %v3680_v9, %v8657_v57 }
 0x2e5   : > { %4435 = vst [vmem:[%s7327_s9 + $0x2b0] sm:$0xff] %v3764_v45  ;;  %4414 = vst [vmem:[%s7327_s9 + $0x168] sm:$0xff] %v4091_v36  ;;  %v4951_v22 = vpop.f32.mrb[236].mxu0 }
 0x2e6   : > { %v3684_v50 = vpop.f32.mrb[236].mxu1  ;;  %v4094_v52 = vadd.f32 %v4951_v22, %v8225_v24  ;;  %v3982_v39 = vpop.f32.mrb[237].mxu0  ;;  %v8660_v22 = vld [vmem:[#allocation26_spill] sm:$0xff] }
 0x2e7   : > { %v3765_v0 = vadd.f32 %v3684_v50, %v8201_v37  ;;  %v3686_v10 = vpop.f32.mrb[237].mxu1  ;;  %v4093_v21 = vadd.f32 %v3982_v39, %v8214_v35 }
 0x2e8   : > { %4420 = vst [vmem:[%s7327_s9 + $0x1b8] sm:$0xff] %v4094_v52  ;;  %v3797_v48 = vadd.f32 %v3686_v10, %v8658_v30 }
 0x2e9   : > { %4437 = vst [vmem:[%s7327_s9 + $0x2e0] sm:$0xff] %v3765_v0  ;;  %4418 = vst [vmem:[%s7327_s9 + $0x1a8] sm:$0xff] %v4093_v21  ;;  %v4954_v7 = vpop.f32.mrb[238].mxu0 }
 0x2ea   : > { %v3690_v1 = vpop.f32.mrb[238].mxu1  ;;  %v4096_v13 = vadd.f32 %v4954_v7, %v8246_v41  ;;  %v3992_v24 = vpop.f32.mrb[239].mxu0 }
 0x2eb   : > { %v3766_v16 = vadd.f32 %v3690_v1, %v8198_v44  ;;  %v3692_v37 = vpop.f32.mrb[239].mxu1  ;;  %v4095_v29 = vadd.f32 %v3992_v24, %v8235_v43 }
 0x2ec   : > { %4424 = vst [vmem:[%s7327_s9 + $0x1f8] sm:$0xff] %v4096_v13  ;;  %v3798_v35 = vadd.f32 %v3692_v37, %v8043_v17  ;;  %v8661_v37 = vld [vmem:[#allocation29_spill] sm:$0xff] }
 0x2ed   : > { %4439 = vst [vmem:[%s7327_s9 + $0x2f0] sm:$0xff] %v3766_v16  ;;  %4422 = vst [vmem:[%s7327_s9 + $0x1e8] sm:$0xff] %v4095_v29  ;;  %v4957_v55 = vpop.f32.mrb[240].mxu0 }
 0x2ee   : > { %v3696_v46 = vpop.f32.mrb[240].mxu1  ;;  %v4098_v3 = vadd.f32 %v4957_v55, %v8263_v20  ;;  %v4002_v41 = vpop.f32.mrb[241].mxu0 }
 0x2ef   : > { %v3767_v59 = vadd.f32 %v3696_v46, %v8211_v8  ;;  %v3698_v44 = vpop.f32.mrb[241].mxu1  ;;  %v4097_v28 = vadd.f32 %v4002_v41, %v8254_v4 }
 0x2f0   : > { %4428 = vst [vmem:[%s7327_s9 + $0x238] sm:$0xff] %v4098_v3  ;;  %v3799_v43 = vadd.f32 %v3698_v44, %v8052_v18 }
 0x2f1   : > { %4441 = vst [vmem:[%s7327_s9 + $0x320] sm:$0xff] %v3767_v59  ;;  %4426 = vst [vmem:[%s7327_s9 + $0x228] sm:$0xff] %v4097_v28  ;;  %v4960_v17 = vpop.f32.mrb[242].mxu0 }
 0x2f2   : > { %v3702_v38 = vpop.f32.mrb[242].mxu1  ;;  %v4100_v51 = vadd.f32 %v4960_v17, %v3794_v5  ;;  %v4012_v34 = vpop.f32.mrb[243].mxu0 }
 0x2f3   : > { %v3768_v20 = vadd.f32 %v3702_v38, %v8208_v61  ;;  %v3704_v58 = vpop.f32.mrb[243].mxu1  ;;  %v4099_v8 = vadd.f32 %v4012_v34, %v8272_v42 }
 0x2f4   : > { %4432 = vst [vmem:[%s7327_s9 + $0x278] sm:$0xff] %v4100_v51  ;;  %v3800_v4 = vadd.f32 %v3704_v58, %v8061_v63 }
 0x2f5   : > { %4443 = vst [vmem:[%s7327_s9 + $0x330] sm:$0xff] %v3768_v20  ;;  %4430 = vst [vmem:[%s7327_s9 + $0x268] sm:$0xff] %v4099_v8  ;;  %v4963_v18 = vpop.f32.mrb[244].mxu0 }
 0x2f6   : > { %v3708_v14 = vpop.f32.mrb[244].mxu1  ;;  %v4102_v32 = vadd.f32 %v4963_v18, %v3796_v47  ;;  %v4022_v49 = vpop.f32.mrb[245].mxu0 }
 0x2f7   : > { %v3769_v5 = vadd.f32 %v3708_v14, %v8222_v11  ;;  %v3710_v25 = vpop.f32.mrb[245].mxu1  ;;  %v4101_v61 = vadd.f32 %v4022_v49, %v8288_v40 }
 0x2f8   : > { %4436 = vst [vmem:[%s7327_s9 + $0x2b8] sm:$0xff] %v4102_v32  ;;  %v3801_v42 = vadd.f32 %v3710_v25, %v8659_v23 }
 0x2f9   : > { %4445 = vst [vmem:[%s7327_s9 + $0x360] sm:$0xff] %v3769_v5  ;;  %4434 = vst [vmem:[%s7327_s9 + $0x2a8] sm:$0xff] %v4101_v61  ;;  %v4966_v63 = vpop.f32.mrb[246].mxu0 }
 0x2fa   : > { %v3714_v26 = vpop.f32.mrb[246].mxu1  ;;  %v4104_v53 = vadd.f32 %v4966_v63, %v3798_v35  ;;  %v4032_v15 = vpop.f32.mrb[247].mxu0 }
 0x2fb   : > { %v3770_v31 = vadd.f32 %v3714_v26, %v8218_v6  ;;  %v3716_v19 = vpop.f32.mrb[247].mxu1  ;;  %v4103_v11 = vadd.f32 %v4032_v15, %v3797_v48 }
 0x2fc   : > { %4440 = vst [vmem:[%s7327_s9 + $0x2f8] sm:$0xff] %v4104_v53  ;;  %v3802_v56 = vadd.f32 %v3716_v19, %v8079_v12 }
 0x2fd   : > { %4447 = vst [vmem:[%s7327_s9 + $0x370] sm:$0xff] %v3770_v31  ;;  %4438 = vst [vmem:[%s7327_s9 + $0x2e8] sm:$0xff] %v4103_v11  ;;  %v4969_v40 = vpop.f32.mrb[248].mxu0 }
 0x2fe   : > { %v3720_v45 = vpop.f32.mrb[248].mxu1  ;;  %v4106_v9 = vadd.f32 %v4969_v40, %v3800_v4  ;;  %v4042_v36 = vpop.f32.mrb[249].mxu0 }
 0x2ff   : > { %v3771_v57 = vadd.f32 %v3720_v45, %v8232_v54  ;;  %v3722_v47 = vpop.f32.mrb[249].mxu1  ;;  %v4105_v6 = vadd.f32 %v4042_v36, %v3799_v43 }
 0x300   : > { %4444 = vst [vmem:[%s7327_s9 + $0x338] sm:$0xff] %v4106_v9  ;;  %v3803_v50 = vadd.f32 %v3722_v47, %v8660_v22 }
 0x301   : > { %4449 = vst [vmem:[%s7327_s9 + $0x3a0] sm:$0xff] %v3771_v57  ;;  %4442 = vst [vmem:[%s7327_s9 + $0x328] sm:$0xff] %v4105_v6  ;;  %v4972_v52 = vpop.f32.mrb[250].mxu0 }
 0x302   : > { %v3726_v12 = vpop.f32.mrb[250].mxu1  ;;  %v4108_v39 = vadd.f32 %v4972_v52, %v3802_v56  ;;  %v4052_v0 = vpop.f32.mrb[251].mxu0 }
 0x303   : > { %v3772_v10 = vadd.f32 %v3726_v12, %v8229_v62  ;;  %v3728_v21 = vpop.f32.mrb[251].mxu1  ;;  %v4107_v54 = vadd.f32 %v4052_v0, %v3801_v42 }
 0x304   : > { %4448 = vst [vmem:[%s7327_s9 + $0x378] sm:$0xff] %v4108_v39  ;;  %v3804_v30 = vadd.f32 %v3728_v21, %v8097_v33 }
 0x305   : > { %4451 = vst [vmem:[%s7327_s9 + $0x3b0] sm:$0xff] %v3772_v10  ;;  %4446 = vst [vmem:[%s7327_s9 + $0x368] sm:$0xff] %v4107_v54  ;;  %v4975_v48 = vpop.f32.mrb[252].mxu0 }
 0x306   : > { %v3732_v7 = vpop.f32.mrb[252].mxu1  ;;  %v4110_v1 = vadd.f32 %v4975_v48, %v3804_v30  ;;  %v4062_v13 = vpop.f32.mrb[253].mxu0 }
 0x307   : > { %v3773_v24 = vadd.f32 %v3732_v7, %v8243_v27  ;;  %v3734_v16 = vpop.f32.mrb[253].mxu1  ;;  %v4109_v62 = vadd.f32 %v4062_v13, %v3803_v50 }
 0x308   : > { %4452 = vst [vmem:[%s7327_s9 + $0x3b8] sm:$0xff] %v4110_v1  ;;  %v3805_v29 = vadd.f32 %v3734_v16, %v8661_v37 }
 0x309   : > { %4453 = vst [vmem:[%s7327_s9 + $0x3e0] sm:$0xff] %v3773_v24  ;;  %4450 = vst [vmem:[%s7327_s9 + $0x3a8] sm:$0xff] %v4109_v62  ;;  %v4978_v33 = vpop.f32.mrb[254].mxu0 }
 0x30a   : > { %v3738_v35 = vpop.f32.mrb[254].mxu1  ;;  %v4072_v55 = vpop.f32.mrb[255].mxu0 }
 0x30b   : > { %v3774_v46 = vadd.f32 %v3738_v35, %v8239_v60  ;;  %v3740_v27 = vpop.f32.mrb[255].mxu1  ;;  %v4111_v3 = vadd.f32 %v4072_v55, %v3805_v29 }
 0x30c   : > { %v3806_v41 = vadd.f32 %v3740_v27, %v8113_v2 }
 0x30d   : > { %4455 = vst [vmem:[%s7327_s9 + $0x3f0] sm:$0xff] %v3774_v46  ;;  %4454 = vst [vmem:[%s7327_s9 + $0x3e8] sm:$0xff] %v4111_v3 }
 0x30e   : > { %v4112_v59 = vadd.f32 %v4978_v33, %v3806_v41 }
 0x310   : > { %4456 = vst [vmem:[%s7327_s9 + $0x3f8] sm:$0xff] %v4112_v59 }
 0x311   : > { %5481 = shalt.err (!%p5478_p5)
}
 0x312   : > { %s5482_s7 = scalar_lea.hbm %s8361_s25, 16384  ;;  %s5486_s14 = scalar_lea.hbm %s8419_s5, 32768 }
 0x313   : > { %p5483_p6 = scmp.ne.s32.totalorder %s8361_s25, %s5482_s7  ;;  %p5487_p10 = scmp.lt.u32.totalorder %s8361_s25, %s8419_s5 }
 0x314   : > { %p5488_p11 = scmp.lt.u32.totalorder %s5486_s14, %s5482_s7  ;;  %p5490_p13 = scmp.lt.u32.totalorder %s5482_s7, %s8361_s25 }
 0x315   : > { %p5484_p7 = pnand %p5483_p6, %p5622_p4 }
 0x316   : > { %p5489_p12 = por %p5488_p11, %p5487_p10 }
 0x317   : > { %p5485_p9 = pneg %p5484_p7 }
 0x318   : > { %p5491_p0 = por %p5490_p13, %p5489_p12 }
 0x31a   : > { %p5492_p1 = pnand %p5491_p0, %p5485_p9 }
 0x31c   : > { %5495 = shalt.err (!%p5492_p1)
}
 0x31d   : > { %s5550_s11 = smov 256   ;;  %s5551_s17 = smov 16  }
 0x31e   : > { %5301 = dma.vmem_to_hbm [thread:$0]  (%p5622_p4), %s8363_s15, 16384, %s8361_s25, %s8368_s21, %s5550_s11, %s5550_s11, %s5551_s17  }
 0x31f PF: > { %p5308_p2 = scmp.ge.s32.totalorder %s5546_s23, 2  ;;  %s4274_s24 = sand.u32 1, %s5526_s18  }
 0x320   : > { %s4275_s16 = scalar_lea.sflag [#allocation4], %s4274_s24 }
 0x321   : > { %p5304_p3 = pnand %p5308_p2, %p5629_p8 }
 0x323   : > { %5521 = dma.done.wait (!%p5304_p3), %s4275_s16, 16384  }
 0x324   : > { %5523 = vsyncadd (!%p5304_p3), %s4275_s16, 4294950912  ;;  %s18_s23 = sadd.s32 1, %s5546_s23   ;;  %s8662_s18 = smov %s5530_s19 }
 0x325   : > { %p15_p5 = scmp.ge.s32.totalorder %s18_s23, 4   ;;  %s8663_s19 = smov %s5534_s20 }
 0x326   : > { %s8664_s20 = smov %s5635_s6  ;;  %s8665_s21 = smov %s5542_s22 }
 0x327   : > { %s8666_s22 = smov %s8668_s26  ;;  %17 = sbr.rel (!%p15_p5) target bundleno = 4 (0x4), region = 96 }
 0x32e   :  { %4280 = vsyncpa [#allocation4], 1 }
 0x32f   :  { %4282 = vsyncpa [#allocation4 + $0x1], 1 }

</bundles_post_ra>
